<compile_context>
chip_gen: v6e
topology: v6e:2x2x1
jax: 0.10.0
libtpu: 0.0.40
codegen_flags: <defaults>
</compile_context>

<pallas_src>
import numpy as np
import jax
import jax.numpy as jnp
from jax.experimental import pallas as pl
from jax.experimental.pallas import tpu as pltpu


# Row "slabs" (input row parity a, polyphase row offset p) and column offsets q
# that a 3x3 conv + PixelUnshuffle(2) touches.  Scratch row r holds polyphase
# row (oh0 + r - 1); slab (a, p) reads scratch rows [p+1, p+1+TH).
_ROW_SLABS = ((1, -1), (0, 0), (1, 0), (0, 1))
_COL_OFFS = (-1, 0, 1)


def _build_slab_weights(weight, dtype):
    """Fold conv taps + PixelUnshuffle(2) interleave into 12 slab weights.

    weight: (Co, C, 3, 3) OIHW.
    Returns (12, 2*C, 4*Co) with
      w[ra*3+qi, b*C+ci, co*4 + 2*i + j] = weight[co, ci, kh, kw],
      kh = 2*p + a + 1 - i, kw = 2*q + b + 1 - j   (0 where kh/kw out of range),
    so a plain (M, 2C) x (2C, 4Co) dot lands results in PyTorch channel order.
    """
    Co, C = weight.shape[0], weight.shape[1]

    kh = np.zeros((4, 2), np.int32)
    vh = np.zeros((4, 2), np.float32)
    for ra, (a, p) in enumerate(_ROW_SLABS):
        for i in range(2):
            k = 2 * p + a + 1 - i
            vh[ra, i] = float(0 <= k <= 2)
            kh[ra, i] = min(max(k, 0), 2)

    kw = np.zeros((3, 2, 2), np.int32)
    vw = np.zeros((3, 2, 2), np.float32)
    for qi, q in enumerate(_COL_OFFS):
        for b in range(2):
            for j in range(2):
                k = 2 * q + b + 1 - j
                vw[qi, b, j] = float(0 <= k <= 2)
                kw[qi, b, j] = min(max(k, 0), 2)

    g = weight[:, :, kh, :]            # (Co, C, 4, 2, 3)
    g = g[..., kw]                     # (Co, C, 4, 2, 3, 2, 2)  [co,ci,ra,i,qi,b,j]
    mask = vh[:, :, None, None, None] * vw[None, None, :, :, :]  # (4,2,3,2,2)
    g = g * jnp.asarray(mask, g.dtype)
    g = jnp.transpose(g, (2, 4, 5, 1, 0, 3, 6))   # (ra, qi, b, C, Co, i, j)
    return g.reshape(12, 2 * C, 4 * Co).astype(dtype)


def _dc_kernel(x_ref, xtop_ref, xbot_ref, w_ref, fea_ref, o_ref, xp_ref, acc_ref):
    # x_ref   : (1, TH, 2, Wo, 2C)   this tile's polyphase rows (col parity in lanes)
    # xtop_ref: (1, 1, 1, Wo, 2C)    polyphase row oh0-1, parity a=1 (clamped)
    # xbot_ref: (1, 1, 1, Wo, 2C)    polyphase row oh0+TH, parity a=0 (clamped)
    # w_ref   : (12, 2C, 4Co)        combined slab weights
    # fea_ref : (1, TH*Wo, Cf)       skip features, spatially flattened
    # o_ref   : (1, TH*Wo, 4Co+Cf)   output block, spatially flattened
    # xp_ref  : (2, TH+2, Wo+2, 2C)  polyphase scratch (activation dtype)
    # acc_ref : (TH*Wo, 4Co) f32     accumulator
    _, TH, _, Wo, C2 = x_ref.shape
    Co4 = w_ref.shape[2]
    Cf = fea_ref.shape[2]
    dt = xp_ref.dtype
    t = pl.program_id(1)
    nt = pl.num_programs(1)
    M = TH * Wo

    # ---- polyphase scratch: interior + halo rows + zero pad borders ------
    xp_ref[0, 1:TH + 1, 1:Wo + 1, :] = x_ref[0, :, 0, :, :]
    xp_ref[1, 1:TH + 1, 1:Wo + 1, :] = x_ref[0, :, 1, :, :]

    # border-only zeroing (conv padding=1 at half resolution, left/right cols)
    zcol = jnp.zeros((2, TH + 2, 1, C2), dt)
    xp_ref[:, :, 0:1, :] = zcol
    xp_ref[:, :, Wo + 1:Wo + 2, :] = zcol

    # top halo row (read only by slab (a=1, p=-1)); zeros at the image top
    @pl.when(t > 0)
    def _():
        xp_ref[1, 0, 1:Wo + 1, :] = xtop_ref[0, 0, 0, :, :]

    @pl.when(t == 0)
    def _():
        xp_ref[1, 0, 1:Wo + 1, :] = jnp.zeros((Wo, C2), dt)

    # bottom halo row (read only by slab (a=0, p=+1)); zeros at the bottom
    @pl.when(t < nt - 1)
    def _():
        xp_ref[0, TH + 1, 1:Wo + 1, :] = xbot_ref[0, 0, 0, :, :]

    @pl.when(t == nt - 1)
    def _():
        xp_ref[0, TH + 1, 1:Wo + 1, :] = jnp.zeros((Wo, C2), dt)

    # ---- conv3x3 + PixelUnshuffle(2): 12 accumulate-dots into f32 scratch --
    # Note: while 4*Co <= one MXU lane pass (<=128 on v5e, <=256 on v6e/v7x) the
    # structural zeros in the slab weights are free; above that a split-output
    # variant would be preferable.
    idx = 0
    for a, p in _ROW_SLABS:
        for q in _COL_OFFS:
            lhs = xp_ref[a, p + 1:p + 1 + TH, q + 1:q + 1 + Wo, :].reshape(M, C2)
            contrib = jnp.dot(lhs, w_ref[idx], preferred_element_type=jnp.float32)
            if idx == 0:
                acc_ref[...] = contrib          # first dot assigns: no zero pass
            else:
                acc_ref[...] += contrib
            idx += 1

    # ---- two plain stores: conv half, then fea half (no concat temporary) --
    o_ref[0, :, 0:Co4] = acc_ref[...].astype(o_ref.dtype)
    o_ref[0, :, Co4:Co4 + Cf] = fea_ref[0].astype(o_ref.dtype)


def dc_forward(x, weight, fea, *, row_tile=32):
    """DC forward.

    x      : (B, H, W, C)        NHWC input
    weight : (C//4, C, 3, 3)     PyTorch OIHW conv weight (bias=False)
    fea    : (B, H/2, W/2, Cf)   NHWC skip features
    returns: (B, H/2, W/2, C+Cf) == concat([PixelUnshuffle2(conv3x3(x)), fea], ch)
    """
    B, H, W, C = x.shape
    Co = weight.shape[0]
    assert H % 2 == 0 and W % 2 == 0, "PixelUnshuffle(2) needs even H, W"
    assert weight.shape == (Co, C, 3, 3) and 4 * Co == C, "DC expects Cout = C//4"
    Ho, Wo = H // 2, W // 2
    Bf, Hf, Wf, Cf = fea.shape
    assert (Bf, Hf, Wf) == (B, Ho, Wo)
    Ctot = 4 * Co + Cf

    # Row-tile: a multiple of 8 (output sublane tiling) dividing Ho, or the
    # whole image if Ho is small / has no such divisor (correctness fallback).
    if Ho <= row_tile:
        TH = Ho
    else:
        TH = 0
        for d in range(8, row_tile + 1, 8):
            if Ho % d == 0:
                TH = d
        if TH == 0:
            TH = Ho
    n_t = Ho // TH

    # Metadata-only (free) reshapes:
    #   x_split[b, oh, a, ow, bp*C + c] == x[b, 2*oh + a, 2*ow + bp, c]
    x_split = x.reshape(B, Ho, 2, Wo, 2 * C)
    fea_flat = fea.reshape(B, Ho * Wo, Cf)

    # Tiny precompute (hoisted/fused under jit), kept in the activation dtype.
    wcomb = _build_slab_weights(weight, x.dtype)

    itemsize = jnp.dtype(x.dtype).itemsize
    flops = 2 * B * Ho * Wo * 12 * (2 * C) * (4 * Co)
    bytes_accessed = (x.size * itemsize
                      + fea.size * jnp.dtype(fea.dtype).itemsize
                      + wcomb.size * jnp.dtype(wcomb.dtype).itemsize
                      + B * Ho * Wo * Ctot * itemsize)

    out_flat = pl.pallas_call(
        _dc_kernel,
        out_shape=jax.ShapeDtypeStruct((B, Ho * Wo, Ctot), x.dtype),
        grid_spec=pltpu.PrefetchScalarGridSpec(
            num_scalar_prefetch=0,
            grid=(B, n_t),
            in_specs=[
                pl.BlockSpec((1, TH, 2, Wo, 2 * C),
                             lambda b, t: (b, t, 0, 0, 0)),
                pl.BlockSpec((1, 1, 1, Wo, 2 * C),
                             lambda b, t: (b, jnp.maximum(t * TH - 1, 0), 1, 0, 0)),
                pl.BlockSpec((1, 1, 1, Wo, 2 * C),
                             lambda b, t: (b, jnp.minimum(t * TH + TH, Ho - 1), 0, 0, 0)),
                pl.BlockSpec((12, 2 * C, 4 * Co), lambda b, t: (0, 0, 0)),
                pl.BlockSpec((1, TH * Wo, Cf), lambda b, t: (b, t, 0)),
            ],
            out_specs=pl.BlockSpec((1, TH * Wo, Ctot), lambda b, t: (b, t, 0)),
            scratch_shapes=[
                pltpu.VMEM((2, TH + 2, Wo + 2, 2 * C), x.dtype),
                pltpu.VMEM((TH * Wo, 4 * Co), jnp.float32),
            ],
        ),
        compiler_params=pltpu.CompilerParams(
            dimension_semantics=("parallel", "parallel"),
            vmem_limit_bytes=64 * 1024 * 1024),
        cost_estimate=pl.CostEstimate(flops=flops, transcendentals=0,
                                      bytes_accessed=bytes_accessed),
    )(x_split, x_split, x_split, wcomb, fea_flat)

    return out_flat.reshape(B, Ho, Wo, Ctot)


def dc_reference(x_nhwc, weight, fea_nhwc):
    """Pure-JAX reference mirroring the PyTorch module (computed in NCHW)."""
    x = jnp.transpose(x_nhwc, (0, 3, 1, 2))
    fea = jnp.transpose(fea_nhwc, (0, 3, 1, 2))
    y = jax.lax.conv_general_dilated(
        x, weight, window_strides=(1, 1), padding=((1, 1), (1, 1)),
        dimension_numbers=("NCHW", "OIHW", "NCHW"))
    B, Co, H, W = y.shape
    Ho, Wo = H // 2, W // 2
    # torch.nn.PixelUnshuffle(2)
    z = y.reshape(B, Co, Ho, 2, Wo, 2).transpose(0, 1, 3, 5, 2, 4)
    z = z.reshape(B, Co * 4, Ho, Wo)
    out = jnp.concatenate([z, fea], axis=1)
    return jnp.transpose(out, (0, 2, 3, 1))


if __name__ == "__main__":
    B, n_feat, H, W = 2, 16, 32, 32
    Co = n_feat // 4
    Ho, Wo = H // 2, W // 2
    Cf = n_feat        # fea has n_feat channels -> output has 2*n_feat channels

    key = jax.random.PRNGKey(0)
    kx, kw, kf = jax.random.split(key, 3)
    x = jax.random.normal(kx, (B, H, W, n_feat), dtype=jnp.float32)              # NHWC
    weight = jax.random.normal(kw, (Co, n_feat, 3, 3), dtype=jnp.float32) * 0.1  # OIHW
    fea = jax.random.normal(kf, (B, Ho, Wo, Cf), dtype=jnp.float32)              # NHWC

    ref = dc_reference(x, weight, fea)

    # Tiled path: Ho = 16, row_tile = 8 -> 2 row tiles, exercises the halo logic.
    out = jax.block_until_ready(dc_forward(x, weight, fea, row_tile=8))
    assert out.shape == (B, Ho, Wo, n_feat + Cf), out.shape
    err = float(jnp.max(jnp.abs(out - ref)))
    assert jnp.allclose(out, ref, atol=1e-4, rtol=1e-4), err

    # Whole-image path (single row tile).
    out1 = jax.block_until_ready(dc_forward(x, weight, fea, row_tile=64))
    err1 = float(jnp.max(jnp.abs(out1 - ref)))
    assert jnp.allclose(out1, ref, atol=1e-4, rtol=1e-4), err1

    print("KERNEL_OK")
</pallas_src>

<mosaic_0001>
module attributes {stable_mosaic.version = 11 : i64} {
  func.func @_dc_kernel(%arg0: i32, %arg1: i32, %arg2: memref<1x8x2x16x32xf32, #tpu.memory_space<vmem>>, %arg3: memref<1x1x1x16x32xf32, #tpu.memory_space<vmem>>, %arg4: memref<1x1x1x16x32xf32, #tpu.memory_space<vmem>>, %arg5: memref<12x32x16xf32, #tpu.memory_space<vmem>>, %arg6: memref<1x128x16xf32, #tpu.memory_space<vmem>>, %arg7: memref<1x128x32xf32, #tpu.memory_space<vmem>>, %arg8: memref<2x10x18x32xf32, #tpu.memory_space<vmem>>, %arg9: memref<128x16xf32, #tpu.memory_space<vmem>>) attributes {dimension_semantics = [#tpu.dimension_semantics<parallel>, #tpu.dimension_semantics<parallel>], iteration_bounds = array<i64: 2, 2>, scalar_prefetch = 0 : i64, scratch_operands = 2 : i64, tpu.core_type = #tpu.core_type<tc>, window_params = [{transform_indices = @transform_0, window_bounds = array<i64: 1, 8, 2, 16, 32>}, {transform_indices = @transform_1, window_bounds = array<i64: 1, 1, 1, 16, 32>}, {transform_indices = @transform_2, window_bounds = array<i64: 1, 1, 1, 16, 32>}, {pipeline_mode = #tpu.pipeline_mode<synchronous>, transform_indices = @transform_3, window_bounds = array<i64: 12, 32, 16>}, {transform_indices = @transform_4, window_bounds = array<i64: 1, 128, 16>}, {transform_indices = @transform_5, window_bounds = array<i64: 1, 128, 32>}]} {
    %c0 = arith.constant 0 : index
    %c0_0 = arith.constant 0 : index
    %c0_1 = arith.constant 0 : index
    %c0_2 = arith.constant 0 : index
    %c0_3 = arith.constant 0 : index
    %0 = vector.load %arg2[%c0, %c0_0, %c0_1, %c0_2, %c0_3] : memref<1x8x2x16x32xf32, #tpu.memory_space<vmem>>, vector<1x8x1x16x32xf32>
    %1 = vector.shape_cast %0 : vector<1x8x1x16x32xf32> to vector<8x16x32xf32>
    %c0_4 = arith.constant 0 : index
    %c1 = arith.constant 1 : index
    %c1_5 = arith.constant 1 : index
    %c0_6 = arith.constant 0 : index
    %2 = vector.load %arg8[%c0_4, %c1, %c1_5, %c0_6] : memref<2x10x18x32xf32, #tpu.memory_space<vmem>>, vector<1x8x16x32xf32>
    %3 = vector.shape_cast %2 : vector<1x8x16x32xf32> to vector<8x16x32xf32>
    %4 = vector.shape_cast %1 : vector<8x16x32xf32> to vector<1x8x16x32xf32>
    tpu.vector_store %arg8[%c0_4, %c1, %c1_5, %c0_6], %4 {strides = array<i32>} : memref<2x10x18x32xf32, #tpu.memory_space<vmem>>, vector<1x8x16x32xf32>,
    %c0_7 = arith.constant 0 : index
    %c0_8 = arith.constant 0 : index
    %c1_9 = arith.constant 1 : index
    %c0_10 = arith.constant 0 : index
    %c0_11 = arith.constant 0 : index
    %5 = vector.load %arg2[%c0_7, %c0_8, %c1_9, %c0_10, %c0_11] : memref<1x8x2x16x32xf32, #tpu.memory_space<vmem>>, vector<1x8x1x16x32xf32>
    %6 = vector.shape_cast %5 : vector<1x8x1x16x32xf32> to vector<8x16x32xf32>
    %c1_12 = arith.constant 1 : index
    %c1_13 = arith.constant 1 : index
    %c1_14 = arith.constant 1 : index
    %c0_15 = arith.constant 0 : index
    %7 = vector.load %arg8[%c1_12, %c1_13, %c1_14, %c0_15] : memref<2x10x18x32xf32, #tpu.memory_space<vmem>>, vector<1x8x16x32xf32>
    %8 = vector.shape_cast %7 : vector<1x8x16x32xf32> to vector<8x16x32xf32>
    %9 = vector.shape_cast %6 : vector<8x16x32xf32> to vector<1x8x16x32xf32>
    tpu.vector_store %arg8[%c1_12, %c1_13, %c1_14, %c0_15], %9 {strides = array<i32>} : memref<2x10x18x32xf32, #tpu.memory_space<vmem>>, vector<1x8x16x32xf32>,
    %cst = arith.constant 0.000000e+00 : f32
    %10 = vector.broadcast %cst : f32 to vector<2x10x1x32xf32>
    %c0_16 = arith.constant 0 : index
    %c0_17 = arith.constant 0 : index
    %c0_18 = arith.constant 0 : index
    %c0_19 = arith.constant 0 : index
    %11 = vector.load %arg8[%c0_16, %c0_17, %c0_18, %c0_19] : memref<2x10x18x32xf32, #tpu.memory_space<vmem>>, vector<2x10x1x32xf32>
    tpu.vector_store %arg8[%c0_16, %c0_17, %c0_18, %c0_19], %10 {strides = array<i32>} : memref<2x10x18x32xf32, #tpu.memory_space<vmem>>, vector<2x10x1x32xf32>,
    %c0_20 = arith.constant 0 : index
    %c0_21 = arith.constant 0 : index
    %c17 = arith.constant 17 : index
    %c0_22 = arith.constant 0 : index
    %12 = vector.load %arg8[%c0_20, %c0_21, %c17, %c0_22] : memref<2x10x18x32xf32, #tpu.memory_space<vmem>>, vector<2x10x1x32xf32>
    tpu.vector_store %arg8[%c0_20, %c0_21, %c17, %c0_22], %10 {strides = array<i32>} : memref<2x10x18x32xf32, #tpu.memory_space<vmem>>, vector<2x10x1x32xf32>,
    %c0_i32 = arith.constant 0 : i32
    %13 = arith.cmpi sgt, %arg1, %c0_i32 : i32
    %14 = arith.extui %13 : i1 to i32
    %c0_i32_23 = arith.constant 0 : i32
    %15 = arith.cmpi ne, %14, %c0_i32_23 : i32
    scf.if %15 {
      %c0_171 = arith.constant 0 : index
      %c0_172 = arith.constant 0 : index
      %c0_173 = arith.constant 0 : index
      %c0_174 = arith.constant 0 : index
      %c0_175 = arith.constant 0 : index
      %140 = vector.load %arg3[%c0_171, %c0_172, %c0_173, %c0_174, %c0_175] : memref<1x1x1x16x32xf32, #tpu.memory_space<vmem>>, vector<1x1x1x16x32xf32>
      %141 = vector.shape_cast %140 : vector<1x1x1x16x32xf32> to vector<16x32xf32>
      %c1_176 = arith.constant 1 : index
      %c0_177 = arith.constant 0 : index
      %c1_178 = arith.constant 1 : index
      %c0_179 = arith.constant 0 : index
      %142 = vector.load %arg8[%c1_176, %c0_177, %c1_178, %c0_179] : memref<2x10x18x32xf32, #tpu.memory_space<vmem>>, vector<1x1x16x32xf32>
      %143 = vector.shape_cast %142 : vector<1x1x16x32xf32> to vector<16x32xf32>
      %144 = vector.shape_cast %141 : vector<16x32xf32> to vector<1x1x16x32xf32>
      tpu.vector_store %arg8[%c1_176, %c0_177, %c1_178, %c0_179], %144 {strides = array<i32>} : memref<2x10x18x32xf32, #tpu.memory_space<vmem>>, vector<1x1x16x32xf32>,
    } else {
    }
    %c0_i32_24 = arith.constant 0 : i32
    %16 = arith.cmpi eq, %arg1, %c0_i32_24 : i32
    %17 = arith.extui %16 : i1 to i32
    %c0_i32_25 = arith.constant 0 : i32
    %18 = arith.cmpi ne, %17, %c0_i32_25 : i32
    scf.if %18 {
      %cst_171 = arith.constant 0.000000e+00 : f32
      %140 = vector.broadcast %cst_171 : f32 to vector<16x32xf32>
      %c1_172 = arith.constant 1 : index
      %c0_173 = arith.constant 0 : index
      %c1_174 = arith.constant 1 : index
      %c0_175 = arith.constant 0 : index
      %141 = vector.load %arg8[%c1_172, %c0_173, %c1_174, %c0_175] : memref<2x10x18x32xf32, #tpu.memory_space<vmem>>, vector<1x1x16x32xf32>
      %142 = vector.shape_cast %141 : vector<1x1x16x32xf32> to vector<16x32xf32>
      %143 = vector.shape_cast %140 : vector<16x32xf32> to vector<1x1x16x32xf32>
      tpu.vector_store %arg8[%c1_172, %c0_173, %c1_174, %c0_175], %143 {strides = array<i32>} : memref<2x10x18x32xf32, #tpu.memory_space<vmem>>, vector<1x1x16x32xf32>,
    } else {
    }
    %c1_i32 = arith.constant 1 : i32
    %19 = arith.cmpi slt, %arg1, %c1_i32 : i32
    %20 = arith.extui %19 : i1 to i32
    %c0_i32_26 = arith.constant 0 : i32
    %21 = arith.cmpi ne, %20, %c0_i32_26 : i32
    scf.if %21 {
      %c0_171 = arith.constant 0 : index
      %c0_172 = arith.constant 0 : index
      %c0_173 = arith.constant 0 : index
      %c0_174 = arith.constant 0 : index
      %c0_175 = arith.constant 0 : index
      %140 = vector.load %arg4[%c0_171, %c0_172, %c0_173, %c0_174, %c0_175] : memref<1x1x1x16x32xf32, #tpu.memory_space<vmem>>, vector<1x1x1x16x32xf32>
      %141 = vector.shape_cast %140 : vector<1x1x1x16x32xf32> to vector<16x32xf32>
      %c0_176 = arith.constant 0 : index
      %c9_177 = arith.constant 9 : index
      %c1_178 = arith.constant 1 : index
      %c0_179 = arith.constant 0 : index
      %142 = vector.load %arg8[%c0_176, %c9_177, %c1_178, %c0_179] : memref<2x10x18x32xf32, #tpu.memory_space<vmem>>, vector<1x1x16x32xf32>
      %143 = vector.shape_cast %142 : vector<1x1x16x32xf32> to vector<16x32xf32>
      %144 = vector.shape_cast %141 : vector<16x32xf32> to vector<1x1x16x32xf32>
      tpu.vector_store %arg8[%c0_176, %c9_177, %c1_178, %c0_179], %144 {strides = array<i32>} : memref<2x10x18x32xf32, #tpu.memory_space<vmem>>, vector<1x1x16x32xf32>,
    } else {
    }
    %c1_i32_27 = arith.constant 1 : i32
    %22 = arith.cmpi eq, %arg1, %c1_i32_27 : i32
    %23 = arith.extui %22 : i1 to i32
    %c0_i32_28 = arith.constant 0 : i32
    %24 = arith.cmpi ne, %23, %c0_i32_28 : i32
    scf.if %24 {
      %cst_171 = arith.constant 0.000000e+00 : f32
      %140 = vector.broadcast %cst_171 : f32 to vector<16x32xf32>
      %c0_172 = arith.constant 0 : index
      %c9_173 = arith.constant 9 : index
      %c1_174 = arith.constant 1 : index
      %c0_175 = arith.constant 0 : index
      %141 = vector.load %arg8[%c0_172, %c9_173, %c1_174, %c0_175] : memref<2x10x18x32xf32, #tpu.memory_space<vmem>>, vector<1x1x16x32xf32>
      %142 = vector.shape_cast %141 : vector<1x1x16x32xf32> to vector<16x32xf32>
      %143 = vector.shape_cast %140 : vector<16x32xf32> to vector<1x1x16x32xf32>
      tpu.vector_store %arg8[%c0_172, %c9_173, %c1_174, %c0_175], %143 {strides = array<i32>} : memref<2x10x18x32xf32, #tpu.memory_space<vmem>>, vector<1x1x16x32xf32>,
    } else {
    }
    %c1_29 = arith.constant 1 : index
    %c0_30 = arith.constant 0 : index
    %c0_31 = arith.constant 0 : index
    %c0_32 = arith.constant 0 : index
    %25 = vector.load %arg8[%c1_29, %c0_30, %c0_31, %c0_32] : memref<2x10x18x32xf32, #tpu.memory_space<vmem>>, vector<1x8x16x32xf32>
    %26 = vector.shape_cast %25 : vector<1x8x16x32xf32> to vector<8x16x32xf32>
    %27 = vector.shape_cast %26 : vector<8x16x32xf32> to vector<128x32xf32>
    %c0_33 = arith.constant 0 : index
    %c0_34 = arith.constant 0 : index
    %c0_35 = arith.constant 0 : index
    %28 = vector.load %arg5[%c0_33, %c0_34, %c0_35] : memref<12x32x16xf32, #tpu.memory_space<vmem>>, vector<1x32x16xf32>
    %29 = vector.shape_cast %28 : vector<1x32x16xf32> to vector<32x16xf32>
    %cst_36 = arith.constant dense<0.000000e+00> : vector<128x16xf32>
    %30 = tpu.matmul %27, %29, %cst_36 {dimension_numbers = #tpu.dot_dimension_numbers<[1], [0], [0], [1], [0, 0, 1, 1], [], []>} : vector<128x32xf32>, vector<32x16xf32>, vector<128x16xf32> -> vector<128x16xf32>
    %c0_37 = arith.constant 0 : index
    %c0_38 = arith.constant 0 : index
    %31 = vector.load %arg9[%c0_37, %c0_38] : memref<128x16xf32, #tpu.memory_space<vmem>>, vector<128x16xf32>
    tpu.vector_store %arg9[%c0_37, %c0_38], %30 {strides = array<i32>} : memref<128x16xf32, #tpu.memory_space<vmem>>, vector<128x16xf32>,
    %c1_39 = arith.constant 1 : index
    %c0_40 = arith.constant 0 : index
    %c1_41 = arith.constant 1 : index
    %c0_42 = arith.constant 0 : index
    %32 = vector.load %arg8[%c1_39, %c0_40, %c1_41, %c0_42] : memref<2x10x18x32xf32, #tpu.memory_space<vmem>>, vector<1x8x16x32xf32>
    %33 = vector.shape_cast %32 : vector<1x8x16x32xf32> to vector<8x16x32xf32>
    %34 = vector.shape_cast %33 : vector<8x16x32xf32> to vector<128x32xf32>
    %c1_43 = arith.constant 1 : index
    %c0_44 = arith.constant 0 : index
    %c0_45 = arith.constant 0 : index
    %35 = vector.load %arg5[%c1_43, %c0_44, %c0_45] : memref<12x32x16xf32, #tpu.memory_space<vmem>>, vector<1x32x16xf32>
    %36 = vector.shape_cast %35 : vector<1x32x16xf32> to vector<32x16xf32>
    %cst_46 = arith.constant dense<0.000000e+00> : vector<128x16xf32>
    %37 = tpu.matmul %34, %36, %cst_46 {dimension_numbers = #tpu.dot_dimension_numbers<[1], [0], [0], [1], [0, 0, 1, 1], [], []>} : vector<128x32xf32>, vector<32x16xf32>, vector<128x16xf32> -> vector<128x16xf32>
    %c0_47 = arith.constant 0 : index
    %c0_48 = arith.constant 0 : index
    %38 = vector.load %arg9[%c0_47, %c0_48] : memref<128x16xf32, #tpu.memory_space<vmem>>, vector<128x16xf32>
    %39 = arith.addf %38, %37 : vector<128x16xf32>
    %c0_49 = arith.constant 0 : index
    %c0_50 = arith.constant 0 : index
    %40 = vector.load %arg9[%c0_49, %c0_50] : memref<128x16xf32, #tpu.memory_space<vmem>>, vector<128x16xf32>
    tpu.vector_store %arg9[%c0_49, %c0_50], %39 {strides = array<i32>} : memref<128x16xf32, #tpu.memory_space<vmem>>, vector<128x16xf32>,
    %c1_51 = arith.constant 1 : index
    %c0_52 = arith.constant 0 : index
    %c2 = arith.constant 2 : index
    %c0_53 = arith.constant 0 : index
    %41 = vector.load %arg8[%c1_51, %c0_52, %c2, %c0_53] : memref<2x10x18x32xf32, #tpu.memory_space<vmem>>, vector<1x8x16x32xf32>
    %42 = vector.shape_cast %41 : vector<1x8x16x32xf32> to vector<8x16x32xf32>
    %43 = vector.shape_cast %42 : vector<8x16x32xf32> to vector<128x32xf32>
    %c2_54 = arith.constant 2 : index
    %c0_55 = arith.constant 0 : index
    %c0_56 = arith.constant 0 : index
    %44 = vector.load %arg5[%c2_54, %c0_55, %c0_56] : memref<12x32x16xf32, #tpu.memory_space<vmem>>, vector<1x32x16xf32>
    %45 = vector.shape_cast %44 : vector<1x32x16xf32> to vector<32x16xf32>
    %cst_57 = arith.constant dense<0.000000e+00> : vector<128x16xf32>
    %46 = tpu.matmul %43, %45, %cst_57 {dimension_numbers = #tpu.dot_dimension_numbers<[1], [0], [0], [1], [0, 0, 1, 1], [], []>} : vector<128x32xf32>, vector<32x16xf32>, vector<128x16xf32> -> vector<128x16xf32>
    %c0_58 = arith.constant 0 : index
    %c0_59 = arith.constant 0 : index
    %47 = vector.load %arg9[%c0_58, %c0_59] : memref<128x16xf32, #tpu.memory_space<vmem>>, vector<128x16xf32>
    %48 = arith.addf %47, %46 : vector<128x16xf32>
    %c0_60 = arith.constant 0 : index
    %c0_61 = arith.constant 0 : index
    %49 = vector.load %arg9[%c0_60, %c0_61] : memref<128x16xf32, #tpu.memory_space<vmem>>, vector<128x16xf32>
    tpu.vector_store %arg9[%c0_60, %c0_61], %48 {strides = array<i32>} : memref<128x16xf32, #tpu.memory_space<vmem>>, vector<128x16xf32>,
    %c0_62 = arith.constant 0 : index
    %c1_63 = arith.constant 1 : index
    %c0_64 = arith.constant 0 : index
    %c0_65 = arith.constant 0 : index
    %50 = vector.load %arg8[%c0_62, %c1_63, %c0_64, %c0_65] : memref<2x10x18x32xf32, #tpu.memory_space<vmem>>, vector<1x8x16x32xf32>
    %51 = vector.shape_cast %50 : vector<1x8x16x32xf32> to vector<8x16x32xf32>
    %52 = vector.shape_cast %51 : vector<8x16x32xf32> to vector<128x32xf32>
    %c3 = arith.constant 3 : index
    %c0_66 = arith.constant 0 : index
    %c0_67 = arith.constant 0 : index
    %53 = vector.load %arg5[%c3, %c0_66, %c0_67] : memref<12x32x16xf32, #tpu.memory_space<vmem>>, vector<1x32x16xf32>
    %54 = vector.shape_cast %53 : vector<1x32x16xf32> to vector<32x16xf32>
    %cst_68 = arith.constant dense<0.000000e+00> : vector<128x16xf32>
    %55 = tpu.matmul %52, %54, %cst_68 {dimension_numbers = #tpu.dot_dimension_numbers<[1], [0], [0], [1], [0, 0, 1, 1], [], []>} : vector<128x32xf32>, vector<32x16xf32>, vector<128x16xf32> -> vector<128x16xf32>
    %c0_69 = arith.constant 0 : index
    %c0_70 = arith.constant 0 : index
    %56 = vector.load %arg9[%c0_69, %c0_70] : memref<128x16xf32, #tpu.memory_space<vmem>>, vector<128x16xf32>
    %57 = arith.addf %56, %55 : vector<128x16xf32>
    %c0_71 = arith.constant 0 : index
    %c0_72 = arith.constant 0 : index
    %58 = vector.load %arg9[%c0_71, %c0_72] : memref<128x16xf32, #tpu.memory_space<vmem>>, vector<128x16xf32>
    tpu.vector_store %arg9[%c0_71, %c0_72], %57 {strides = array<i32>} : memref<128x16xf32, #tpu.memory_space<vmem>>, vector<128x16xf32>,
    %c0_73 = arith.constant 0 : index
    %c1_74 = arith.constant 1 : index
    %c1_75 = arith.constant 1 : index
    %c0_76 = arith.constant 0 : index
    %59 = vector.load %arg8[%c0_73, %c1_74, %c1_75, %c0_76] : memref<2x10x18x32xf32, #tpu.memory_space<vmem>>, vector<1x8x16x32xf32>
    %60 = vector.shape_cast %59 : vector<1x8x16x32xf32> to vector<8x16x32xf32>
    %61 = vector.shape_cast %60 : vector<8x16x32xf32> to vector<128x32xf32>
    %c4 = arith.constant 4 : index
    %c0_77 = arith.constant 0 : index
    %c0_78 = arith.constant 0 : index
    %62 = vector.load %arg5[%c4, %c0_77, %c0_78] : memref<12x32x16xf32, #tpu.memory_space<vmem>>, vector<1x32x16xf32>
    %63 = vector.shape_cast %62 : vector<1x32x16xf32> to vector<32x16xf32>
    %cst_79 = arith.constant dense<0.000000e+00> : vector<128x16xf32>
    %64 = tpu.matmul %61, %63, %cst_79 {dimension_numbers = #tpu.dot_dimension_numbers<[1], [0], [0], [1], [0, 0, 1, 1], [], []>} : vector<128x32xf32>, vector<32x16xf32>, vector<128x16xf32> -> vector<128x16xf32>
    %c0_80 = arith.constant 0 : index
    %c0_81 = arith.constant 0 : index
    %65 = vector.load %arg9[%c0_80, %c0_81] : memref<128x16xf32, #tpu.memory_space<vmem>>, vector<128x16xf32>
    %66 = arith.addf %65, %64 : vector<128x16xf32>
    %c0_82 = arith.constant 0 : index
    %c0_83 = arith.constant 0 : index
    %67 = vector.load %arg9[%c0_82, %c0_83] : memref<128x16xf32, #tpu.memory_space<vmem>>, vector<128x16xf32>
    tpu.vector_store %arg9[%c0_82, %c0_83], %66 {strides = array<i32>} : memref<128x16xf32, #tpu.memory_space<vmem>>, vector<128x16xf32>,
    %c0_84 = arith.constant 0 : index
    %c1_85 = arith.constant 1 : index
    %c2_86 = arith.constant 2 : index
    %c0_87 = arith.constant 0 : index
    %68 = vector.load %arg8[%c0_84, %c1_85, %c2_86, %c0_87] : memref<2x10x18x32xf32, #tpu.memory_space<vmem>>, vector<1x8x16x32xf32>
    %69 = vector.shape_cast %68 : vector<1x8x16x32xf32> to vector<8x16x32xf32>
    %70 = vector.shape_cast %69 : vector<8x16x32xf32> to vector<128x32xf32>
    %c5 = arith.constant 5 : index
    %c0_88 = arith.constant 0 : index
    %c0_89 = arith.constant 0 : index
    %71 = vector.load %arg5[%c5, %c0_88, %c0_89] : memref<12x32x16xf32, #tpu.memory_space<vmem>>, vector<1x32x16xf32>
    %72 = vector.shape_cast %71 : vector<1x32x16xf32> to vector<32x16xf32>
    %cst_90 = arith.constant dense<0.000000e+00> : vector<128x16xf32>
    %73 = tpu.matmul %70, %72, %cst_90 {dimension_numbers = #tpu.dot_dimension_numbers<[1], [0], [0], [1], [0, 0, 1, 1], [], []>} : vector<128x32xf32>, vector<32x16xf32>, vector<128x16xf32> -> vector<128x16xf32>
    %c0_91 = arith.constant 0 : index
    %c0_92 = arith.constant 0 : index
    %74 = vector.load %arg9[%c0_91, %c0_92] : memref<128x16xf32, #tpu.memory_space<vmem>>, vector<128x16xf32>
    %75 = arith.addf %74, %73 : vector<128x16xf32>
    %c0_93 = arith.constant 0 : index
    %c0_94 = arith.constant 0 : index
    %76 = vector.load %arg9[%c0_93, %c0_94] : memref<128x16xf32, #tpu.memory_space<vmem>>, vector<128x16xf32>
    tpu.vector_store %arg9[%c0_93, %c0_94], %75 {strides = array<i32>} : memref<128x16xf32, #tpu.memory_space<vmem>>, vector<128x16xf32>,
    %c1_95 = arith.constant 1 : index
    %c1_96 = arith.constant 1 : index
    %c0_97 = arith.constant 0 : index
    %c0_98 = arith.constant 0 : index
    %77 = vector.load %arg8[%c1_95, %c1_96, %c0_97, %c0_98] : memref<2x10x18x32xf32, #tpu.memory_space<vmem>>, vector<1x8x16x32xf32>
    %78 = vector.shape_cast %77 : vector<1x8x16x32xf32> to vector<8x16x32xf32>
    %79 = vector.shape_cast %78 : vector<8x16x32xf32> to vector<128x32xf32>
    %c6 = arith.constant 6 : index
    %c0_99 = arith.constant 0 : index
    %c0_100 = arith.constant 0 : index
    %80 = vector.load %arg5[%c6, %c0_99, %c0_100] : memref<12x32x16xf32, #tpu.memory_space<vmem>>, vector<1x32x16xf32>
    %81 = vector.shape_cast %80 : vector<1x32x16xf32> to vector<32x16xf32>
    %cst_101 = arith.constant dense<0.000000e+00> : vector<128x16xf32>
    %82 = tpu.matmul %79, %81, %cst_101 {dimension_numbers = #tpu.dot_dimension_numbers<[1], [0], [0], [1], [0, 0, 1, 1], [], []>} : vector<128x32xf32>, vector<32x16xf32>, vector<128x16xf32> -> vector<128x16xf32>
    %c0_102 = arith.constant 0 : index
    %c0_103 = arith.constant 0 : index
    %83 = vector.load %arg9[%c0_102, %c0_103] : memref<128x16xf32, #tpu.memory_space<vmem>>, vector<128x16xf32>
    %84 = arith.addf %83, %82 : vector<128x16xf32>
    %c0_104 = arith.constant 0 : index
    %c0_105 = arith.constant 0 : index
    %85 = vector.load %arg9[%c0_104, %c0_105] : memref<128x16xf32, #tpu.memory_space<vmem>>, vector<128x16xf32>
    tpu.vector_store %arg9[%c0_104, %c0_105], %84 {strides = array<i32>} : memref<128x16xf32, #tpu.memory_space<vmem>>, vector<128x16xf32>,
    %c1_106 = arith.constant 1 : index
    %c1_107 = arith.constant 1 : index
    %c1_108 = arith.constant 1 : index
    %c0_109 = arith.constant 0 : index
    %86 = vector.load %arg8[%c1_106, %c1_107, %c1_108, %c0_109] : memref<2x10x18x32xf32, #tpu.memory_space<vmem>>, vector<1x8x16x32xf32>
    %87 = vector.shape_cast %86 : vector<1x8x16x32xf32> to vector<8x16x32xf32>
    %88 = vector.shape_cast %87 : vector<8x16x32xf32> to vector<128x32xf32>
    %c7 = arith.constant 7 : index
    %c0_110 = arith.constant 0 : index
    %c0_111 = arith.constant 0 : index
    %89 = vector.load %arg5[%c7, %c0_110, %c0_111] : memref<12x32x16xf32, #tpu.memory_space<vmem>>, vector<1x32x16xf32>
    %90 = vector.shape_cast %89 : vector<1x32x16xf32> to vector<32x16xf32>
    %cst_112 = arith.constant dense<0.000000e+00> : vector<128x16xf32>
    %91 = tpu.matmul %88, %90, %cst_112 {dimension_numbers = #tpu.dot_dimension_numbers<[1], [0], [0], [1], [0, 0, 1, 1], [], []>} : vector<128x32xf32>, vector<32x16xf32>, vector<128x16xf32> -> vector<128x16xf32>
    %c0_113 = arith.constant 0 : index
    %c0_114 = arith.constant 0 : index
    %92 = vector.load %arg9[%c0_113, %c0_114] : memref<128x16xf32, #tpu.memory_space<vmem>>, vector<128x16xf32>
    %93 = arith.addf %92, %91 : vector<128x16xf32>
    %c0_115 = arith.constant 0 : index
    %c0_116 = arith.constant 0 : index
    %94 = vector.load %arg9[%c0_115, %c0_116] : memref<128x16xf32, #tpu.memory_space<vmem>>, vector<128x16xf32>
    tpu.vector_store %arg9[%c0_115, %c0_116], %93 {strides = array<i32>} : memref<128x16xf32, #tpu.memory_space<vmem>>, vector<128x16xf32>,
    %c1_117 = arith.constant 1 : index
    %c1_118 = arith.constant 1 : index
    %c2_119 = arith.constant 2 : index
    %c0_120 = arith.constant 0 : index
    %95 = vector.load %arg8[%c1_117, %c1_118, %c2_119, %c0_120] : memref<2x10x18x32xf32, #tpu.memory_space<vmem>>, vector<1x8x16x32xf32>
    %96 = vector.shape_cast %95 : vector<1x8x16x32xf32> to vector<8x16x32xf32>
    %97 = vector.shape_cast %96 : vector<8x16x32xf32> to vector<128x32xf32>
    %c8 = arith.constant 8 : index
    %c0_121 = arith.constant 0 : index
    %c0_122 = arith.constant 0 : index
    %98 = vector.load %arg5[%c8, %c0_121, %c0_122] : memref<12x32x16xf32, #tpu.memory_space<vmem>>, vector<1x32x16xf32>
    %99 = vector.shape_cast %98 : vector<1x32x16xf32> to vector<32x16xf32>
    %cst_123 = arith.constant dense<0.000000e+00> : vector<128x16xf32>
    %100 = tpu.matmul %97, %99, %cst_123 {dimension_numbers = #tpu.dot_dimension_numbers<[1], [0], [0], [1], [0, 0, 1, 1], [], []>} : vector<128x32xf32>, vector<32x16xf32>, vector<128x16xf32> -> vector<128x16xf32>
    %c0_124 = arith.constant 0 : index
    %c0_125 = arith.constant 0 : index
    %101 = vector.load %arg9[%c0_124, %c0_125] : memref<128x16xf32, #tpu.memory_space<vmem>>, vector<128x16xf32>
    %102 = arith.addf %101, %100 : vector<128x16xf32>
    %c0_126 = arith.constant 0 : index
    %c0_127 = arith.constant 0 : index
    %103 = vector.load %arg9[%c0_126, %c0_127] : memref<128x16xf32, #tpu.memory_space<vmem>>, vector<128x16xf32>
    tpu.vector_store %arg9[%c0_126, %c0_127], %102 {strides = array<i32>} : memref<128x16xf32, #tpu.memory_space<vmem>>, vector<128x16xf32>,
    %c0_128 = arith.constant 0 : index
    %c2_129 = arith.constant 2 : index
    %c0_130 = arith.constant 0 : index
    %c0_131 = arith.constant 0 : index
    %104 = vector.load %arg8[%c0_128, %c2_129, %c0_130, %c0_131] : memref<2x10x18x32xf32, #tpu.memory_space<vmem>>, vector<1x8x16x32xf32>
    %105 = vector.shape_cast %104 : vector<1x8x16x32xf32> to vector<8x16x32xf32>
    %106 = vector.shape_cast %105 : vector<8x16x32xf32> to vector<128x32xf32>
    %c9 = arith.constant 9 : index
    %c0_132 = arith.constant 0 : index
    %c0_133 = arith.constant 0 : index
    %107 = vector.load %arg5[%c9, %c0_132, %c0_133] : memref<12x32x16xf32, #tpu.memory_space<vmem>>, vector<1x32x16xf32>
    %108 = vector.shape_cast %107 : vector<1x32x16xf32> to vector<32x16xf32>
    %cst_134 = arith.constant dense<0.000000e+00> : vector<128x16xf32>
    %109 = tpu.matmul %106, %108, %cst_134 {dimension_numbers = #tpu.dot_dimension_numbers<[1], [0], [0], [1], [0, 0, 1, 1], [], []>} : vector<128x32xf32>, vector<32x16xf32>, vector<128x16xf32> -> vector<128x16xf32>
    %c0_135 = arith.constant 0 : index
    %c0_136 = arith.constant 0 : index
    %110 = vector.load %arg9[%c0_135, %c0_136] : memref<128x16xf32, #tpu.memory_space<vmem>>, vector<128x16xf32>
    %111 = arith.addf %110, %109 : vector<128x16xf32>
    %c0_137 = arith.constant 0 : index
    %c0_138 = arith.constant 0 : index
    %112 = vector.load %arg9[%c0_137, %c0_138] : memref<128x16xf32, #tpu.memory_space<vmem>>, vector<128x16xf32>
    tpu.vector_store %arg9[%c0_137, %c0_138], %111 {strides = array<i32>} : memref<128x16xf32, #tpu.memory_space<vmem>>, vector<128x16xf32>,
    %c0_139 = arith.constant 0 : index
    %c2_140 = arith.constant 2 : index
    %c1_141 = arith.constant 1 : index
    %c0_142 = arith.constant 0 : index
    %113 = vector.load %arg8[%c0_139, %c2_140, %c1_141, %c0_142] : memref<2x10x18x32xf32, #tpu.memory_space<vmem>>, vector<1x8x16x32xf32>
    %114 = vector.shape_cast %113 : vector<1x8x16x32xf32> to vector<8x16x32xf32>
    %115 = vector.shape_cast %114 : vector<8x16x32xf32> to vector<128x32xf32>
    %c10 = arith.constant 10 : index
    %c0_143 = arith.constant 0 : index
    %c0_144 = arith.constant 0 : index
    %116 = vector.load %arg5[%c10, %c0_143, %c0_144] : memref<12x32x16xf32, #tpu.memory_space<vmem>>, vector<1x32x16xf32>
    %117 = vector.shape_cast %116 : vector<1x32x16xf32> to vector<32x16xf32>
    %cst_145 = arith.constant dense<0.000000e+00> : vector<128x16xf32>
    %118 = tpu.matmul %115, %117, %cst_145 {dimension_numbers = #tpu.dot_dimension_numbers<[1], [0], [0], [1], [0, 0, 1, 1], [], []>} : vector<128x32xf32>, vector<32x16xf32>, vector<128x16xf32> -> vector<128x16xf32>
    %c0_146 = arith.constant 0 : index
    %c0_147 = arith.constant 0 : index
    %119 = vector.load %arg9[%c0_146, %c0_147] : memref<128x16xf32, #tpu.memory_space<vmem>>, vector<128x16xf32>
    %120 = arith.addf %119, %118 : vector<128x16xf32>
    %c0_148 = arith.constant 0 : index
    %c0_149 = arith.constant 0 : index
    %121 = vector.load %arg9[%c0_148, %c0_149] : memref<128x16xf32, #tpu.memory_space<vmem>>, vector<128x16xf32>
    tpu.vector_store %arg9[%c0_148, %c0_149], %120 {strides = array<i32>} : memref<128x16xf32, #tpu.memory_space<vmem>>, vector<128x16xf32>,
    %c0_150 = arith.constant 0 : index
    %c2_151 = arith.constant 2 : index
    %c2_152 = arith.constant 2 : index
    %c0_153 = arith.constant 0 : index
    %122 = vector.load %arg8[%c0_150, %c2_151, %c2_152, %c0_153] : memref<2x10x18x32xf32, #tpu.memory_space<vmem>>, vector<1x8x16x32xf32>
    %123 = vector.shape_cast %122 : vector<1x8x16x32xf32> to vector<8x16x32xf32>
    %124 = vector.shape_cast %123 : vector<8x16x32xf32> to vector<128x32xf32>
    %c11 = arith.constant 11 : index
    %c0_154 = arith.constant 0 : index
    %c0_155 = arith.constant 0 : index
    %125 = vector.load %arg5[%c11, %c0_154, %c0_155] : memref<12x32x16xf32, #tpu.memory_space<vmem>>, vector<1x32x16xf32>
    %126 = vector.shape_cast %125 : vector<1x32x16xf32> to vector<32x16xf32>
    %cst_156 = arith.constant dense<0.000000e+00> : vector<128x16xf32>
    %127 = tpu.matmul %124, %126, %cst_156 {dimension_numbers = #tpu.dot_dimension_numbers<[1], [0], [0], [1], [0, 0, 1, 1], [], []>} : vector<128x32xf32>, vector<32x16xf32>, vector<128x16xf32> -> vector<128x16xf32>
    %c0_157 = arith.constant 0 : index
    %c0_158 = arith.constant 0 : index
    %128 = vector.load %arg9[%c0_157, %c0_158] : memref<128x16xf32, #tpu.memory_space<vmem>>, vector<128x16xf32>
    %129 = arith.addf %128, %127 : vector<128x16xf32>
    %c0_159 = arith.constant 0 : index
    %c0_160 = arith.constant 0 : index
    %130 = vector.load %arg9[%c0_159, %c0_160] : memref<128x16xf32, #tpu.memory_space<vmem>>, vector<128x16xf32>
    tpu.vector_store %arg9[%c0_159, %c0_160], %129 {strides = array<i32>} : memref<128x16xf32, #tpu.memory_space<vmem>>, vector<128x16xf32>,
    %c0_161 = arith.constant 0 : index
    %c0_162 = arith.constant 0 : index
    %131 = vector.load %arg9[%c0_161, %c0_162] : memref<128x16xf32, #tpu.memory_space<vmem>>, vector<128x16xf32>
    %c0_163 = arith.constant 0 : index
    %c0_164 = arith.constant 0 : index
    %c0_165 = arith.constant 0 : index
    %132 = vector.load %arg7[%c0_163, %c0_164, %c0_165] : memref<1x128x32xf32, #tpu.memory_space<vmem>>, vector<1x128x16xf32>
    %133 = vector.shape_cast %132 : vector<1x128x16xf32> to vector<128x16xf32>
    %134 = vector.shape_cast %131 : vector<128x16xf32> to vector<1x128x16xf32>
    tpu.vector_store %arg7[%c0_163, %c0_164, %c0_165], %134 {strides = array<i32>} : memref<1x128x32xf32, #tpu.memory_space<vmem>>, vector<1x128x16xf32>,
    %c0_166 = arith.constant 0 : index
    %c0_167 = arith.constant 0 : index
    %c0_168 = arith.constant 0 : index
    %135 = vector.load %arg6[%c0_166, %c0_167, %c0_168] : memref<1x128x16xf32, #tpu.memory_space<vmem>>, vector<1x128x16xf32>
    %136 = vector.shape_cast %135 : vector<1x128x16xf32> to vector<128x16xf32>
    %c0_169 = arith.constant 0 : index
    %c0_170 = arith.constant 0 : index
    %c16 = arith.constant 16 : index
    %137 = vector.load %arg7[%c0_169, %c0_170, %c16] : memref<1x128x32xf32, #tpu.memory_space<vmem>>, vector<1x128x16xf32>
    %138 = vector.shape_cast %137 : vector<1x128x16xf32> to vector<128x16xf32>
    %139 = vector.shape_cast %136 : vector<128x16xf32> to vector<1x128x16xf32>
    tpu.vector_store %arg7[%c0_169, %c0_170, %c16], %139 {strides = array<i32>} : memref<1x128x32xf32, #tpu.memory_space<vmem>>, vector<1x128x16xf32>,
    return
  }
  func.func @transform_0(%arg0: i32, %arg1: i32) -> (i32, i32, i32, i32, i32) {
    %c0_i32 = arith.constant 0 : i32
    %c0_i32_0 = arith.constant 0 : i32
    %c0_i32_1 = arith.constant 0 : i32
    %c0_i32_2 = arith.constant 0 : i32
    return %arg0, %arg1, %c0_i32, %c0_i32_0, %c0_i32_1 : i32, i32, i32, i32, i32
  }
  func.func @transform_1(%arg0: i32, %arg1: i32) -> (i32, i32, i32, i32, i32) {
    %c8_i32 = arith.constant 8 : i32
    %0 = arith.muli %arg1, %c8_i32 : i32
    %c1_i32 = arith.constant 1 : i32
    %1 = arith.subi %0, %c1_i32 : i32
    %c0_i32 = arith.constant 0 : i32
    %2 = arith.maxsi %1, %c0_i32 : i32
    %c1_i32_0 = arith.constant 1 : i32
    %c0_i32_1 = arith.constant 0 : i32
    %c0_i32_2 = arith.constant 0 : i32
    %c0_i32_3 = arith.constant 0 : i32
    return %arg0, %2, %c1_i32_0, %c0_i32_1, %c0_i32_2 : i32, i32, i32, i32, i32
  }
  func.func @transform_2(%arg0: i32, %arg1: i32) -> (i32, i32, i32, i32, i32) {
    %c8_i32 = arith.constant 8 : i32
    %0 = arith.muli %arg1, %c8_i32 : i32
    %c8_i32_0 = arith.constant 8 : i32
    %1 = arith.addi %0, %c8_i32_0 : i32
    %c15_i32 = arith.constant 15 : i32
    %2 = arith.minsi %1, %c15_i32 : i32
    %c0_i32 = arith.constant 0 : i32
    %c0_i32_1 = arith.constant 0 : i32
    %c0_i32_2 = arith.constant 0 : i32
    %c0_i32_3 = arith.constant 0 : i32
    return %arg0, %2, %c0_i32, %c0_i32_1, %c0_i32_2 : i32, i32, i32, i32, i32
  }
  func.func @transform_3(%arg0: i32, %arg1: i32) -> (i32, i32, i32) {
    %c0_i32 = arith.constant 0 : i32
    %c0_i32_0 = arith.constant 0 : i32
    %c0_i32_1 = arith.constant 0 : i32
    %c0_i32_2 = arith.constant 0 : i32
    return %c0_i32, %c0_i32_0, %c0_i32_1 : i32, i32, i32
  }
  func.func @transform_4(%arg0: i32, %arg1: i32) -> (i32, i32, i32) {
    %c0_i32 = arith.constant 0 : i32
    %c0_i32_0 = arith.constant 0 : i32
    return %arg0, %arg1, %c0_i32 : i32, i32, i32
  }
  func.func @transform_5(%arg0: i32, %arg1: i32) -> (i32, i32, i32) {
    %c0_i32 = arith.constant 0 : i32
    %c0_i32_0 = arith.constant 0 : i32
    return %arg0, %arg1, %c0_i32 : i32, i32, i32
  }
}

</mosaic_0001>

<bundles_post_ra>
// kernel: tpu_custom_call.1
= control target key start
LH: loop header
LB: loop body
LE: loop exit
PB: predicated region body
PF: predicated region fallthrough
CT: control target
= control target key end

     0   :  { %s6534_s0 = inlined_call_operand.vmem [shape: f32[2,16,2,16,32], index: 0, kind: input, shape index: {}]   ;;  %s6535_s1 = inlined_call_operand.hbm [shape: f32[2,16,2,16,32], index: 1, kind: input, shape index: {}]   ;;  %s6536_s2 = inlined_call_operand.hbm [shape: f32[2,16,2,16,32], index: 2, kind: input, shape index: {}]   ;;  %s6537_s3 = inlined_call_operand.vmem [shape: f32[12,32,16], index: 3, kind: input, shape index: {}]   ;;  %s6538_s4 = inlined_call_operand.vmem [shape: f32[2,256,16], index: 4, kind: input, shape index: {}]   ;;  %s6539_s5 = inlined_call_operand.vmem [shape: f32[2,256,32], index: 5, kind: output, shape index: {}]  }
   0x1   :  { %6570 = sst [smem:[#allocation35_spill]] %s6534_s0 }
   0x2   :  { %6571 = sst [smem:[#allocation36_spill]] %s6537_s3 }
   0x3   :  { %6572 = sst [smem:[#allocation37_spill]] %s6538_s4 }
   0x4   :  { %6573 = sst [smem:[#allocation38_spill]] %s6539_s5 }
   0x5   :  { %10 = vsyncpa [#allocation5], 0 }
   0x6   :  { %12 = vsyncpa [#allocation5 + $0x1], 0 }
   0x7   :  { %13 = vsyncpa [#allocation7], 0 }
   0x8   :  { %15 = vsyncpa [#allocation7 + $0x1], 0  ;;  %s5185_s18 = smov 0   ;;  %s5187_s19 = smov 0  }
   0x9   :  { %s5189_s20 = smov 0   ;;  %s5191_s21 = smov 0  }
   0xa   :  { %s5193_s22 = smov 0   ;;  %s5195_s23 = smov 0  }
   0xb   :  { %s5197_s24 = smov 0   ;;  %s5199_s25 = smov 0  }
   0xc   :  { %s5201_s26 = smov 0   ;;  %s5203_s27 = smov 0  }
   0xd   :  { %s5205_s28 = smov 0  }
   0xe LB: > { %6574 = sst [smem:[#allocation10_spill]] %s5133_s25  ;;  %s3972_s29 = sadd.s32 4294967295, %s5145_s28   ;;  %s5145_s28 = sphi %s5205_s28, %s21_s28   ;;  %s5141_s27 = sphi %s5203_s27, %s6649_s27   ;;  %s5137_s26 = sphi %s5201_s26, %s6648_s26   ;;  %s5133_s25 = sphi %s5199_s25, %s6647_s25   ;;  %s5129_s24 = sphi %s5197_s24, %s6646_s24   ;;  %s5125_s23 = sphi %s5195_s23, %s6645_s23   ;;  %s5121_s22 = sphi %s5193_s22, %s6644_s22   ;;  %s5117_s21 = sphi %s5191_s21, %s6643_s21   ;;  %s5113_s20 = sphi %s5189_s20, %s6642_s20   ;;  %s5109_s19 = sphi %s5187_s19, %s6641_s19   ;;  %s5105_s18 = sphi %s5185_s18, %s6640_s18  }
   0xf   : > { %s30_s30 = sadd.s32 1, %s5137_s26  ;;  %s33_s6 = sadd.s32 1, %s5141_s27 }
  0x10   : > { %p31_p0 = scmp.ge.s32.totalorder %s30_s30, 2  ;;  %s6541_s7 = sshll.u32 %s5137_s26, 3 }
  0x11   : > { %s78_s8 = sadd.s32 1, %s5125_s23  ;;  %s3975_s9 = sadd.s32 4294967295, %s6541_s7 }
  0x12   : > { %s6651_s30 = smov (%p31_p0, %s30_s30), 0  ;;  %s6653_s6 = smov (!%p31_p0, %s33_s6), %s5141_s27 }
  0x13   : > { %s6540_s10 = sshll.u32 %s6651_s30, 3  ;;  %p35_p1 = scmp.ge.s32.totalorder %s6653_s6, 2 }
  0x14   : > { %p67_p2 = scmp.gt.s32.totalorder %s3975_s9, 0  ;;  %s3977_s11 = sadd.s32 4294967295, %s6540_s10 }
  0x15   : > { %p85_p3 = scmp.ne.s32.totalorder %s5125_s23, %s5121_s22  ;;  %s6655_s6 = smov (%p35_p1, %s6653_s6), 0 }
  0x16   : > { %6575 = sst [smem:[#allocation11_spill]] %s6655_s6  ;;  %s6657_s9 = smov (!%p67_p2, %s3975_s9), 0 }
  0x17   : > { %p71_p4 = scmp.gt.s32.totalorder %s3977_s11, 0  ;;  %s5259_s12 = ssub.s32 %s5141_s27, %s6655_s6 }
  0x18   : > { %p86_p5 = scmp.eq.s32.totalorder %s5145_s28, 0  ;;  %p91_p6 = scmp.ne.s32.totalorder %s5121_s22, %s5117_s21 }
  0x19   : > { %s6659_s11 = smov (!%p71_p4, %s3977_s11), 0  ;;  %p5270_p8 = scmp.eq.s32.totalorder %s3972_s29, 0 }
  0x1a   : > { %p5266_p7 = por %p86_p5, %p85_p3  ;;  %s74_s15 = ssub.s32 %s6657_s9, %s6659_s11 }
  0x1b   : > { %s75_s16 = sor.u32 %s74_s15, %s5259_s12  ;;  %p5277_p9 = por %p5270_p8, %p91_p6 }
  0x1c   : > { %p76_p10 = scmp.eq.s32.totalorder %s75_s16, 0  ;;  %p4899_p11 = scmp.lt.s32.totalorder %s5145_s28, 4 }
  0x1d   : > { %s245_s21 = sand.u32 1, %s5125_s23   ;;  %s3985_s10 = sshll.u32 %s6657_s9, 2 }
  0x1e   : > { %s5284_s7 = scalar_select %p76_p10, %s5125_s23, %s78_s8  }
  0x1f   : > { %s3982_s29 = sshll.u32 %s245_s21, 4  ;;  %s3986_s6 = sshll.u32 %s5141_s27, 6 }
  0x20   : > { %s3854_s3 = sadd.s32 %s3986_s6, %s3985_s10  ;;  %s249_s5 = scalar_lea.vmem [#allocation4], %s3982_s29 }
  0x21   : > { %s263_s11 = sshll.u32 %s249_s5, 4  ;;  %s3987_s4 = sshll.u32 %s3854_s3, 7  ;;  %s264_s11 = int_to_ptr.vmem [resolvable:$true] %s263_s11 }
  0x22   : > { %s3856_s25 = scalar_lea.hbm %s6535_s1, %s3987_s4  ;;  %p5296_p12 = pnand %p4899_p11, %p5266_p7 }
  0x23   : > { %s3857_s8 = scalar_lea.hbm %s3856_s25, 256  ;;  %s246_s9 = scalar_lea.sflag [#allocation5], %s245_s21 }
  0x24   : > { %p4996_p13 = pneg %p5296_p12  ;;  %s5007_s10 = scalar_lea.vmem %s264_s11, 256 }
  0x25   : > { %p5008_p0 = scmp.ne.s32.totalorder %s264_s11, %s5007_s10  ;;  %s5147_s3 = smov [#allocation4]  }
  0x26   : > { %s5012_s5 = sshll.u32 %s5147_s3, 4  ;;  %s5013_s5 = int_to_ptr.vmem [resolvable:$false] %s5012_s5 }
  0x27   : > { %p5010_p1 = pnand %p5008_p0, %p4996_p13  ;;  %s5014_s0 = scalar_lea.vmem %s5013_s5, 512 }
  0x28   : > { %p5015_p3 = scmp.lt.s32.totalorder %s264_s11, %s5013_s5  ;;  %p5016_p4 = scmp.lt.s32.totalorder %s5014_s0, %s5007_s10 }
  0x29   : > { %p5011_p2 = pneg %p5010_p1 }
  0x2a   : > { %p5017_p6 = por %p5016_p4, %p5015_p3 }
  0x2c   : > { %p5018_p7 = pnand %p5017_p6, %p5011_p2 }
  0x2e   : > { %5021 = shalt.err (!%p5018_p7)
}
  0x2f   : > { %s6545_s4 = smov 128   ;;  %s6546_s25 = smov 8  }
  0x30   : > { %4895 = dma.hbm_to_vmem [thread:$0]  (!%p5296_p12), %s3857_s8, 256, %s264_s11, %s246_s9, %s6545_s4, %s6545_s4, %s6546_s25  }
  0x31   : > { %p3993_p10 = scmp.ge.s32.totalorder %s5145_s28, 1  ;;  %p311_p13 = scmp.lt.s32.totalorder %s5145_s28, 5 }
  0x32   : > { %s6581_s21 = sshll.u32 %s5137_s26, 3  ;;  %s6582_s15 = sshll.u32 %s6651_s30, 3 }
  0x33   : > { %p5309_p0 = pnand %p3993_p10, %p311_p13  ;;  %s102_s29 = sadd.s32 8, %s6581_s21 }
  0x34   : > { %p103_p1 = scmp.lt.s32.totalorder %s102_s29, 15  ;;  %s106_s10 = sadd.s32 8, %s6582_s15 }
  0x35   : > { %p107_p2 = scmp.lt.s32.totalorder %s106_s10, 15  ;;  %s114_s16 = sadd.s32 1, %s5113_s20 }
  0x36   : > { %s6661_s29 = smov (!%p103_p1, %s102_s29), 15  ;;  %p121_p12 = scmp.ne.s32.totalorder %s5113_s20, %s5109_s19 }
  0x37   : > { %s6663_s10 = smov (!%p107_p2, %s106_s10), 15  ;;  %p127_p3 = scmp.ne.s32.totalorder %s5109_s19, %s5105_s18 }
  0x38   : > { %s110_s11 = ssub.s32 %s6661_s29, %s6663_s10  ;;  %s273_s8 = sand.u32 1, %s5113_s20  }
  0x39   : > { %s111_s9 = sor.u32 %s110_s11, %s5259_s12  ;;  %p123_p4 = por %p121_p12, %p86_p5 }
  0x3a   : > { %p112_p6 = scmp.eq.s32.totalorder %s111_s9, 0  ;;  %p5328_p7 = por %p127_p3, %p5270_p8 }
  0x3b   : > { %s3988_s5 = sshll.u32 %s273_s8, 4  ;;  %s3990_s21 = sshll.u32 %s6661_s29, 2 }
  0x3c   : > { %s5333_s0 = scalar_select %p112_p6, %s5113_s20, %s114_s16  }
  0x3d   : > { %s287_s15 = sadd.s32 %s3990_s21, %s3986_s6  ;;  %s277_s4 = scalar_lea.vmem [#allocation6], %s3988_s5 }
  0x3e   : > { %s290_s18 = sshll.u32 %s277_s4, 4  ;;  %s3992_s25 = sshll.u32 %s287_s15, 7  ;;  %s291_s18 = int_to_ptr.vmem [resolvable:$true] %s290_s18 }
  0x3f   : > { %s289_s11 = scalar_lea.hbm %s6536_s2, %s3992_s25  ;;  %p5342_p5 = pnand %p4899_p11, %p123_p4 }
  0x40   : > { %s274_s9 = scalar_lea.sflag [#allocation7], %s273_s8  ;;  %s5036_s29 = scalar_lea.vmem %s291_s18, 256 }
  0x41   : > { %p5025_p8 = pneg %p5342_p5  ;;  %p5037_p10 = scmp.ne.s32.totalorder %s291_s18, %s5036_s29 }
  0x42   : > { %s5150_s6 = smov [#allocation6]  }
  0x43   : > { %p5039_p13 = pnand %p5037_p10, %p5025_p8  ;;  %s5041_s4 = sshll.u32 %s5150_s6, 4  ;;  %s5042_s4 = int_to_ptr.vmem [resolvable:$false] %s5041_s4 }
  0x44   : > { %s5043_s16 = scalar_lea.vmem %s5042_s4, 512  ;;  %p5044_p2 = scmp.lt.s32.totalorder %s291_s18, %s5042_s4 }
  0x45   : > { %p5040_p1 = pneg %p5039_p13  ;;  %p5045_p12 = scmp.lt.s32.totalorder %s5043_s16, %s5036_s29 }
  0x47   : > { %p5046_p3 = por %p5045_p12, %p5044_p2 }
  0x49   : > { %p5047_p6 = pnand %p5046_p3, %p5040_p1 }
  0x4b   : > { %5050 = shalt.err (!%p5047_p6)
}
  0x4c   : > { %s6585_s25 = smov 8   ;;  %s6586_s5 = smov 128  }
  0x4d   : > { %4898 = dma.hbm_to_vmem [thread:$0]  (!%p5342_p5), %s289_s11, 256, %s291_s18, %s274_s9, %s6586_s5, %s6586_s5, %s6585_s25  }
  0x4e   : > { %315 = sbr.rel (%p5309_p0) target bundleno = 579 (0x243), region = 40 }
  0x53   : > { %s317_s8 = sand.u32 1, %s5121_s22  }
  0x54   : > { %s5356_s21 = sshll.u32 %s317_s8, 4  ;;  %s318_s15 = scalar_lea.sflag [#allocation5], %s317_s8 }
  0x55   : > { %s321_s10 = scalar_lea.vmem [#allocation4], %s5356_s21 }
  0x56   : > { %5096 = dma.done.wait (%p5277_p9), %s318_s15, 256  }
  0x57   : > { %5098 = vsyncadd (%p5277_p9), %s318_s15, 4294967040  ;;  %s326_s12 = sand.u32 1, %s5109_s19  }
  0x58   : > { %s5364_s18 = sshll.u32 %s326_s12, 4  ;;  %s327_s13 = scalar_lea.sflag [#allocation7], %s326_s12 }
  0x59   : > { %s330_s11 = scalar_lea.vmem [#allocation6], %s5364_s18 }
  0x5a   : > { %5100 = dma.done.wait (%p5328_p7), %s327_s13, 256  }
  0x5b   : > { %5102 = vsyncadd (%p5328_p7), %s327_s13, 4294967040  ;;  %s6587_s14 = sld [smem:[#allocation10_spill]]  ;;  %s3996_s9 = sshll.u32 %s5129_s24, 3  ;;  %vm492_vm0 = vcmask 253952   ;;  %v5151_v0 = vmov 0.0   ;;  %vm441_vm1 = vcmask 261120  }
  0x5c   : > { %p5375_p9 = scmp.lt.s32.totalorder %s3996_s9, 15  ;;  %s4000_s29 = sshll.u32 %s5129_s24, 4  ;;  %494 = vst.msk [vmem:[#allocation2 + $0x18] sm:$0x1] %vm492_vm0, %v5151_v0  ;;  %495 = vst.msk [vmem:[#allocation2 + $0x30] sm:$0x1] %vm492_vm0, %v5151_v0 }
  0x5d   : > { %496 = vst.msk [vmem:[#allocation2 + $0x48] sm:$0x1] %vm492_vm0, %v5151_v0  ;;  %497 = vst.msk [vmem:[#allocation2 + $0x60] sm:$0x1] %vm492_vm0, %v5151_v0  ;;  %p407_p0 = scmp.lt.s32.totalorder %s4000_s29, 31  ;;  %s6589_s8 = sld [smem:[#allocation35_spill]] }
  0x5e   : > { %498 = vst.msk [vmem:[#allocation2 + $0x78] sm:$0x1] %vm492_vm0, %v5151_v0  ;;  %499 = vst.msk [vmem:[#allocation2 + $0x90] sm:$0x1] %vm492_vm0, %v5151_v0  ;;  %s6667_s9 = smov (!%p5375_p9, %s3996_s9), 15  ;;  %p4022_p4 = scmp.le.s32.totalorder %s5129_s24, 0 }
  0x5f   : > { %500 = vst.msk [vmem:[#allocation2 + $0xa8] sm:$0x1] %vm492_vm0, %v5151_v0  ;;  %501 = vst.msk [vmem:[#allocation2 + $0xc0] sm:$0x1] %vm492_vm0, %v5151_v0  ;;  %s3997_s6 = sshll.u32 %s6667_s9, 2  ;;  %s6669_s29 = smov (!%p407_p0, %s4000_s29), 31 }
  0x60   : > { %502 = vst.msk [vmem:[#allocation2 + $0xd8] sm:$0x1] %vm492_vm0, %v5151_v0  ;;  %503 = vst.msk [vmem:[#allocation2 + $0xf0] sm:$0x1] %vm492_vm0, %v5151_v0 }
  0x61   : > { %p386_p11 = scmp.lt.s32.totalorder %s6587_s14, 1  ;;  %504 = vst.msk [vmem:[#allocation2 + $0x108] sm:$0x1] %vm492_vm0, %v5151_v0  ;;  %505 = vst.msk [vmem:[#allocation2 + $0x120] sm:$0x1] %vm492_vm0, %v5151_v0 }
  0x62   : > { %506 = vst.msk [vmem:[#allocation2 + $0x138] sm:$0x1] %vm492_vm0, %v5151_v0  ;;  %507 = vst.msk [vmem:[#allocation2 + $0x150] sm:$0x1] %vm492_vm0, %v5151_v0 }
  0x63   : > { %508 = vst.msk [vmem:[#allocation2 + $0x168] sm:$0x1] %vm492_vm0, %v5151_v0  ;;  %509 = vst.msk [vmem:[#allocation2 + $0x180] sm:$0x1] %vm492_vm0, %v5151_v0  ;;  %s6665_s14 = smov (!%p386_p11, %s6587_s14), 1 }
  0x64   : > { %510 = vst.msk [vmem:[#allocation2 + $0x198] sm:$0x1] %vm492_vm0, %v5151_v0  ;;  %511 = vst.msk [vmem:[#allocation2 + $0x1b0] sm:$0x1] %vm492_vm0, %v5151_v0  ;;  %s3998_s3 = sshll.u32 %s6665_s14, 6  ;;  %s4001_s12 = sshll.u32 %s6665_s14, 5 }
  0x65   : > { %514 = vst.msk [vmem:[#allocation2 + $0x29] sm:$0x1] %vm492_vm0, %v5151_v0  ;;  %515 = vst.msk [vmem:[#allocation2 + $0x41] sm:$0x1] %vm492_vm0, %v5151_v0  ;;  %s392_s4 = sadd.s32 %s3998_s3, %s3997_s6  ;;  %s410_s13 = sadd.s32 %s4001_s12, %s6669_s29 }
  0x66   : > { %516 = vst.msk [vmem:[#allocation2 + $0x59] sm:$0x1] %vm492_vm0, %v5151_v0  ;;  %517 = vst.msk [vmem:[#allocation2 + $0x71] sm:$0x1] %vm492_vm0, %v5151_v0  ;;  %s3999_s16 = sshll.u32 %s392_s4, 3  ;;  %s4002_s14 = sshll.u32 %s410_s13, 3 }
  0x67   : > { %518 = vst.msk [vmem:[#allocation2 + $0x89] sm:$0x1] %vm492_vm0, %v5151_v0  ;;  %519 = vst.msk [vmem:[#allocation2 + $0xa1] sm:$0x1] %vm492_vm0, %v5151_v0  ;;  %s5428_s15 = scalar_lea.vmem %s6589_s8, %s3999_s16  ;;  %s6590_s29 = sld [smem:[#allocation37_spill]] }
  0x68   : > { %520 = vst.msk [vmem:[#allocation2 + $0xb9] sm:$0x1] %vm492_vm0, %v5151_v0  ;;  %521 = vst.msk [vmem:[#allocation2 + $0xd1] sm:$0x1] %vm492_vm0, %v5151_v0  ;;  %v424_v1 = vld [vmem:[%s5428_s15] sm:$0xff]  ;;  %v425_v2 = vld [vmem:[%s5428_s15 + $0x8] sm:$0xff] }
  0x69   : > { %522 = vst.msk [vmem:[#allocation2 + $0xe9] sm:$0x1] %vm492_vm0, %v5151_v0  ;;  %523 = vst.msk [vmem:[#allocation2 + $0x101] sm:$0x1] %vm492_vm0, %v5151_v0  ;;  %v426_v3 = vld [vmem:[%s5428_s15 + $0x20] sm:$0xff]  ;;  %v427_v4 = vld [vmem:[%s5428_s15 + $0x28] sm:$0xff] }
  0x6a   : > { %524 = vst.msk [vmem:[#allocation2 + $0x119] sm:$0x1] %vm492_vm0, %v5151_v0  ;;  %525 = vst.msk [vmem:[#allocation2 + $0x131] sm:$0x1] %vm492_vm0, %v5151_v0  ;;  %v428_v5 = vld [vmem:[%s5428_s15 + $0x40] sm:$0xff]  ;;  %v429_v6 = vld [vmem:[%s5428_s15 + $0x48] sm:$0xff] }
  0x6b   : > { %526 = vst.msk [vmem:[#allocation2 + $0x149] sm:$0x1] %vm492_vm0, %v5151_v0  ;;  %527 = vst.msk [vmem:[#allocation2 + $0x161] sm:$0x1] %vm492_vm0, %v5151_v0  ;;  %v430_v7 = vld [vmem:[%s5428_s15 + $0x60] sm:$0xff]  ;;  %v431_v8 = vld [vmem:[%s5428_s15 + $0x68] sm:$0xff] }
  0x6c   : > { %528 = vst.msk [vmem:[#allocation2 + $0x179] sm:$0x1] %vm492_vm0, %v5151_v0  ;;  %529 = vst.msk [vmem:[#allocation2 + $0x191] sm:$0x1] %vm492_vm0, %v5151_v0  ;;  %v432_v9 = vld [vmem:[%s5428_s15 + $0x80] sm:$0xff]  ;;  %v433_v10 = vld [vmem:[%s5428_s15 + $0x88] sm:$0xff] }
  0x6d   : > { %530 = vst.msk [vmem:[#allocation2 + $0x1a9] sm:$0x1] %vm492_vm0, %v5151_v0  ;;  %531 = vst.msk [vmem:[#allocation2 + $0x1c1] sm:$0x1] %vm492_vm0, %v5151_v0  ;;  %v434_v11 = vld [vmem:[%s5428_s15 + $0xa0] sm:$0xff]  ;;  %v435_v12 = vld [vmem:[%s5428_s15 + $0xa8] sm:$0xff]  ;;  %s5456_s3 = scalar_lea.vmem %s6590_s29, %s4002_s14 }
  0x6e   : > { %442 = vst.msk [vmem:[#allocation2 + $0x19] sm:$0xff] %vm441_vm1, %v424_v1  ;;  %443 = vst.msk [vmem:[#allocation2 + $0x21] sm:$0xff] %vm441_vm1, %v425_v2  ;;  %s6591_s16 = sld [smem:[#allocation38_spill]]  ;;  %v436_v13 = vld [vmem:[%s5428_s15 + $0xc0] sm:$0xff]  ;;  %v437_v14 = vld [vmem:[%s5428_s15 + $0xc8] sm:$0xff] }
  0x6f   : > { %444 = vst.msk [vmem:[#allocation2 + $0x31] sm:$0xff] %vm441_vm1, %v426_v3  ;;  %445 = vst.msk [vmem:[#allocation2 + $0x39] sm:$0xff] %vm441_vm1, %v427_v4  ;;  %v438_v15 = vld [vmem:[%s5428_s15 + $0xe0] sm:$0xff]  ;;  %v439_v16 = vld [vmem:[%s5428_s15 + $0xe8] sm:$0xff] }
  0x70   : > { %446 = vst.msk [vmem:[#allocation2 + $0x49] sm:$0xff] %vm441_vm1, %v428_v5  ;;  %447 = vst.msk [vmem:[#allocation2 + $0x51] sm:$0xff] %vm441_vm1, %v429_v6  ;;  %v4006_v17 = vld [vmem:[%s5428_s15 + $0x10] sm:$0xff]  ;;  %v4007_v18 = vld [vmem:[%s5428_s15 + $0x18] sm:$0xff] }
  0x71   : > { %448 = vst.msk [vmem:[#allocation2 + $0x61] sm:$0xff] %vm441_vm1, %v430_v7  ;;  %449 = vst.msk [vmem:[#allocation2 + $0x69] sm:$0xff] %vm441_vm1, %v431_v8  ;;  %v4008_v19 = vld [vmem:[%s5428_s15 + $0x30] sm:$0xff]  ;;  %v4009_v20 = vld [vmem:[%s5428_s15 + $0x38] sm:$0xff] }
  0x72   : > { %450 = vst.msk [vmem:[#allocation2 + $0x79] sm:$0xff] %vm441_vm1, %v432_v9  ;;  %451 = vst.msk [vmem:[#allocation2 + $0x81] sm:$0xff] %vm441_vm1, %v433_v10  ;;  %v4010_v21 = vld [vmem:[%s5428_s15 + $0x50] sm:$0xff]  ;;  %v4011_v22 = vld [vmem:[%s5428_s15 + $0x58] sm:$0xff] }
  0x73   : > { %452 = vst.msk [vmem:[#allocation2 + $0x91] sm:$0xff] %vm441_vm1, %v434_v11  ;;  %453 = vst.msk [vmem:[#allocation2 + $0x99] sm:$0xff] %vm441_vm1, %v435_v12  ;;  %v4012_v23 = vld [vmem:[%s5428_s15 + $0x70] sm:$0xff]  ;;  %v4013_v24 = vld [vmem:[%s5428_s15 + $0x78] sm:$0xff] }
  0x74   : > { %s5461_s25 = scalar_lea.vmem %s6591_s16, %s4002_s14  ;;  %454 = vst.msk [vmem:[#allocation2 + $0xa9] sm:$0xff] %vm441_vm1, %v436_v13  ;;  %455 = vst.msk [vmem:[#allocation2 + $0xb1] sm:$0xff] %vm441_vm1, %v437_v14  ;;  %v4014_v25 = vld [vmem:[%s5428_s15 + $0x90] sm:$0xff]  ;;  %v4015_v26 = vld [vmem:[%s5428_s15 + $0x98] sm:$0xff] }
  0x75   : > { %456 = vst.msk [vmem:[#allocation2 + $0xc1] sm:$0xff] %vm441_vm1, %v438_v15  ;;  %457 = vst.msk [vmem:[#allocation2 + $0xc9] sm:$0xff] %vm441_vm1, %v439_v16  ;;  %v4016_v27 = vld [vmem:[%s5428_s15 + $0xb0] sm:$0xff]  ;;  %v4017_v28 = vld [vmem:[%s5428_s15 + $0xb8] sm:$0xff] }
  0x76   : > { %476 = vst.msk [vmem:[#allocation2 + $0x109] sm:$0xff] %vm441_vm1, %v4006_v17  ;;  %477 = vst.msk [vmem:[#allocation2 + $0x111] sm:$0xff] %vm441_vm1, %v4007_v18  ;;  %v4018_v29 = vld [vmem:[%s5428_s15 + $0xd0] sm:$0xff]  ;;  %v4019_v30 = vld [vmem:[%s5428_s15 + $0xd8] sm:$0xff] }
  0x77   : > { %478 = vst.msk [vmem:[#allocation2 + $0x121] sm:$0xff] %vm441_vm1, %v4008_v19  ;;  %479 = vst.msk [vmem:[#allocation2 + $0x129] sm:$0xff] %vm441_vm1, %v4009_v20  ;;  %v4020_v31 = vld [vmem:[%s5428_s15 + $0xf0] sm:$0xff]  ;;  %v4021_v32 = vld [vmem:[%s5428_s15 + $0xf8] sm:$0xff] }
  0x78   : > { %480 = vst.msk [vmem:[#allocation2 + $0x139] sm:$0xff] %vm441_vm1, %v4010_v21  ;;  %481 = vst.msk [vmem:[#allocation2 + $0x141] sm:$0xff] %vm441_vm1, %v4011_v22 }
  0x79   : > { %482 = vst.msk [vmem:[#allocation2 + $0x151] sm:$0xff] %vm441_vm1, %v4012_v23  ;;  %483 = vst.msk [vmem:[#allocation2 + $0x159] sm:$0xff] %vm441_vm1, %v4013_v24  ;;  %536 = sbr.rel (%p4022_p4) target bundleno = 128 (0x80), region = 52 }
  0x7a   : > { %484 = vst.msk [vmem:[#allocation2 + $0x169] sm:$0xff] %vm441_vm1, %v4014_v25  ;;  %485 = vst.msk [vmem:[#allocation2 + $0x171] sm:$0xff] %vm441_vm1, %v4015_v26 }
  0x7b   : > { %486 = vst.msk [vmem:[#allocation2 + $0x181] sm:$0xff] %vm441_vm1, %v4016_v27  ;;  %487 = vst.msk [vmem:[#allocation2 + $0x189] sm:$0xff] %vm441_vm1, %v4017_v28 }
  0x7c   : > { %488 = vst.msk [vmem:[#allocation2 + $0x199] sm:$0xff] %vm441_vm1, %v4018_v29  ;;  %489 = vst.msk [vmem:[#allocation2 + $0x1a1] sm:$0xff] %vm441_vm1, %v4019_v30 }
  0x7d   : > { %490 = vst.msk [vmem:[#allocation2 + $0x1b1] sm:$0xff] %vm441_vm1, %v4020_v31  ;;  %491 = vst.msk [vmem:[#allocation2 + $0x1b9] sm:$0xff] %vm441_vm1, %v4021_v32 }
  0x7e   : > { %v537_v33 = vld [vmem:[%s321_s10] sm:$0xff]  ;;  %v538_v34 = vld [vmem:[%s321_s10 + $0x8] sm:$0xff] }
  0x7f   : > { %540 = vst.msk [vmem:[#allocation2 + $0xf1] sm:$0xff] %vm441_vm1, %v537_v33  ;;  %541 = vst.msk [vmem:[#allocation2 + $0xf9] sm:$0xff] %vm441_vm1, %v538_v34 }
  0x80 PF: > { %p4023_p7 = scmp.ne.s32.totalorder %s5129_s24, 0 }
  0x82   : > { %545 = sbr.rel (%p4023_p7) target bundleno = 137 (0x89), region = 56 }
  0x87   : > { %v5152_v35 = vmov 0.0  }
  0x88   : > { %547 = vst.msk [vmem:[#allocation2 + $0xf1] sm:$0xff] %vm441_vm1, %v5152_v35  ;;  %548 = vst.msk [vmem:[#allocation2 + $0xf9] sm:$0xff] %vm441_vm1, %v5152_v35 }
  0x89 PF: > { %p4024_p5 = scmp.ge.s32.totalorder %s5129_s24, 1 }
  0x8b   : > { %552 = sbr.rel (%p4024_p5) target bundleno = 146 (0x92), region = 60 }
  0x90   : > { %v553_v36 = vld [vmem:[%s330_s11] sm:$0xff]  ;;  %v554_v37 = vld [vmem:[%s330_s11 + $0x8] sm:$0xff] }
  0x91   : > { %556 = vst.msk [vmem:[#allocation2 + $0xd9] sm:$0xff] %vm441_vm1, %v553_v36  ;;  %557 = vst.msk [vmem:[#allocation2 + $0xe1] sm:$0xff] %vm441_vm1, %v554_v37 }
  0x92 PF: > { %p4025_p8 = scmp.ne.s32.totalorder %s5129_s24, 1 }
  0x94   : > { %561 = sbr.rel (%p4025_p8) target bundleno = 155 (0x9b), region = 64 }
  0x99   : > { %v5153_v38 = vmov 0.0  }
  0x9a   : > { %563 = vst.msk [vmem:[#allocation2 + $0xd9] sm:$0xff] %vm441_vm1, %v5153_v38  ;;  %564 = vst.msk [vmem:[#allocation2 + $0xe1] sm:$0xff] %vm441_vm1, %v5153_v38 }
  0x9b PF: > { %s6592_s5 = sld [smem:[#allocation36_spill]]  ;;  %v566_v41 = vld [vmem:[#allocation2 + $0xf0] sm:$0xff]  ;;  %v567_v47 = vld [vmem:[#allocation2 + $0xf8] sm:$0xff]  ;;  %v5551_v49 = vld [vmem:[#allocation2 + $0x108] sm:$0xff]  ;;  %s5154_s21 = smov 16   ;;  %vm779_vm2 = vcmask 130048  }
  0x9c   : > { %4512 = vmatprep.mubr.msk.f32.mxu0 %vm441_vm1, %v566_v41  ;;  %v796_v51 = vld [vmem:[#allocation2 + $0xf1] sm:$0xff]  ;;  %v797_v54 = vld [vmem:[#allocation2 + $0xf9] sm:$0xff]  ;;  %v5570_v57 = vld [vmem:[#allocation2 + $0x109] sm:$0xff]  ;;  %vm3791_vm3 = vcmask 261248  }
  0x9d   : > { %v5562_v53 = vld [vmem:[#allocation2 + $0x110] sm:$0xff]  ;;  %v5564_v55 = vld [vmem:[#allocation2 + $0x120] sm:$0xff]  ;;  %4544 = vmatprep.mubr.msk.f32.mxu1 %vm441_vm1, %v796_v51  ;;  %v5580_v59 = vld [vmem:[#allocation2 + $0x128] sm:$0xff] }
  0x9e   : > { %v5582_v60 = vld [vmem:[#allocation2 + $0x111] sm:$0xff]  ;;  %v5588_v62 = vld [vmem:[#allocation2 + $0x121] sm:$0xff]  ;;  %v5606_v2 = vld [vmem:[#allocation2 + $0x129] sm:$0xff] }
  0x9f   : > { %v5584_v61 = vld [vmem:[#allocation2 + $0x138] sm:$0xff]  ;;  %v5602_v1 = vld [vmem:[#allocation2 + $0x140] sm:$0xff]  ;;  %v5608_v3 = vld [vmem:[#allocation2 + $0x150] sm:$0xff] }
  0xa0   : > { %v5610_v4 = vld [vmem:[#allocation2 + $0x139] sm:$0xff]  ;;  %v5628_v8 = vld [vmem:[#allocation2 + $0x141] sm:$0xff]  ;;  %v5632_v10 = vld [vmem:[#allocation2 + $0x151] sm:$0xff] }
  0xa1   : > { %v585_v39 = vld [vmem:[%s6592_s5 + $0x18] sm:$0xff]  ;;  %v584_v40 = vld [vmem:[%s6592_s5 + $0x10] sm:$0xff]  ;;  %v583_v42 = vld [vmem:[%s6592_s5 + $0x8] sm:$0xff] }
  0xa2   : > { %4504 = vmatprep.subr.mxu0 %v585_v39  ;;  %v4045_v43 = vld [vmem:[%s6592_s5 + $0x38] sm:$0xff]  ;;  %v4044_v44 = vld [vmem:[%s6592_s5 + $0x30] sm:$0xff]  ;;  %v582_v45 = vld [vmem:[%s6592_s5] sm:$0xff] }
  0xa3   : > { %4505 = vmatpush3.msra.mxu0 %v585_v39  ;;  %4536 = vmatprep.subr.mxu1 %v4045_v43  ;;  %v4043_v46 = vld [vmem:[%s6592_s5 + $0x28] sm:$0xff]  ;;  %v4065_v48 = vld [vmem:[%s6592_s5 + $0x58] sm:$0xff]  ;;  %v4042_v50 = vld [vmem:[%s6592_s5 + $0x20] sm:$0xff] }
  0xa4   : > { %4506 = vmatprep.subr.mxu0 %v584_v40  ;;  %4537 = vmatpush3.msra.mxu1 %v4045_v43  ;;  %v4064_v52 = vld [vmem:[%s6592_s5 + $0x50] sm:$0xff]  ;;  %v4085_v56 = vld [vmem:[%s6592_s5 + $0x78] sm:$0xff]  ;;  %v4063_v58 = vld [vmem:[%s6592_s5 + $0x48] sm:$0xff] }
  0xa5   : > { %4507 = vmatpush3.msra.mxu0 %v584_v40  ;;  %4538 = vmatprep.subr.mxu1 %v4044_v44  ;;  %v4084_v63 = vld [vmem:[%s6592_s5 + $0x70] sm:$0xff]  ;;  %v4062_v0 = vld [vmem:[%s6592_s5 + $0x40] sm:$0xff]  ;;  %v4083_v5 = vld [vmem:[%s6592_s5 + $0x68] sm:$0xff] }
  0xa6   : > { %4508 = vmatprep.subr.mxu0 %v583_v42  ;;  %4539 = vmatpush3.msra.mxu1 %v4044_v44  ;;  %v4105_v6 = vld [vmem:[%s6592_s5 + $0x98] sm:$0xff]  ;;  %v5630_v9 = vld [vmem:[#allocation2 + $0x168] sm:$0xff]  ;;  %v4082_v11 = vld [vmem:[%s6592_s5 + $0x60] sm:$0xff] }
  0xa7   : > { %4509 = vmatpush3.msra.mxu0 %v583_v42  ;;  %4540 = vmatprep.subr.mxu1 %v4043_v46  ;;  %v5624_v7 = vld [vmem:[#allocation2 + $0x158] sm:$0xff]  ;;  %v5643_v12 = vld [vmem:[#allocation2 + $0x170] sm:$0xff]  ;;  %v5649_v14 = vld [vmem:[#allocation2 + $0x180] sm:$0xff] }
  0xa8   : > { %4510 = vmatprep.subr.mxu0 %v582_v45  ;;  %4541 = vmatpush3.msra.mxu1 %v4043_v46  ;;  %v5647_v13 = vld [vmem:[#allocation2 + $0x159] sm:$0xff]  ;;  %v5651_v15 = vld [vmem:[#allocation2 + $0x169] sm:$0xff]  ;;  %v5666_v18 = vld [vmem:[#allocation2 + $0x171] sm:$0xff] }
  0xa9   : > { %4511 = vmatpush3.msra.mxu0 %v582_v45  ;;  %4542 = vmatprep.subr.mxu1 %v4042_v50  ;;  %v4125_v16 = vld [vmem:[%s6592_s5 + $0xb8] sm:$0xff]  ;;  %v5662_v17 = vld [vmem:[#allocation2 + $0x188] sm:$0xff]  ;;  %v5678_v21 = vld [vmem:[#allocation2 + $0x1a0] sm:$0xff] }
  0xaa   : > { %4513 = vmatmul.mubr.msk.f32.vlgmr.msra.gmra.mxu0 %vm441_vm1, %v567_v47  ;;  %4568 = vmatprep.subr.mxu0 %v4065_v48  ;;  %v5668_v19 = vld [vmem:[#allocation2 + $0x198] sm:$0xff]  ;;  %v5670_v20 = vld [vmem:[#allocation2 + $0x181] sm:$0xff]  ;;  %v5682_v22 = vld [vmem:[#allocation2 + $0x189] sm:$0xff] }
  0xab   : > { %4569 = vmatpush3.msra.mxu0 %v4065_v48  ;;  %4515 = vmatprep.mubr.msk.f32.mxu0 %vm441_vm1, %v5551_v49  ;;  %v1058_v23 = vld [vmem:[#allocation2 + $0xf2] sm:$0xff]  ;;  %v1059_v25 = vld [vmem:[#allocation2 + $0xfa] sm:$0xff]  ;;  %v5695_v27 = vld [vmem:[#allocation2 + $0x10a] sm:$0xff] }
  0xac   : > { %4543 = vmatpush3.msra.mxu1 %v4042_v50  ;;  %4570 = vmatprep.subr.mxu0 %v4064_v52  ;;  %v5684_v24 = vld [vmem:[#allocation2 + $0x199] sm:$0xff]  ;;  %v5693_v26 = vld [vmem:[#allocation2 + $0x1a1] sm:$0xff]  ;;  %v4104_v29 = vld [vmem:[%s6592_s5 + $0x90] sm:$0xff] }
  0xad   : > { %4545 = vmatmul.mubr.msk.f32.vlgmr.msra.gmra.mxu1 %vm441_vm1, %v797_v54  ;;  %4571 = vmatpush3.msra.mxu0 %v4064_v52  ;;  %v1320_v28 = vld [vmem:[#allocation2 + $0x18] sm:$0xff]  ;;  %v1321_v31 = vld [vmem:[#allocation2 + $0x20] sm:$0xff]  ;;  %v5710_v33 = vld [vmem:[#allocation2 + $0x30] sm:$0xff] }
  0xae   : > { %4516 = vmatmul.mubr.msk.f32.gmra.mxu0 %vm441_vm1, %v5562_v53  ;;  %4600 = vmatprep.subr.mxu1 %v4085_v56  ;;  %v5705_v30 = vld [vmem:[#allocation2 + $0x112] sm:$0xff]  ;;  %v5707_v32 = vld [vmem:[#allocation2 + $0x122] sm:$0xff]  ;;  %v5723_v36 = vld [vmem:[#allocation2 + $0x12a] sm:$0xff] }
  0xaf   : > { %4518 = vmatprep.mubr.msk.f32.mxu0 %vm441_vm1, %v5564_v55  ;;  %4547 = vmatprep.mubr.msk.f32.mxu1 %vm441_vm1, %v5570_v57  ;;  %v4103_v34 = vld [vmem:[%s6592_s5 + $0x88] sm:$0xff]  ;;  %v4124_v35 = vld [vmem:[%s6592_s5 + $0xb0] sm:$0xff]  ;;  %v5725_v37 = vld [vmem:[#allocation2 + $0x38] sm:$0xff] }
  0xb0   : > { %4601 = vmatpush3.msra.mxu1 %v4085_v56  ;;  %4572 = vmatprep.subr.mxu0 %v4063_v58  ;;  %v5727_v38 = vld [vmem:[#allocation2 + $0x13a] sm:$0xff]  ;;  %v5731_v39 = vld [vmem:[#allocation2 + $0x48] sm:$0xff]  ;;  %v5749_v43 = vld [vmem:[#allocation2 + $0x50] sm:$0xff] }
  0xb1   : > { %4548 = vmatmul.mubr.msk.f32.gmra.mxu1 %vm441_vm1, %v5582_v60  ;;  %4573 = vmatpush3.msra.mxu0 %v4063_v58  ;;  %v4102_v40 = vld [vmem:[%s6592_s5 + $0x80] sm:$0xff]  ;;  %v4123_v41 = vld [vmem:[%s6592_s5 + $0xa8] sm:$0xff]  ;;  %v5751_v44 = vld [vmem:[#allocation2 + $0x152] sm:$0xff] }
  0xb2   : > { %4519 = vmatmul.mubr.msk.f32.gmra.mxu0 %vm441_vm1, %v5580_v59  ;;  %4550 = vmatprep.mubr.msk.f32.mxu1 %vm441_vm1, %v5588_v62  ;;  %v5745_v42 = vld [vmem:[#allocation2 + $0x142] sm:$0xff]  ;;  %v4145_v46 = vld [vmem:[%s6592_s5 + $0xd8] sm:$0xff]  ;;  %v5773_v51 = vld [vmem:[#allocation2 + $0x16a] sm:$0xff] }
  0xb3   : > { %4521 = vmatprep.mubr.msk.f32.mxu0 %vm441_vm1, %v5584_v61  ;;  %4602 = vmatprep.subr.mxu1 %v4084_v63  ;;  %v5753_v45 = vld [vmem:[#allocation2 + $0x60] sm:$0xff]  ;;  %v5771_v50 = vld [vmem:[#allocation2 + $0x68] sm:$0xff]  ;;  %v5775_v52 = vld [vmem:[#allocation2 + $0x78] sm:$0xff] }
  0xb4   : > { %4603 = vmatpush3.msra.mxu1 %v4084_v63  ;;  %4574 = vmatprep.subr.mxu0 %v4062_v0  ;;  %v4122_v47 = vld [vmem:[%s6592_s5 + $0xa0] sm:$0xff]  ;;  %v4165_v54 = vld [vmem:[%s6592_s5 + $0xf8] sm:$0xff] }
  0xb5   : > { %4551 = vmatmul.mubr.msk.f32.gmra.mxu1 %vm441_vm1, %v5606_v2  ;;  %4575 = vmatpush3.msra.mxu0 %v4062_v0  ;;  %v5767_v48 = vld [vmem:[#allocation2 + $0x15a] sm:$0xff]  ;;  %v5786_v56 = vld [vmem:[#allocation2 + $0x172] sm:$0xff]  ;;  %v5792_v63 = vld [vmem:[#allocation2 + $0x182] sm:$0xff] }
  0xb6   : > { %4522 = vmatmul.mubr.msk.f32.gmra.mxu0 %vm441_vm1, %v5602_v1  ;;  %4553 = vmatprep.mubr.msk.f32.mxu1 %vm441_vm1, %v5610_v4  ;;  %v5790_v58 = vld [vmem:[#allocation2 + $0x80] sm:$0xff]  ;;  %v5794_v0 = vld [vmem:[#allocation2 + $0x90] sm:$0xff] }
  0xb7   : > { %4524 = vmatprep.mubr.msk.f32.mxu0 %vm441_vm1, %v5608_v3  ;;  %4604 = vmatprep.subr.mxu1 %v4083_v5 }
  0xb8   : > { %4605 = vmatpush3.msra.mxu1 %v4083_v5  ;;  %4632 = vmatprep.subr.mxu0 %v4105_v6  ;;  %v5802_v5 = vld [vmem:[#allocation2 + $0x18a] sm:$0xff] }
  0xb9   : > { %4554 = vmatmul.mubr.msk.f32.gmra.mxu1 %vm441_vm1, %v5628_v8  ;;  %4606 = vmatprep.subr.mxu1 %v4082_v11 }
  0xba   : > { %4525 = vmatmul.mubr.msk.f32.gmra.mxu0 %vm441_vm1, %v5624_v7  ;;  %4556 = vmatprep.mubr.msk.f32.mxu1 %vm441_vm1, %v5632_v10 }
  0xbb   : > { %4527 = vmatprep.mubr.msk.f32.mxu0 %vm441_vm1, %v5630_v9  ;;  %4607 = vmatpush3.msra.mxu1 %v4082_v11  ;;  %v5808_v11 = vld [vmem:[#allocation2 + $0x19a] sm:$0xff] }
  0xbc   : > { %4664 = vmatprep.subr.mxu1 %v4125_v16 }
  0xbd   : > { %4557 = vmatmul.mubr.msk.f32.gmra.mxu1 %vm441_vm1, %v5647_v13 }
  0xbe   : > { %4528 = vmatmul.mubr.msk.f32.gmra.mxu0 %vm441_vm1, %v5643_v12  ;;  %4559 = vmatprep.mubr.msk.f32.mxu1 %vm441_vm1, %v5651_v15 }
  0xbf   : > { %4530 = vmatprep.mubr.msk.f32.mxu0 %vm441_vm1, %v5649_v14 }
  0xc1   : > { %4560 = vmatmul.mubr.msk.f32.gmra.mxu1 %vm441_vm1, %v5666_v18 }
  0xc2   : > { %4531 = vmatmul.mubr.msk.f32.gmra.mxu0 %vm441_vm1, %v5662_v17  ;;  %4562 = vmatprep.mubr.msk.f32.mxu1 %vm441_vm1, %v5670_v20 }
  0xc3   : > { %4533 = vmatprep.mubr.msk.f32.mxu0 %vm441_vm1, %v5668_v19 }
  0xc5   : > { %4563 = vmatmul.mubr.msk.f32.gmra.mxu1 %vm441_vm1, %v5682_v22 }
  0xc6   : > { %4534 = vmatmul.mubr.msk.f32.gmra.mxu0 %vm441_vm1, %v5678_v21  ;;  %4565 = vmatprep.mubr.msk.f32.mxu1 %vm441_vm1, %v5684_v24 }
  0xc7   : > { %4576 = vmatprep.mubr.msk.f32.mxu0 %vm441_vm1, %v1058_v23  ;;  %v5818_v23 = vld [vmem:[#allocation2 + $0x1a2] sm:$0xff] }
  0xc9   : > { %4566 = vmatmul.mubr.msk.f32.gmra.mxu1 %vm441_vm1, %v5693_v26 }
  0xca   : > { %4577 = vmatmul.mubr.msk.f32.vlgmr.msra.gmra.mxu0 %vm441_vm1, %v1059_v25  ;;  %4608 = vmatprep.mubr.msk.f32.mxu1 %vm441_vm1, %v1320_v28  ;;  %v5822_v25 = vld [vmem:[#allocation2 + $0xb0] sm:$0xff]  ;;  %v1582_v28 = vld [vmem:[#allocation2 + $0x19] sm:$0xff] }
  0xcb   : > { %4633 = vmatpush3.msra.mxu0 %v4105_v6  ;;  %4579 = vmatprep.mubr.msk.f32.mxu0 %vm441_vm1, %v5695_v27  ;;  %v5806_v6 = vld [vmem:[#allocation2 + $0x98] sm:$0xff]  ;;  %6593 = vst [vmem:[#allocation12_spill] sm:$0xff] %v5822_v25 }
  0xcc   : > { %4634 = vmatprep.subr.mxu0 %v4104_v29 }
  0xcd   : > { %4635 = vmatpush3.msra.mxu0 %v4104_v29  ;;  %4609 = vmatmul.mubr.msk.f32.vlgmr.msra.gmra.mxu1 %vm441_vm1, %v1321_v31  ;;  %v5824_v29 = vld [vmem:[#allocation2 + $0xc0] sm:$0xff] }
  0xce   : > { %4580 = vmatmul.mubr.msk.f32.gmra.mxu0 %vm441_vm1, %v5705_v30  ;;  %4665 = vmatpush3.msra.mxu1 %v4125_v16  ;;  %v5810_v16 = vld [vmem:[#allocation2 + $0xa8] sm:$0xff]  ;;  %6594 = vst [vmem:[#allocation13_spill] sm:$0xff] %v5824_v29 }
  0xcf   : > { %4582 = vmatprep.mubr.msk.f32.mxu0 %vm441_vm1, %v5707_v32  ;;  %4611 = vmatprep.mubr.msk.f32.mxu1 %vm441_vm1, %v5710_v33  ;;  %v1583_v31 = vld [vmem:[#allocation2 + $0x21] sm:$0xff] }
  0xd0   : > { %4636 = vmatprep.subr.mxu0 %v4103_v34  ;;  %4666 = vmatprep.subr.mxu1 %v4124_v35 }
  0xd1   : > { %4637 = vmatpush3.msra.mxu0 %v4103_v34  ;;  %4612 = vmatmul.mubr.msk.f32.gmra.mxu1 %vm441_vm1, %v5725_v37  ;;  %v5833_v34 = vld [vmem:[#allocation2 + $0xc8] sm:$0xff] }
  0xd2   : > { %4583 = vmatmul.mubr.msk.f32.gmra.mxu0 %vm441_vm1, %v5723_v36  ;;  %4614 = vmatprep.mubr.msk.f32.mxu1 %vm441_vm1, %v5731_v39 }
  0xd3   : > { %4585 = vmatprep.mubr.msk.f32.mxu0 %vm441_vm1, %v5727_v38  ;;  %4667 = vmatpush3.msra.mxu1 %v4124_v35  ;;  %v5835_v35 = vld [vmem:[#allocation2 + $0x31] sm:$0xff] }
  0xd4   : > { %4638 = vmatprep.subr.mxu0 %v4102_v40  ;;  %4668 = vmatprep.subr.mxu1 %v4123_v41  ;;  %6595 = vst [vmem:[#allocation14_spill] sm:$0xff] %v5835_v35 }
  0xd5   : > { %4639 = vmatpush3.msra.mxu0 %v4102_v40  ;;  %4615 = vmatmul.mubr.msk.f32.gmra.mxu1 %vm441_vm1, %v5749_v43  ;;  %v1844_v40 = vld [vmem:[#allocation2 + $0x1a] sm:$0xff] }
  0xd6   : > { %4586 = vmatmul.mubr.msk.f32.gmra.mxu0 %vm441_vm1, %v5745_v42  ;;  %4617 = vmatprep.mubr.msk.f32.mxu1 %vm441_vm1, %v5753_v45 }
  0xd7   : > { %4588 = vmatprep.mubr.msk.f32.mxu0 %vm441_vm1, %v5751_v44  ;;  %4669 = vmatpush3.msra.mxu1 %v4123_v41  ;;  %v4144_v41 = vld [vmem:[%s6592_s5 + $0xd0] sm:$0xff] }
  0xd8   : > { %4696 = vmatprep.subr.mxu0 %v4145_v46  ;;  %4670 = vmatprep.subr.mxu1 %v4122_v47 }
  0xd9   : > { %4618 = vmatmul.mubr.msk.f32.gmra.mxu1 %vm441_vm1, %v5771_v50 }
  0xda   : > { %4589 = vmatmul.mubr.msk.f32.gmra.mxu0 %vm441_vm1, %v5767_v48  ;;  %4620 = vmatprep.mubr.msk.f32.mxu1 %vm441_vm1, %v5775_v52 }
  0xdb   : > { %4591 = vmatprep.mubr.msk.f32.mxu0 %vm441_vm1, %v5773_v51  ;;  %4671 = vmatpush3.msra.mxu1 %v4122_v47  ;;  %v5845_v47 = vld [vmem:[#allocation2 + $0x39] sm:$0xff] }
  0xdc   : > { %4728 = vmatprep.subr.mxu1 %v4165_v54  ;;  %6596 = vst [vmem:[#allocation15_spill] sm:$0xff] %v5845_v47 }
  0xdd   : > { %4621 = vmatmul.mubr.msk.f32.gmra.mxu1 %vm441_vm1, %v5790_v58 }
  0xde   : > { %4592 = vmatmul.mubr.msk.f32.gmra.mxu0 %vm441_vm1, %v5786_v56  ;;  %4623 = vmatprep.mubr.msk.f32.mxu1 %vm441_vm1, %v5794_v0 }
  0xdf   : > { %4594 = vmatprep.mubr.msk.f32.mxu0 %vm441_vm1, %v5792_v63 }
  0xe1   : > { %4624 = vmatmul.mubr.msk.f32.gmra.mxu1 %vm441_vm1, %v5806_v6 }
  0xe2   : > { %4595 = vmatmul.mubr.msk.f32.gmra.mxu0 %vm441_vm1, %v5802_v5  ;;  %4626 = vmatprep.mubr.msk.f32.mxu1 %vm441_vm1, %v5810_v16 }
  0xe3   : > { %4597 = vmatprep.mubr.msk.f32.mxu0 %vm441_vm1, %v5808_v11 }
  0xe5   : > { %4627 = vmatmul.mubr.msk.f32.gmra.mxu1 %vm441_vm1, %v5822_v25  ;;  %v5850_v25 = vld [vmem:[#allocation2 + $0x32] sm:$0xff] }
  0xe6   : > { %4598 = vmatmul.mubr.msk.f32.gmra.mxu0 %vm441_vm1, %v5818_v23  ;;  %4629 = vmatprep.mubr.msk.f32.mxu1 %vm441_vm1, %v5824_v29  ;;  %v5847_v29 = vld [vmem:[#allocation2 + $0x49] sm:$0xff]  ;;  %6598 = vst [vmem:[#allocation17_spill] sm:$0xff] %v5850_v25 }
  0xe7   : > { %4640 = vmatprep.mubr.msk.f32.mxu0 %vm441_vm1, %v1582_v28  ;;  %v1845_v28 = vld [vmem:[#allocation2 + $0x22] sm:$0xff]  ;;  %6597 = vst [vmem:[#allocation16_spill] sm:$0xff] %v5847_v29 }
  0xe9   : > { %4630 = vmatmul.mubr.msk.f32.gmra.mxu1 %vm441_vm1, %v5833_v34 }
  0xea   : > { %4641 = vmatmul.mubr.msk.f32.vlgmr.msra.gmra.mxu0 %vm441_vm1, %v1583_v31  ;;  %4672 = vmatprep.mubr.msk.f32.mxu1 %vm441_vm1, %v1844_v40  ;;  %v4143_v31 = vld [vmem:[%s6592_s5 + $0xc8] sm:$0xff]  ;;  %v5863_v40 = vld [vmem:[#allocation2 + $0x51] sm:$0xff] }
  0xeb   : > { %4697 = vmatpush3.msra.mxu0 %v4145_v46  ;;  %4643 = vmatprep.mubr.msk.f32.mxu0 %vm441_vm1, %v5835_v35  ;;  %v4164_v46 = vld [vmem:[%s6592_s5 + $0xf0] sm:$0xff]  ;;  %6599 = vst [vmem:[#allocation18_spill] sm:$0xff] %v5863_v40  ;;  %v5867_v35 = vld [vmem:[#allocation2 + $0x61] sm:$0xff] }
  0xec   : > { %4698 = vmatprep.subr.mxu0 %v4144_v41  ;;  %6601 = vst [vmem:[#allocation20_spill] sm:$0xff] %v5867_v35 }
  0xed   : > { %4699 = vmatpush3.msra.mxu0 %v4144_v41  ;;  %4673 = vmatmul.mubr.msk.f32.vlgmr.msra.gmra.mxu1 %vm441_vm1, %v1845_v28  ;;  %v5865_v41 = vld [vmem:[#allocation2 + $0x3a] sm:$0xff] }
  0xee   : > { %4644 = vmatmul.mubr.msk.f32.gmra.mxu0 %vm441_vm1, %v5845_v47  ;;  %4729 = vmatpush3.msra.mxu1 %v4165_v54  ;;  %6600 = vst [vmem:[#allocation19_spill] sm:$0xff] %v5865_v41  ;;  %v5871_v47 = vld [vmem:[#allocation2 + $0x4a] sm:$0xff]  ;;  %v4142_v28 = vld [vmem:[%s6592_s5 + $0xc0] sm:$0xff] }
  0xef   : > { %4646 = vmatprep.mubr.msk.f32.mxu0 %vm441_vm1, %v5847_v29  ;;  %4675 = vmatprep.mubr.msk.f32.mxu1 %vm441_vm1, %v5850_v25  ;;  %6602 = vst [vmem:[#allocation21_spill] sm:$0xff] %v5871_v47  ;;  %v4163_v54 = vld [vmem:[%s6592_s5 + $0xe8] sm:$0xff]  ;;  %v5891_v29 = vld [vmem:[#allocation2 + $0x79] sm:$0xff] }
  0xf0   : > { %4700 = vmatprep.subr.mxu0 %v4143_v31  ;;  %4730 = vmatprep.subr.mxu1 %v4164_v46  ;;  %v5885_v25 = vld [vmem:[#allocation2 + $0x69] sm:$0xff]  ;;  %6605 = vst [vmem:[#allocation24_spill] sm:$0xff] %v5891_v29 }
  0xf1   : > { %4701 = vmatpush3.msra.mxu0 %v4143_v31  ;;  %4676 = vmatmul.mubr.msk.f32.gmra.mxu1 %vm441_vm1, %v5865_v41  ;;  %6603 = vst [vmem:[#allocation22_spill] sm:$0xff] %v5885_v25  ;;  %v5889_v31 = vld [vmem:[#allocation2 + $0x52] sm:$0xff] }
  0xf2   : > { %4647 = vmatmul.mubr.msk.f32.gmra.mxu0 %vm441_vm1, %v5863_v40  ;;  %4678 = vmatprep.mubr.msk.f32.mxu1 %vm441_vm1, %v5871_v47  ;;  %6604 = vst [vmem:[#allocation23_spill] sm:$0xff] %v5889_v31  ;;  %v5893_v40 = vld [vmem:[#allocation2 + $0x62] sm:$0xff]  ;;  %v4185_v41 = vld [vmem:[%s6592_s5 + $0x118] sm:$0xff] }
  0xf3   : > { %4649 = vmatprep.mubr.msk.f32.mxu0 %vm441_vm1, %v5867_v35  ;;  %4731 = vmatpush3.msra.mxu1 %v4164_v46  ;;  %6606 = vst [vmem:[#allocation25_spill] sm:$0xff] %v5893_v40  ;;  %v4162_v47 = vld [vmem:[%s6592_s5 + $0xe0] sm:$0xff]  ;;  %v5913_v35 = vld [vmem:[#allocation2 + $0x91] sm:$0xff] }
  0xf4   : > { %4702 = vmatprep.subr.mxu0 %v4142_v28  ;;  %4732 = vmatprep.subr.mxu1 %v4163_v54  ;;  %v5907_v46 = vld [vmem:[#allocation2 + $0x81] sm:$0xff]  ;;  %6609 = vst [vmem:[#allocation28_spill] sm:$0xff] %v5913_v35 }
  0xf5   : > { %4703 = vmatpush3.msra.mxu0 %v4142_v28  ;;  %4679 = vmatmul.mubr.msk.f32.gmra.mxu1 %vm441_vm1, %v5889_v31  ;;  %6607 = vst [vmem:[#allocation26_spill] sm:$0xff] %v5907_v46  ;;  %v5911_v28 = vld [vmem:[#allocation2 + $0x6a] sm:$0xff] }
  0xf6   : > { %4650 = vmatmul.mubr.msk.f32.gmra.mxu0 %vm441_vm1, %v5885_v25  ;;  %4681 = vmatprep.mubr.msk.f32.mxu1 %vm441_vm1, %v5893_v40  ;;  %6608 = vst [vmem:[#allocation27_spill] sm:$0xff] %v5911_v28  ;;  %v5915_v25 = vld [vmem:[#allocation2 + $0x7a] sm:$0xff]  ;;  %v5932_v31 = vld [vmem:[#allocation2 + $0xa9] sm:$0xff] }
  0xf7   : > { %4652 = vmatprep.mubr.msk.f32.mxu0 %vm441_vm1, %v5891_v29  ;;  %6610 = vst [vmem:[#allocation29_spill] sm:$0xff] %v5915_v25  ;;  %4733 = vmatpush3.msra.mxu1 %v4163_v54  ;;  %v4205_v29 = vld [vmem:[%s6592_s5 + $0x138] sm:$0xff]  ;;  %v5930_v54 = vld [vmem:[#allocation2 + $0x82] sm:$0xff]  ;;  %6612 = vst [vmem:[#allocation31_spill] sm:$0xff] %v5932_v31 }
  0xf8   : > { %4760 = vmatprep.subr.mxu0 %v4185_v41  ;;  %4734 = vmatprep.subr.mxu1 %v4162_v47  ;;  %v5926_v40 = vld [vmem:[#allocation2 + $0x99] sm:$0xff]  ;;  %6611 = vst [vmem:[#allocation30_spill] sm:$0xff] %v5930_v54 }
  0xf9   : > { %4682 = vmatmul.mubr.msk.f32.gmra.mxu1 %vm441_vm1, %v5911_v28  ;;  %v5948_v28 = vld [vmem:[#allocation2 + $0xc1] sm:$0xff] }
  0xfa   : > { %4653 = vmatmul.mubr.msk.f32.gmra.mxu0 %vm441_vm1, %v5907_v46  ;;  %4684 = vmatprep.mubr.msk.f32.mxu1 %vm441_vm1, %v5915_v25  ;;  %v5934_v46 = vld [vmem:[#allocation2 + $0x92] sm:$0xff]  ;;  %v5946_v25 = vld [vmem:[#allocation2 + $0x9a] sm:$0xff]  ;;  %6614 = vst [vmem:[#allocation33_spill] sm:$0xff] %v5948_v28 }
  0xfb   : > { %4655 = vmatprep.mubr.msk.f32.mxu0 %vm441_vm1, %v5913_v35  ;;  %6613 = vst [vmem:[#allocation32_spill] sm:$0xff] %v5934_v46  ;;  %4735 = vmatpush3.msra.mxu1 %v4162_v47  ;;  %v5942_v35 = vld [vmem:[#allocation2 + $0xb1] sm:$0xff] }
  0xfc   : > { %4792 = vmatprep.subr.mxu1 %v4205_v29  ;;  %v5950_v47 = vld [vmem:[#allocation2 + $0xaa] sm:$0xff] }
  0xfd   : > { %4685 = vmatmul.mubr.msk.f32.gmra.mxu1 %vm441_vm1, %v5930_v54  ;;  %6615 = vst [vmem:[#allocation34_spill] sm:$0xff] %v5950_v47  ;;  %v5964_v54 = vld [vmem:[#allocation2 + $0xc2] sm:$0xff] }
  0xfe   : > { %4656 = vmatmul.mubr.msk.f32.gmra.mxu0 %vm441_vm1, %v5926_v40  ;;  %4687 = vmatprep.mubr.msk.f32.mxu1 %vm441_vm1, %v5934_v46  ;;  %v5962_v46 = vld [vmem:[#allocation2 + $0xb2] sm:$0xff] }
  0xff   : > { %4658 = vmatprep.mubr.msk.f32.mxu0 %vm441_vm1, %v5932_v31  ;;  %v5958_v31 = vld [vmem:[#allocation2 + $0xc9] sm:$0xff] }
 0x101   : > { %4688 = vmatmul.mubr.msk.f32.gmra.mxu1 %vm441_vm1, %v5946_v25 }
 0x102   : > { %4659 = vmatmul.mubr.msk.f32.gmra.mxu0 %vm441_vm1, %v5942_v35  ;;  %4690 = vmatprep.mubr.msk.f32.mxu1 %vm441_vm1, %v5950_v47  ;;  %v4184_v47 = vld [vmem:[%s6592_s5 + $0x110] sm:$0xff] }
 0x103   : > { %4661 = vmatprep.mubr.msk.f32.mxu0 %vm441_vm1, %v5948_v28  ;;  %v5974_v28 = vld [vmem:[#allocation2 + $0xca] sm:$0xff] }
 0x105   : > { %4691 = vmatmul.mubr.msk.f32.gmra.mxu1 %vm441_vm1, %v5962_v46 }
 0x106   : > { %4662 = vmatmul.mubr.msk.f32.gmra.mxu0 %vm441_vm1, %v5958_v31  ;;  %4693 = vmatprep.mubr.msk.f32.mxu1 %vm441_vm1, %v5964_v54 }
 0x107   : > { %4704 = vmatprep.mubr.msk.f32.mxu0 %vm441_vm1, %v5551_v49  ;;  %v4183_v49 = vld [vmem:[%s6592_s5 + $0x108] sm:$0xff] }
 0x109   : > { %4694 = vmatmul.mubr.msk.f32.gmra.mxu1 %vm441_vm1, %v5974_v28 }
 0x10a   : > { %4705 = vmatmul.mubr.msk.f32.vlgmr.msra.gmra.mxu0 %vm441_vm1, %v5562_v53  ;;  %4736 = vmatprep.mubr.msk.f32.mxu1 %vm441_vm1, %v5570_v57  ;;  %v4204_v53 = vld [vmem:[%s6592_s5 + $0x130] sm:$0xff]  ;;  %v4203_v57 = vld [vmem:[%s6592_s5 + $0x128] sm:$0xff] }
 0x10b   : > { %4761 = vmatpush3.msra.mxu0 %v4185_v41  ;;  %4707 = vmatprep.mubr.msk.f32.mxu0 %vm441_vm1, %v5564_v55  ;;  %v4182_v55 = vld [vmem:[%s6592_s5 + $0x100] sm:$0xff]  ;;  %v6634_v41 = vld [vmem:[#allocation30_spill] sm:$0xff] }
 0x10c   : > { %4762 = vmatprep.subr.mxu0 %v4184_v47 }
 0x10d   : > { %4763 = vmatpush3.msra.mxu0 %v4184_v47  ;;  %4737 = vmatmul.mubr.msk.f32.vlgmr.msra.gmra.mxu1 %vm441_vm1, %v5582_v60  ;;  %v4202_v60 = vld [vmem:[%s6592_s5 + $0x120] sm:$0xff]  ;;  %v6635_v47 = vld [vmem:[#allocation31_spill] sm:$0xff] }
 0x10e   : > { %4708 = vmatmul.mubr.msk.f32.gmra.mxu0 %vm441_vm1, %v5580_v59  ;;  %4793 = vmatpush3.msra.mxu1 %v4205_v29  ;;  %v4225_v59 = vld [vmem:[%s6592_s5 + $0x158] sm:$0xff]  ;;  %v6632_v29 = vld [vmem:[#allocation28_spill] sm:$0xff] }
 0x10f   : > { %4710 = vmatprep.mubr.msk.f32.mxu0 %vm441_vm1, %v5584_v61  ;;  %4739 = vmatprep.mubr.msk.f32.mxu1 %vm441_vm1, %v5588_v62  ;;  %v4245_v61 = vld [vmem:[%s6592_s5 + $0x178] sm:$0xff]  ;;  %v2120_v62 = vld [vmem:[#allocation2 + $0x1b0] sm:$0xff] }
 0x110   : > { %4764 = vmatprep.subr.mxu0 %v4183_v49  ;;  %4794 = vmatprep.subr.mxu1 %v4204_v53 }
 0x111   : > { %4765 = vmatpush3.msra.mxu0 %v4183_v49  ;;  %4740 = vmatmul.mubr.msk.f32.gmra.mxu1 %vm441_vm1, %v5606_v2  ;;  %v2382_v2 = vld [vmem:[#allocation2 + $0x1b1] sm:$0xff]  ;;  %v6636_v49 = vld [vmem:[#allocation32_spill] sm:$0xff] }
 0x112   : > { %4711 = vmatmul.mubr.msk.f32.gmra.mxu0 %vm441_vm1, %v5602_v1  ;;  %4742 = vmatprep.mubr.msk.f32.mxu1 %vm441_vm1, %v5610_v4  ;;  %v2121_v1 = vld [vmem:[#allocation2 + $0x1b8] sm:$0xff]  ;;  %v4224_v4 = vld [vmem:[%s6592_s5 + $0x150] sm:$0xff] }
 0x113   : > { %4713 = vmatprep.mubr.msk.f32.mxu0 %vm441_vm1, %v5608_v3  ;;  %4795 = vmatpush3.msra.mxu1 %v4204_v53  ;;  %v2383_v3 = vld [vmem:[#allocation2 + $0x1b9] sm:$0xff]  ;;  %v6637_v53 = vld [vmem:[#allocation33_spill] sm:$0xff] }
 0x114   : > { %4766 = vmatprep.subr.mxu0 %v4182_v55  ;;  %4796 = vmatprep.subr.mxu1 %v4203_v57 }
 0x115   : > { %4767 = vmatpush3.msra.mxu0 %v4182_v55  ;;  %4743 = vmatmul.mubr.msk.f32.gmra.mxu1 %vm441_vm1, %v5628_v8  ;;  %v4244_v8 = vld [vmem:[%s6592_s5 + $0x170] sm:$0xff] }
 0x116   : > { %4714 = vmatmul.mubr.msk.f32.gmra.mxu0 %vm441_vm1, %v5624_v7  ;;  %4745 = vmatprep.mubr.msk.f32.mxu1 %vm441_vm1, %v5632_v10  ;;  %v4223_v7 = vld [vmem:[%s6592_s5 + $0x148] sm:$0xff]  ;;  %v6638_v55 = vld [vmem:[#allocation34_spill] sm:$0xff] }
 0x117   : > { %4716 = vmatprep.mubr.msk.f32.mxu0 %vm441_vm1, %v5630_v9  ;;  %4797 = vmatpush3.msra.mxu1 %v4203_v57  ;;  %v4222_v9 = vld [vmem:[%s6592_s5 + $0x140] sm:$0xff]  ;;  %v4243_v10 = vld [vmem:[%s6592_s5 + $0x168] sm:$0xff] }
 0x118   : > { %4824 = vmatprep.subr.mxu0 %v4225_v59  ;;  %4798 = vmatprep.subr.mxu1 %v4202_v60  ;;  %v3170_v57 = vld [vmem:[#allocation2 + $0xe1] sm:$0xff] }
 0x119   : > { %4746 = vmatmul.mubr.msk.f32.gmra.mxu1 %vm441_vm1, %v5647_v13  ;;  %v4242_v13 = vld [vmem:[%s6592_s5 + $0x160] sm:$0xff] }
 0x11a   : > { %4717 = vmatmul.mubr.msk.f32.gmra.mxu0 %vm441_vm1, %v5643_v12  ;;  %4748 = vmatprep.mubr.msk.f32.mxu1 %vm441_vm1, %v5651_v15  ;;  %v3713_v12 = vld [vmem:[%s5456_s3 + $0x10] sm:$0xff]  ;;  %v3714_v15 = vld [vmem:[%s5456_s3 + $0x18] sm:$0xff] }
 0x11b   : > { %4719 = vmatprep.mubr.msk.f32.mxu0 %vm441_vm1, %v5649_v14  ;;  %4799 = vmatpush3.msra.mxu1 %v4202_v60  ;;  %v3711_v14 = vld [vmem:[%s5456_s3] sm:$0xff] }
 0x11c   : > { %4856 = vmatprep.subr.mxu1 %v4245_v61  ;;  %3747 = vrot.lane.b32.xlu1 %v3713_v12, %s5154_s21 }
 0x11d   : > { %4749 = vmatmul.mubr.msk.f32.gmra.mxu1 %vm441_vm1, %v5666_v18  ;;  %3743 = vrot.lane.b32.xlu0 %v3711_v14, %s5154_s21  ;;  %v3716_v18 = vld [vmem:[%s5456_s3 + $0x28] sm:$0xff] }
 0x11e   : > { %4720 = vmatmul.mubr.msk.f32.gmra.mxu0 %vm441_vm1, %v5662_v17  ;;  %4751 = vmatprep.mubr.msk.f32.mxu1 %vm441_vm1, %v5670_v20  ;;  %v3712_v17 = vld [vmem:[%s5456_s3 + $0x8] sm:$0xff]  ;;  %v2644_v20 = vld [vmem:[#allocation2 + $0x1b2] sm:$0xff] }
 0x11f   : > { %4722 = vmatprep.mubr.msk.f32.mxu0 %vm441_vm1, %v5668_v19  ;;  %v3715_v19 = vld [vmem:[%s5456_s3 + $0x20] sm:$0xff] }
 0x120   : > { %3749 = vrot.lane.b32.xlu1 %v3714_v15, %s5154_s21 }
 0x121   : > { %4752 = vmatmul.mubr.msk.f32.gmra.mxu1 %vm441_vm1, %v5682_v22  ;;  %3745 = vrot.lane.b32.xlu0 %v3712_v17, %s5154_s21  ;;  %v6616_v22 = vld [vmem:[#allocation12_spill] sm:$0xff] }
 0x122   : > { %4723 = vmatmul.mubr.msk.f32.gmra.mxu0 %vm441_vm1, %v5678_v21  ;;  %4754 = vmatprep.mubr.msk.f32.mxu1 %vm441_vm1, %v5684_v24  ;;  %v3718_v21 = vld [vmem:[%s5456_s3 + $0x38] sm:$0xff]  ;;  %v3717_v24 = vld [vmem:[%s5456_s3 + $0x30] sm:$0xff] }
 0x123   : > { %4725 = vmatprep.mubr.msk.f32.mxu0 %vm441_vm1, %v2120_v62 }
 0x124   : > { %3753 = vrot.lane.b32.xlu1 %v3716_v18, %s5154_s21 }
 0x125   : > { %4755 = vmatmul.mubr.msk.f32.gmra.mxu1 %vm441_vm1, %v5693_v26  ;;  %3751 = vrot.lane.b32.xlu0 %v3715_v19, %s5154_s21  ;;  %v2645_v26 = vld [vmem:[#allocation2 + $0x1ba] sm:$0xff] }
 0x126   : > { %4726 = vmatmul.mubr.msk.f32.gmra.mxu0 %vm441_vm1, %v2121_v1  ;;  %4757 = vmatprep.mubr.msk.f32.mxu1 %vm441_vm1, %v2382_v2 }
 0x127   : > { %4768 = vmatprep.mubr.msk.f32.mxu0 %vm441_vm1, %v5695_v27  ;;  %v6617_v27 = vld [vmem:[#allocation13_spill] sm:$0xff] }
 0x128   : > { %3757 = vrot.lane.b32.xlu1 %v3718_v21, %s5154_s21 }
 0x129   : > { %4758 = vmatmul.mubr.msk.f32.gmra.mxu1 %vm441_vm1, %v2383_v3  ;;  %3755 = vrot.lane.b32.xlu0 %v3717_v24, %s5154_s21 }
 0x12a   : > { %4769 = vmatmul.mubr.msk.f32.vlgmr.msra.gmra.mxu0 %vm441_vm1, %v5705_v30  ;;  %4800 = vmatprep.mubr.msk.f32.mxu1 %vm441_vm1, %v5710_v33  ;;  %v2907_v30 = vld [vmem:[#allocation2 + $0xd8] sm:$0xff]  ;;  %v3719_v33 = vld [vmem:[%s5456_s3 + $0x40] sm:$0xff] }
 0x12b   : > { %4825 = vmatpush3.msra.mxu0 %v4225_v59  ;;  %4771 = vmatprep.mubr.msk.f32.mxu0 %vm441_vm1, %v5707_v32  ;;  %v3720_v32 = vld [vmem:[%s5456_s3 + $0x48] sm:$0xff] }
 0x12c   : > { %4826 = vmatprep.subr.mxu0 %v4224_v4  ;;  %3761 = vrot.lane.b32.xlu1 %v3720_v32, %s5154_s21 }
 0x12d   : > { %4827 = vmatpush3.msra.mxu0 %v4224_v4  ;;  %4801 = vmatmul.mubr.msk.f32.vlgmr.msra.gmra.mxu1 %vm441_vm1, %v5725_v37  ;;  %v2908_v37 = vld [vmem:[#allocation2 + $0xe0] sm:$0xff] }
 0x12e   : > { %4772 = vmatmul.mubr.msk.f32.gmra.mxu0 %vm441_vm1, %v5723_v36  ;;  %4857 = vmatpush3.msra.mxu1 %v4245_v61  ;;  %v6618_v36 = vld [vmem:[#allocation14_spill] sm:$0xff] }
 0x12f   : > { %4774 = vmatprep.mubr.msk.f32.mxu0 %vm441_vm1, %v5727_v38  ;;  %4803 = vmatprep.mubr.msk.f32.mxu1 %vm441_vm1, %v5731_v39  ;;  %v3722_v38 = vld [vmem:[%s5456_s3 + $0x58] sm:$0xff] }
 0x130   : > { %4828 = vmatprep.subr.mxu0 %v4223_v7  ;;  %4858 = vmatprep.subr.mxu1 %v4244_v8  ;;  %v6619_v39 = vld [vmem:[#allocation15_spill] sm:$0xff] }
 0x131   : > { %4829 = vmatpush3.msra.mxu0 %v4223_v7  ;;  %4804 = vmatmul.mubr.msk.f32.gmra.mxu1 %vm441_vm1, %v5749_v43  ;;  %v6620_v43 = vld [vmem:[#allocation16_spill] sm:$0xff] }
 0x132   : > { %4775 = vmatmul.mubr.msk.f32.gmra.mxu0 %vm441_vm1, %v5745_v42  ;;  %4806 = vmatprep.mubr.msk.f32.mxu1 %vm441_vm1, %v5753_v45  ;;  %v3721_v42 = vld [vmem:[%s5456_s3 + $0x50] sm:$0xff]  ;;  %v3724_v45 = vld [vmem:[%s5456_s3 + $0x68] sm:$0xff] }
 0x133   : > { %4777 = vmatprep.mubr.msk.f32.mxu0 %vm441_vm1, %v5751_v44  ;;  %4859 = vmatpush3.msra.mxu1 %v4244_v8  ;;  %v6621_v44 = vld [vmem:[#allocation17_spill] sm:$0xff] }
 0x134   : > { %4830 = vmatprep.subr.mxu0 %v4222_v9  ;;  %4860 = vmatprep.subr.mxu1 %v4243_v10 }
 0x135   : > { %4831 = vmatpush3.msra.mxu0 %v4222_v9  ;;  %4807 = vmatmul.mubr.msk.f32.gmra.mxu1 %vm441_vm1, %v5771_v50  ;;  %v6623_v50 = vld [vmem:[#allocation19_spill] sm:$0xff] }
 0x136   : > { %4778 = vmatmul.mubr.msk.f32.gmra.mxu0 %vm441_vm1, %v5767_v48  ;;  %4809 = vmatprep.mubr.msk.f32.mxu1 %vm441_vm1, %v5775_v52  ;;  %v6622_v48 = vld [vmem:[#allocation18_spill] sm:$0xff]  ;;  %v6624_v52 = vld [vmem:[#allocation20_spill] sm:$0xff] }
 0x137   : > { %4780 = vmatprep.mubr.msk.f32.mxu0 %vm441_vm1, %v5773_v51  ;;  %4861 = vmatpush3.msra.mxu1 %v4243_v10  ;;  %v3723_v51 = vld [vmem:[%s5456_s3 + $0x60] sm:$0xff] }
 0x138   : > { %4862 = vmatprep.subr.mxu1 %v4242_v13  ;;  %3759 = vrot.lane.b32.xlu0 %v3719_v33, %s5154_s21 }
 0x139   : > { %4810 = vmatmul.mubr.msk.f32.gmra.mxu1 %vm441_vm1, %v5790_v58  ;;  %3765 = vrot.lane.b32.xlu1 %v3722_v38, %s5154_s21  ;;  %v3726_v58 = vld [vmem:[%s5456_s3 + $0x78] sm:$0xff] }
 0x13a   : > { %4781 = vmatmul.mubr.msk.f32.gmra.mxu0 %vm441_vm1, %v5786_v56  ;;  %4812 = vmatprep.mubr.msk.f32.mxu1 %vm441_vm1, %v5794_v0  ;;  %v6625_v56 = vld [vmem:[#allocation21_spill] sm:$0xff]  ;;  %v6627_v0 = vld [vmem:[#allocation23_spill] sm:$0xff] }
 0x13b   : > { %4783 = vmatprep.mubr.msk.f32.mxu0 %vm441_vm1, %v5792_v63  ;;  %4863 = vmatpush3.msra.mxu1 %v4242_v13  ;;  %v6626_v63 = vld [vmem:[#allocation22_spill] sm:$0xff] }
 0x13c   : > { %3763 = vrot.lane.b32.xlu0 %v3721_v42, %s5154_s21 }
 0x13d   : > { %4813 = vmatmul.mubr.msk.f32.gmra.mxu1 %vm441_vm1, %v5806_v6  ;;  %3769 = vrot.lane.b32.xlu1 %v3724_v45, %s5154_s21  ;;  %v6628_v6 = vld [vmem:[#allocation24_spill] sm:$0xff] }
 0x13e   : > { %4784 = vmatmul.mubr.msk.f32.gmra.mxu0 %vm441_vm1, %v5802_v5  ;;  %4815 = vmatprep.mubr.msk.f32.mxu1 %vm441_vm1, %v5810_v16  ;;  %v3725_v5 = vld [vmem:[%s5456_s3 + $0x70] sm:$0xff] }
 0x13f   : > { %4786 = vmatprep.mubr.msk.f32.mxu0 %vm441_vm1, %v5808_v11  ;;  %v6629_v11 = vld [vmem:[#allocation25_spill] sm:$0xff]  ;;  %v6630_v16 = vld [vmem:[#allocation26_spill] sm:$0xff] }
 0x140   : > { %3767 = vrot.lane.b32.xlu0 %v3723_v51, %s5154_s21 }
 0x141   : > { %4816 = vmatmul.mubr.msk.f32.gmra.mxu1 %vm441_vm1, %v6616_v22  ;;  %3773 = vrot.lane.b32.xlu1 %v3726_v58, %s5154_s21 }
 0x142   : > { %4787 = vmatmul.mubr.msk.f32.gmra.mxu0 %vm441_vm1, %v5818_v23  ;;  %4818 = vmatprep.mubr.msk.f32.mxu1 %vm441_vm1, %v6617_v27  ;;  %v6631_v23 = vld [vmem:[#allocation27_spill] sm:$0xff] }
 0x143   : > { %4789 = vmatprep.mubr.msk.f32.mxu0 %vm441_vm1, %v2644_v20 }
 0x144   : > { %3771 = vrot.lane.b32.xlu0 %v3725_v5, %s5154_s21 }
 0x145   : > { %4819 = vmatmul.mubr.msk.f32.gmra.mxu1 %vm441_vm1, %v5833_v34  ;;  %v6633_v34 = vld [vmem:[#allocation29_spill] sm:$0xff] }
 0x146   : > { %4790 = vmatmul.mubr.msk.f32.gmra.mxu0 %vm441_vm1, %v2645_v26  ;;  %4821 = vmatprep.mubr.msk.f32.mxu1 %vm441_vm1, %v2907_v30 }
 0x147   : > { %4832 = vmatprep.mubr.msk.f32.mxu0 %vm441_vm1, %v6618_v36 }
 0x149   : > { %4822 = vmatmul.mubr.msk.f32.gmra.mxu1 %vm441_vm1, %v2908_v37 }
 0x14a   : > { %4833 = vmatmul.mubr.msk.f32.vlgmr.msra.gmra.mxu0 %vm441_vm1, %v6619_v39  ;;  %4864 = vmatprep.mubr.msk.f32.mxu1 %vm441_vm1, %v6621_v44 }
 0x14b   : > { %4835 = vmatprep.mubr.msk.f32.mxu0 %vm441_vm1, %v6620_v43 }
 0x14d   : > { %4865 = vmatmul.mubr.msk.f32.vlgmr.msra.gmra.mxu1 %vm441_vm1, %v6623_v50 }
 0x14e   : > { %4836 = vmatmul.mubr.msk.f32.gmra.mxu0 %vm441_vm1, %v6622_v48  ;;  %4867 = vmatprep.mubr.msk.f32.mxu1 %vm441_vm1, %v6625_v56 }
 0x14f   : > { %4838 = vmatprep.mubr.msk.f32.mxu0 %vm441_vm1, %v6624_v52 }
 0x151   : > { %4868 = vmatmul.mubr.msk.f32.gmra.mxu1 %vm441_vm1, %v6627_v0 }
 0x152   : > { %4839 = vmatmul.mubr.msk.f32.gmra.mxu0 %vm441_vm1, %v6626_v63  ;;  %4870 = vmatprep.mubr.msk.f32.mxu1 %vm441_vm1, %v6629_v11 }
 0x153   : > { %4841 = vmatprep.mubr.msk.f32.mxu0 %vm441_vm1, %v6628_v6 }
 0x155   : > { %4871 = vmatmul.mubr.msk.f32.gmra.mxu1 %vm441_vm1, %v6631_v23 }
 0x156   : > { %4842 = vmatmul.mubr.msk.f32.gmra.mxu0 %vm441_vm1, %v6630_v16  ;;  %4873 = vmatprep.mubr.msk.f32.mxu1 %vm441_vm1, %v6633_v34 }
 0x157   : > { %4844 = vmatprep.mubr.msk.f32.mxu0 %vm441_vm1, %v6632_v29 }
 0x159   : > { %4874 = vmatmul.mubr.msk.f32.gmra.mxu1 %vm441_vm1, %v6634_v41 }
 0x15a   : > { %4845 = vmatmul.mubr.msk.f32.gmra.mxu0 %vm441_vm1, %v5926_v40  ;;  %4876 = vmatprep.mubr.msk.f32.mxu1 %vm441_vm1, %v6636_v49  ;;  %v3169_v40 = vld [vmem:[#allocation2 + $0xd9] sm:$0xff] }
 0x15b   : > { %4847 = vmatprep.mubr.msk.f32.mxu0 %vm441_vm1, %v6635_v47 }
 0x15d   : > { %4877 = vmatmul.mubr.msk.f32.gmra.mxu1 %vm441_vm1, %v5946_v25  ;;  %v3431_v25 = vld [vmem:[#allocation2 + $0xda] sm:$0xff] }
 0x15e   : > { %4848 = vmatmul.mubr.msk.f32.gmra.mxu0 %vm441_vm1, %v5942_v35  ;;  %4879 = vmatprep.mubr.msk.f32.mxu1 %vm441_vm1, %v6638_v55  ;;  %v3432_v35 = vld [vmem:[#allocation2 + $0xe2] sm:$0xff] }
 0x15f   : > { %4850 = vmatprep.mubr.msk.f32.mxu0 %vm441_vm1, %v6637_v53 }
 0x161   : > { %4880 = vmatmul.mubr.msk.f32.gmra.mxu1 %vm441_vm1, %v5962_v46 }
 0x162   : > { %4851 = vmatmul.mubr.msk.f32.gmra.mxu0 %vm441_vm1, %v5958_v31  ;;  %4882 = vmatprep.mubr.msk.f32.mxu1 %vm441_vm1, %v5964_v54 }
 0x163   : > { %4853 = vmatprep.mubr.msk.f32.mxu0 %vm441_vm1, %v3169_v40 }
 0x165   : > { %4883 = vmatmul.mubr.msk.f32.gmra.mxu1 %vm441_vm1, %v5974_v28 }
 0x166   : > { %4854 = vmatmul.mubr.msk.f32.gmra.mxu0 %vm441_vm1, %v3170_v57  ;;  %4885 = vmatprep.mubr.msk.f32.mxu1 %vm441_vm1, %v3431_v25 }
 0x169   : > { %4886 = vmatmul.mubr.msk.f32.gmra.mxu1 %vm441_vm1, %v3432_v35 }
 0x16a   : > { %v4514_v31 = vpop.f32.mrf.mxu0 }
 0x16b   : > { %781 = vst.msk [vmem:[#allocation3 + $0x8] sm:$0xff] %vm779_vm2, %v4514_v31 }
 0x16c   : > { %v700_v46 = vpop.f32.mrf.mxu0 }
 0x16d   : > { %780 = vst.msk [vmem:[#allocation3] sm:$0xff] %vm779_vm2, %v700_v46  ;;  %v4546_v54 = vpop.f32.mrf.mxu1 }
 0x16e   : > { %v4517_v59 = vpop.f32.mrf.mxu0 }
 0x16f   : > { %783 = vst.msk [vmem:[#allocation3 + $0x18] sm:$0xff] %vm779_vm2, %v4517_v59  ;;  %v931_v61 = vpop.f32.mrf.mxu1 }
 0x170   : > { %v710_v60 = vpop.f32.mrf.mxu0 }
 0x171   : > { %782 = vst.msk [vmem:[#allocation3 + $0x10] sm:$0xff] %vm779_vm2, %v710_v60  ;;  %v4549_v1 = vpop.f32.mrf.mxu1 }
 0x172   : > { %v4520_v28 = vpop.f32.mrf.mxu0  ;;  %v1011_v62 = vld [vmem:[#allocation3 + $0x8] sm:$0xff] }
 0x173   : > { %785 = vst.msk [vmem:[#allocation3 + $0x28] sm:$0xff] %vm779_vm2, %v4520_v28  ;;  %v1027_v2 = vadd.f32 %v4546_v54, %v1011_v62  ;;  %v941_v7 = vpop.f32.mrf.mxu1 }
 0x174   : > { %v720_v3 = vpop.f32.mrf.mxu0  ;;  %v1010_v4 = vld [vmem:[#allocation3] sm:$0xff] }
 0x175   : > { %1043 = vst.msk [vmem:[#allocation3 + $0x8] sm:$0xff] %vm779_vm2, %v1027_v2  ;;  %784 = vst.msk [vmem:[#allocation3 + $0x20] sm:$0xff] %vm779_vm2, %v720_v3  ;;  %v1026_v8 = vadd.f32 %v1010_v4, %v931_v61  ;;  %v4552_v12 = vpop.f32.mrf.mxu1 }
 0x176   : > { %v4523_v9 = vpop.f32.mrf.mxu0  ;;  %v1013_v10 = vld [vmem:[#allocation3 + $0x18] sm:$0xff] }
 0x177   : > { %1042 = vst.msk [vmem:[#allocation3] sm:$0xff] %vm779_vm2, %v1026_v8  ;;  %787 = vst.msk [vmem:[#allocation3 + $0x38] sm:$0xff] %vm779_vm2, %v4523_v9  ;;  %v1029_v13 = vadd.f32 %v4549_v1, %v1013_v10  ;;  %v951_v17 = vpop.f32.mrf.mxu1 }
 0x178   : > { %v730_v14 = vpop.f32.mrf.mxu0  ;;  %v1012_v15 = vld [vmem:[#allocation3 + $0x10] sm:$0xff] }
 0x179   : > { %1045 = vst.msk [vmem:[#allocation3 + $0x18] sm:$0xff] %vm779_vm2, %v1029_v13  ;;  %786 = vst.msk [vmem:[#allocation3 + $0x30] sm:$0xff] %vm779_vm2, %v730_v14  ;;  %v1028_v18 = vadd.f32 %v1012_v15, %v941_v7  ;;  %v4555_v21 = vpop.f32.mrf.mxu1 }
 0x17a   : > { %v4526_v19 = vpop.f32.mrf.mxu0  ;;  %v1015_v20 = vld [vmem:[#allocation3 + $0x28] sm:$0xff] }
 0x17b   : > { %1044 = vst.msk [vmem:[#allocation3 + $0x10] sm:$0xff] %vm779_vm2, %v1028_v18  ;;  %789 = vst.msk [vmem:[#allocation3 + $0x48] sm:$0xff] %vm779_vm2, %v4526_v19  ;;  %v1031_v22 = vadd.f32 %v4552_v12, %v1015_v20  ;;  %v961_v27 = vpop.f32.mrf.mxu1 }
 0x17c   : > { %v740_v24 = vpop.f32.mrf.mxu0  ;;  %v1014_v26 = vld [vmem:[#allocation3 + $0x20] sm:$0xff]  ;;  %v1273_v47 = vld [vmem:[#allocation3 + $0x8] sm:$0xff] }
 0x17d   : > { %1047 = vst.msk [vmem:[#allocation3 + $0x28] sm:$0xff] %vm779_vm2, %v1031_v22  ;;  %788 = vst.msk [vmem:[#allocation3 + $0x40] sm:$0xff] %vm779_vm2, %v740_v24  ;;  %v1030_v30 = vadd.f32 %v1014_v26, %v951_v17  ;;  %v4558_v36 = vpop.f32.mrf.mxu1 }
 0x17e   : > { %v4529_v32 = vpop.f32.mrf.mxu0  ;;  %v1017_v33 = vld [vmem:[#allocation3 + $0x38] sm:$0xff]  ;;  %v1272_v25 = vld [vmem:[#allocation3] sm:$0xff] }
 0x17f   : > { %1046 = vst.msk [vmem:[#allocation3 + $0x20] sm:$0xff] %vm779_vm2, %v1030_v30  ;;  %791 = vst.msk [vmem:[#allocation3 + $0x58] sm:$0xff] %vm779_vm2, %v4529_v32  ;;  %v1033_v37 = vadd.f32 %v4555_v21, %v1017_v33  ;;  %v971_v42 = vpop.f32.mrf.mxu1 }
 0x180   : > { %v750_v38 = vpop.f32.mrf.mxu0  ;;  %v1016_v39 = vld [vmem:[#allocation3 + $0x30] sm:$0xff]  ;;  %v1275_v60 = vld [vmem:[#allocation3 + $0x18] sm:$0xff] }
 0x181   : > { %1049 = vst.msk [vmem:[#allocation3 + $0x38] sm:$0xff] %vm779_vm2, %v1033_v37  ;;  %790 = vst.msk [vmem:[#allocation3 + $0x50] sm:$0xff] %vm779_vm2, %v750_v38  ;;  %v1032_v43 = vadd.f32 %v1016_v39, %v961_v27  ;;  %v4561_v48 = vpop.f32.mrf.mxu1 }
 0x182   : > { %v4532_v44 = vpop.f32.mrf.mxu0  ;;  %v1019_v45 = vld [vmem:[#allocation3 + $0x48] sm:$0xff]  ;;  %v1274_v3 = vld [vmem:[#allocation3 + $0x10] sm:$0xff] }
 0x183   : > { %1048 = vst.msk [vmem:[#allocation3 + $0x30] sm:$0xff] %vm779_vm2, %v1032_v43  ;;  %793 = vst.msk [vmem:[#allocation3 + $0x68] sm:$0xff] %vm779_vm2, %v4532_v44  ;;  %v1035_v50 = vadd.f32 %v4558_v36, %v1019_v45  ;;  %v981_v56 = vpop.f32.mrf.mxu1 }
 0x184   : > { %v760_v51 = vpop.f32.mrf.mxu0  ;;  %v1018_v52 = vld [vmem:[#allocation3 + $0x40] sm:$0xff]  ;;  %v1277_v10 = vld [vmem:[#allocation3 + $0x28] sm:$0xff] }
 0x185   : > { %1051 = vst.msk [vmem:[#allocation3 + $0x48] sm:$0xff] %vm779_vm2, %v1035_v50  ;;  %792 = vst.msk [vmem:[#allocation3 + $0x60] sm:$0xff] %vm779_vm2, %v760_v51  ;;  %v1034_v58 = vadd.f32 %v1018_v52, %v971_v42  ;;  %v4564_v5 = vpop.f32.mrf.mxu1 }
 0x186   : > { %v4535_v63 = vpop.f32.mrf.mxu0  ;;  %v1021_v0 = vld [vmem:[#allocation3 + $0x58] sm:$0xff]  ;;  %v1276_v17 = vld [vmem:[#allocation3 + $0x20] sm:$0xff] }
 0x187   : > { %1050 = vst.msk [vmem:[#allocation3 + $0x40] sm:$0xff] %vm779_vm2, %v1034_v58  ;;  %795 = vst.msk [vmem:[#allocation3 + $0x78] sm:$0xff] %vm779_vm2, %v4535_v63  ;;  %v1037_v6 = vadd.f32 %v4561_v48, %v1021_v0  ;;  %v991_v23 = vpop.f32.mrf.mxu1 }
 0x188   : > { %v770_v11 = vpop.f32.mrf.mxu0  ;;  %v1020_v16 = vld [vmem:[#allocation3 + $0x50] sm:$0xff]  ;;  %v1279_v24 = vld [vmem:[#allocation3 + $0x38] sm:$0xff] }
 0x189   : > { %1053 = vst.msk [vmem:[#allocation3 + $0x58] sm:$0xff] %vm779_vm2, %v1037_v6  ;;  %794 = vst.msk [vmem:[#allocation3 + $0x70] sm:$0xff] %vm779_vm2, %v770_v11  ;;  %v1036_v29 = vadd.f32 %v1020_v16, %v981_v56  ;;  %v4567_v49 = vpop.f32.mrf.mxu1 }
 0x18a   : > { %v1023_v34 = vld [vmem:[#allocation3 + $0x68] sm:$0xff]  ;;  %v4578_v41 = vpop.f32.mrf.mxu0  ;;  %v1278_v36 = vld [vmem:[#allocation3 + $0x30] sm:$0xff] }
 0x18b   : > { %1052 = vst.msk [vmem:[#allocation3 + $0x50] sm:$0xff] %vm779_vm2, %v1036_v29  ;;  %v1039_v53 = vadd.f32 %v4564_v5, %v1023_v34  ;;  %v1289_v55 = vadd.f32 %v4578_v41, %v1273_v47  ;;  %v1001_v35 = vpop.f32.mrf.mxu1 }
 0x18c   : > { %v1022_v40 = vld [vmem:[#allocation3 + $0x60] sm:$0xff]  ;;  %v1193_v57 = vpop.f32.mrf.mxu0  ;;  %v1281_v44 = vld [vmem:[#allocation3 + $0x48] sm:$0xff] }
 0x18d   : > { %1055 = vst.msk [vmem:[#allocation3 + $0x68] sm:$0xff] %vm779_vm2, %v1039_v53  ;;  %1305 = vst.msk [vmem:[#allocation3 + $0x8] sm:$0xff] %vm779_vm2, %v1289_v55  ;;  %v1038_v31 = vadd.f32 %v1022_v40, %v991_v23  ;;  %v1288_v46 = vadd.f32 %v1272_v25, %v1193_v57  ;;  %v4610_v61 = vpop.f32.mrf.mxu1 }
 0x18e   : > { %v1025_v59 = vld [vmem:[#allocation3 + $0x78] sm:$0xff]  ;;  %v4581_v54 = vpop.f32.mrf.mxu0  ;;  %v1280_v56 = vld [vmem:[#allocation3 + $0x40] sm:$0xff] }
 0x18f   : > { %1054 = vst.msk [vmem:[#allocation3 + $0x60] sm:$0xff] %vm779_vm2, %v1038_v31  ;;  %1304 = vst.msk [vmem:[#allocation3] sm:$0xff] %vm779_vm2, %v1288_v46  ;;  %v1041_v28 = vadd.f32 %v4567_v49, %v1025_v59  ;;  %v1291_v62 = vadd.f32 %v4581_v54, %v1275_v60  ;;  %v1455_v4 = vpop.f32.mrf.mxu1 }
 0x190   : > { %v1024_v1 = vld [vmem:[#allocation3 + $0x70] sm:$0xff]  ;;  %v1203_v2 = vpop.f32.mrf.mxu0  ;;  %v1283_v11 = vld [vmem:[#allocation3 + $0x58] sm:$0xff] }
 0x191   : > { %1057 = vst.msk [vmem:[#allocation3 + $0x78] sm:$0xff] %vm779_vm2, %v1041_v28  ;;  %1307 = vst.msk [vmem:[#allocation3 + $0x18] sm:$0xff] %vm779_vm2, %v1291_v62  ;;  %v1040_v7 = vadd.f32 %v1024_v1, %v1001_v35  ;;  %v1290_v8 = vadd.f32 %v1274_v3, %v1203_v2  ;;  %v4613_v12 = vpop.f32.mrf.mxu1 }
 0x192   : > { %v4584_v9 = vpop.f32.mrf.mxu0  ;;  %v1282_v47 = vld [vmem:[#allocation3 + $0x50] sm:$0xff] }
 0x193   : > { %1056 = vst.msk [vmem:[#allocation3 + $0x70] sm:$0xff] %vm779_vm2, %v1040_v7  ;;  %1306 = vst.msk [vmem:[#allocation3 + $0x10] sm:$0xff] %vm779_vm2, %v1290_v8  ;;  %v1293_v13 = vadd.f32 %v4584_v9, %v1277_v10  ;;  %v1465_v18 = vpop.f32.mrf.mxu1 }
 0x194   : > { %v1535_v14 = vld [vmem:[#allocation3 + $0x8] sm:$0xff]  ;;  %v1213_v15 = vpop.f32.mrf.mxu0 }
 0x195   : > { %1309 = vst.msk [vmem:[#allocation3 + $0x28] sm:$0xff] %vm779_vm2, %v1293_v13  ;;  %v1551_v19 = vadd.f32 %v4610_v61, %v1535_v14  ;;  %v1292_v20 = vadd.f32 %v1276_v17, %v1213_v15  ;;  %v4616_v26 = vpop.f32.mrf.mxu1  ;;  %v1285_v25 = vld [vmem:[#allocation3 + $0x68] sm:$0xff] }
 0x196   : > { %v1534_v21 = vld [vmem:[#allocation3] sm:$0xff]  ;;  %v4587_v22 = vpop.f32.mrf.mxu0 }
 0x197   : > { %1567 = vst.msk [vmem:[#allocation3 + $0x8] sm:$0xff] %vm779_vm2, %v1551_v19  ;;  %1308 = vst.msk [vmem:[#allocation3 + $0x20] sm:$0xff] %vm779_vm2, %v1292_v20  ;;  %v1550_v27 = vadd.f32 %v1534_v21, %v1455_v4  ;;  %v1295_v30 = vadd.f32 %v4587_v22, %v1279_v24  ;;  %v1475_v37 = vpop.f32.mrf.mxu1  ;;  %v1284_v60 = vld [vmem:[#allocation3 + $0x60] sm:$0xff] }
 0x198   : > { %v1537_v32 = vld [vmem:[#allocation3 + $0x18] sm:$0xff]  ;;  %v1223_v33 = vpop.f32.mrf.mxu0 }
 0x199   : > { %1566 = vst.msk [vmem:[#allocation3] sm:$0xff] %vm779_vm2, %v1550_v27  ;;  %1311 = vst.msk [vmem:[#allocation3 + $0x38] sm:$0xff] %vm779_vm2, %v1295_v30  ;;  %v1553_v38 = vadd.f32 %v4613_v12, %v1537_v32  ;;  %v1294_v39 = vadd.f32 %v1278_v36, %v1223_v33  ;;  %v4619_v45 = vpop.f32.mrf.mxu1  ;;  %v1287_v3 = vld [vmem:[#allocation3 + $0x78] sm:$0xff] }
 0x19a   : > { %v1536_v42 = vld [vmem:[#allocation3 + $0x10] sm:$0xff]  ;;  %v4590_v43 = vpop.f32.mrf.mxu0 }
 0x19b   : > { %1569 = vst.msk [vmem:[#allocation3 + $0x18] sm:$0xff] %vm779_vm2, %v1553_v38  ;;  %1310 = vst.msk [vmem:[#allocation3 + $0x30] sm:$0xff] %vm779_vm2, %v1294_v39  ;;  %v1552_v48 = vadd.f32 %v1536_v42, %v1465_v18  ;;  %v1297_v50 = vadd.f32 %v4590_v43, %v1281_v44  ;;  %v1485_v58 = vpop.f32.mrf.mxu1  ;;  %v1286_v12 = vld [vmem:[#allocation3 + $0x70] sm:$0xff] }
 0x19c   : > { %v1539_v51 = vld [vmem:[#allocation3 + $0x28] sm:$0xff]  ;;  %v1233_v52 = vpop.f32.mrf.mxu0 }
 0x19d   : > { %1568 = vst.msk [vmem:[#allocation3 + $0x10] sm:$0xff] %vm779_vm2, %v1552_v48  ;;  %1313 = vst.msk [vmem:[#allocation3 + $0x48] sm:$0xff] %vm779_vm2, %v1297_v50  ;;  %v1555_v63 = vadd.f32 %v4616_v26, %v1539_v51  ;;  %v1296_v0 = vadd.f32 %v1280_v56, %v1233_v52  ;;  %v4622_v16 = vpop.f32.mrf.mxu1 }
 0x19e   : > { %v1538_v5 = vld [vmem:[#allocation3 + $0x20] sm:$0xff]  ;;  %v4593_v6 = vpop.f32.mrf.mxu0  ;;  %v1797_v19 = vld [vmem:[#allocation3 + $0x8] sm:$0xff] }
 0x19f   : > { %1571 = vst.msk [vmem:[#allocation3 + $0x28] sm:$0xff] %vm779_vm2, %v1555_v63  ;;  %1312 = vst.msk [vmem:[#allocation3 + $0x40] sm:$0xff] %vm779_vm2, %v1296_v0  ;;  %v1554_v23 = vadd.f32 %v1538_v5, %v1475_v37  ;;  %v1299_v29 = vadd.f32 %v4593_v6, %v1283_v11  ;;  %v1495_v49 = vpop.f32.mrf.mxu1 }
 0x1a0   : > { %v1541_v34 = vld [vmem:[#allocation3 + $0x38] sm:$0xff]  ;;  %v1243_v41 = vpop.f32.mrf.mxu0  ;;  %v1796_v27 = vld [vmem:[#allocation3] sm:$0xff] }
 0x1a1   : > { %1570 = vst.msk [vmem:[#allocation3 + $0x20] sm:$0xff] %vm779_vm2, %v1554_v23  ;;  %1315 = vst.msk [vmem:[#allocation3 + $0x58] sm:$0xff] %vm779_vm2, %v1299_v29  ;;  %v1557_v53 = vadd.f32 %v4619_v45, %v1541_v34  ;;  %v1298_v55 = vadd.f32 %v1282_v47, %v1243_v41  ;;  %v4625_v35 = vpop.f32.mrf.mxu1 }
 0x1a2   : > { %v1540_v40 = vld [vmem:[#allocation3 + $0x30] sm:$0xff]  ;;  %v4596_v57 = vpop.f32.mrf.mxu0  ;;  %v1799_v38 = vld [vmem:[#allocation3 + $0x18] sm:$0xff] }
 0x1a3   : > { %1573 = vst.msk [vmem:[#allocation3 + $0x38] sm:$0xff] %vm779_vm2, %v1557_v53  ;;  %1314 = vst.msk [vmem:[#allocation3 + $0x50] sm:$0xff] %vm779_vm2, %v1298_v55  ;;  %v1556_v31 = vadd.f32 %v1540_v40, %v1485_v58  ;;  %v1301_v46 = vadd.f32 %v4596_v57, %v1285_v25  ;;  %v1505_v61 = vpop.f32.mrf.mxu1 }
 0x1a4   : > { %v1543_v59 = vld [vmem:[#allocation3 + $0x48] sm:$0xff]  ;;  %v1253_v54 = vpop.f32.mrf.mxu0  ;;  %v1798_v48 = vld [vmem:[#allocation3 + $0x10] sm:$0xff] }
 0x1a5   : > { %1572 = vst.msk [vmem:[#allocation3 + $0x30] sm:$0xff] %vm779_vm2, %v1556_v31  ;;  %1317 = vst.msk [vmem:[#allocation3 + $0x68] sm:$0xff] %vm779_vm2, %v1301_v46  ;;  %v1559_v28 = vadd.f32 %v4622_v16, %v1543_v59  ;;  %v1300_v62 = vadd.f32 %v1284_v60, %v1253_v54  ;;  %v4628_v4 = vpop.f32.mrf.mxu1 }
 0x1a6   : > { %v1542_v1 = vld [vmem:[#allocation3 + $0x40] sm:$0xff]  ;;  %v4599_v2 = vpop.f32.mrf.mxu0  ;;  %v1801_v63 = vld [vmem:[#allocation3 + $0x28] sm:$0xff] }
 0x1a7   : > { %1575 = vst.msk [vmem:[#allocation3 + $0x48] sm:$0xff] %vm779_vm2, %v1559_v28  ;;  %1316 = vst.msk [vmem:[#allocation3 + $0x60] sm:$0xff] %vm779_vm2, %v1300_v62  ;;  %v1558_v7 = vadd.f32 %v1542_v1, %v1495_v49  ;;  %v1303_v8 = vadd.f32 %v4599_v2, %v1287_v3  ;;  %v1515_v13 = vpop.f32.mrf.mxu1 }
 0x1a8   : > { %v1545_v9 = vld [vmem:[#allocation3 + $0x58] sm:$0xff]  ;;  %v1263_v10 = vpop.f32.mrf.mxu0  ;;  %v1800_v23 = vld [vmem:[#allocation3 + $0x20] sm:$0xff] }
 0x1a9   : > { %1574 = vst.msk [vmem:[#allocation3 + $0x40] sm:$0xff] %vm779_vm2, %v1558_v7  ;;  %1319 = vst.msk [vmem:[#allocation3 + $0x78] sm:$0xff] %vm779_vm2, %v1303_v8  ;;  %v1561_v14 = vadd.f32 %v4625_v35, %v1545_v9  ;;  %v1302_v15 = vadd.f32 %v1286_v12, %v1263_v10  ;;  %v4631_v20 = vpop.f32.mrf.mxu1 }
 0x1aa   : > { %v1544_v17 = vld [vmem:[#allocation3 + $0x50] sm:$0xff]  ;;  %v4642_v18 = vpop.f32.mrf.mxu0  ;;  %v1803_v53 = vld [vmem:[#allocation3 + $0x38] sm:$0xff] }
 0x1ab   : > { %1577 = vst.msk [vmem:[#allocation3 + $0x58] sm:$0xff] %vm779_vm2, %v1561_v14  ;;  %1318 = vst.msk [vmem:[#allocation3 + $0x70] sm:$0xff] %vm779_vm2, %v1302_v15  ;;  %v1560_v21 = vadd.f32 %v1544_v17, %v1505_v61  ;;  %v1813_v22 = vadd.f32 %v4642_v18, %v1797_v19  ;;  %v1525_v30 = vpop.f32.mrf.mxu1 }
 0x1ac   : > { %v1547_v24 = vld [vmem:[#allocation3 + $0x68] sm:$0xff]  ;;  %v1717_v26 = vpop.f32.mrf.mxu0  ;;  %v1802_v31 = vld [vmem:[#allocation3 + $0x30] sm:$0xff] }
 0x1ad   : > { %1576 = vst.msk [vmem:[#allocation3 + $0x50] sm:$0xff] %vm779_vm2, %v1560_v21  ;;  %1829 = vst.msk [vmem:[#allocation3 + $0x8] sm:$0xff] %vm779_vm2, %v1813_v22  ;;  %v1563_v32 = vadd.f32 %v4628_v4, %v1547_v24  ;;  %v1812_v33 = vadd.f32 %v1796_v27, %v1717_v26  ;;  %v4674_v39 = vpop.f32.mrf.mxu1 }
 0x1ae   : > { %v1546_v36 = vld [vmem:[#allocation3 + $0x60] sm:$0xff]  ;;  %v4645_v37 = vpop.f32.mrf.mxu0  ;;  %v1805_v28 = vld [vmem:[#allocation3 + $0x48] sm:$0xff] }
 0x1af   : > { %1579 = vst.msk [vmem:[#allocation3 + $0x68] sm:$0xff] %vm779_vm2, %v1563_v32  ;;  %1828 = vst.msk [vmem:[#allocation3] sm:$0xff] %vm779_vm2, %v1812_v33  ;;  %v1562_v42 = vadd.f32 %v1546_v36, %v1515_v13  ;;  %v1815_v43 = vadd.f32 %v4645_v37, %v1799_v38  ;;  %v1979_v50 = vpop.f32.mrf.mxu1 }
 0x1b0   : > { %v1549_v44 = vld [vmem:[#allocation3 + $0x78] sm:$0xff]  ;;  %v1727_v45 = vpop.f32.mrf.mxu0  ;;  %v1804_v7 = vld [vmem:[#allocation3 + $0x40] sm:$0xff] }
 0x1b1   : > { %1578 = vst.msk [vmem:[#allocation3 + $0x60] sm:$0xff] %vm779_vm2, %v1562_v42  ;;  %1831 = vst.msk [vmem:[#allocation3 + $0x18] sm:$0xff] %vm779_vm2, %v1815_v43  ;;  %v1565_v51 = vadd.f32 %v4631_v20, %v1549_v44  ;;  %v1814_v52 = vadd.f32 %v1798_v48, %v1727_v45  ;;  %v4677_v0 = vpop.f32.mrf.mxu1 }
 0x1b2   : > { %v1548_v56 = vld [vmem:[#allocation3 + $0x70] sm:$0xff]  ;;  %v4648_v58 = vpop.f32.mrf.mxu0  ;;  %v1807_v14 = vld [vmem:[#allocation3 + $0x58] sm:$0xff] }
 0x1b3   : > { %1581 = vst.msk [vmem:[#allocation3 + $0x78] sm:$0xff] %vm779_vm2, %v1565_v51  ;;  %1830 = vst.msk [vmem:[#allocation3 + $0x10] sm:$0xff] %vm779_vm2, %v1814_v52  ;;  %v1564_v5 = vadd.f32 %v1548_v56, %v1525_v30  ;;  %v1817_v6 = vadd.f32 %v4648_v58, %v1801_v63  ;;  %v1989_v29 = vpop.f32.mrf.mxu1 }
 0x1b4   : > { %v2059_v11 = vld [vmem:[#allocation3 + $0x8] sm:$0xff]  ;;  %v1737_v16 = vpop.f32.mrf.mxu0  ;;  %v1806_v21 = vld [vmem:[#allocation3 + $0x50] sm:$0xff] }
 0x1b5   : > { %1580 = vst.msk [vmem:[#allocation3 + $0x70] sm:$0xff] %vm779_vm2, %v1564_v5  ;;  %1833 = vst.msk [vmem:[#allocation3 + $0x28] sm:$0xff] %vm779_vm2, %v1817_v6  ;;  %v2075_v34 = vadd.f32 %v4674_v39, %v2059_v11  ;;  %v1816_v41 = vadd.f32 %v1800_v23, %v1737_v16  ;;  %v4680_v55 = vpop.f32.mrf.mxu1 }
 0x1b6   : > { %v2058_v47 = vld [vmem:[#allocation3] sm:$0xff]  ;;  %v4651_v49 = vpop.f32.mrf.mxu0  ;;  %v1809_v32 = vld [vmem:[#allocation3 + $0x68] sm:$0xff] }
 0x1b7   : > { %2091 = vst.msk [vmem:[#allocation3 + $0x8] sm:$0xff] %vm779_vm2, %v2075_v34  ;;  %1832 = vst.msk [vmem:[#allocation3 + $0x20] sm:$0xff] %vm779_vm2, %v1816_v41  ;;  %v2074_v40 = vadd.f32 %v2058_v47, %v1979_v50  ;;  %v1819_v57 = vadd.f32 %v4651_v49, %v1803_v53  ;;  %v1999_v46 = vpop.f32.mrf.mxu1 }
 0x1b8   : > { %v2061_v25 = vld [vmem:[#allocation3 + $0x18] sm:$0xff]  ;;  %v1747_v35 = vpop.f32.mrf.mxu0  ;;  %v1808_v42 = vld [vmem:[#allocation3 + $0x60] sm:$0xff] }
 0x1b9   : > { %2090 = vst.msk [vmem:[#allocation3] sm:$0xff] %vm779_vm2, %v2074_v40  ;;  %1835 = vst.msk [vmem:[#allocation3 + $0x38] sm:$0xff] %vm779_vm2, %v1819_v57  ;;  %v2077_v59 = vadd.f32 %v4677_v0, %v2061_v25  ;;  %v1818_v54 = vadd.f32 %v1802_v31, %v1747_v35  ;;  %v4683_v62 = vpop.f32.mrf.mxu1 }
 0x1ba   : > { %v2060_v60 = vld [vmem:[#allocation3 + $0x10] sm:$0xff]  ;;  %v4654_v61 = vpop.f32.mrf.mxu0  ;;  %v1811_v51 = vld [vmem:[#allocation3 + $0x78] sm:$0xff] }
 0x1bb   : > { %2093 = vst.msk [vmem:[#allocation3 + $0x18] sm:$0xff] %vm779_vm2, %v2077_v59  ;;  %1834 = vst.msk [vmem:[#allocation3 + $0x30] sm:$0xff] %vm779_vm2, %v1818_v54  ;;  %v2076_v1 = vadd.f32 %v2060_v60, %v1989_v29  ;;  %v1821_v2 = vadd.f32 %v4654_v61, %v1805_v28  ;;  %v2009_v8 = vpop.f32.mrf.mxu1 }
 0x1bc   : > { %v2063_v3 = vld [vmem:[#allocation3 + $0x28] sm:$0xff]  ;;  %v1757_v4 = vpop.f32.mrf.mxu0  ;;  %v1810_v5 = vld [vmem:[#allocation3 + $0x70] sm:$0xff] }
 0x1bd   : > { %2092 = vst.msk [vmem:[#allocation3 + $0x10] sm:$0xff] %vm779_vm2, %v2076_v1  ;;  %1837 = vst.msk [vmem:[#allocation3 + $0x48] sm:$0xff] %vm779_vm2, %v1821_v2  ;;  %v2079_v9 = vadd.f32 %v4680_v55, %v2063_v3  ;;  %v1820_v10 = vadd.f32 %v1804_v7, %v1757_v4  ;;  %v4686_v15 = vpop.f32.mrf.mxu1 }
 0x1be   : > { %v2062_v12 = vld [vmem:[#allocation3 + $0x20] sm:$0xff]  ;;  %v4657_v13 = vpop.f32.mrf.mxu0  ;;  %v2321_v34 = vld [vmem:[#allocation3 + $0x8] sm:$0xff] }
 0x1bf   : > { %2095 = vst.msk [vmem:[#allocation3 + $0x28] sm:$0xff] %vm779_vm2, %v2079_v9  ;;  %1836 = vst.msk [vmem:[#allocation3 + $0x40] sm:$0xff] %vm779_vm2, %v1820_v10  ;;  %v2078_v17 = vadd.f32 %v2062_v12, %v1999_v46  ;;  %v1823_v18 = vadd.f32 %v4657_v13, %v1807_v14  ;;  %v2019_v22 = vpop.f32.mrf.mxu1 }
 0x1c0   : > { %v2065_v19 = vld [vmem:[#allocation3 + $0x38] sm:$0xff]  ;;  %v1767_v20 = vpop.f32.mrf.mxu0  ;;  %v2320_v40 = vld [vmem:[#allocation3] sm:$0xff] }
 0x1c1   : > { %2094 = vst.msk [vmem:[#allocation3 + $0x20] sm:$0xff] %vm779_vm2, %v2078_v17  ;;  %1839 = vst.msk [vmem:[#allocation3 + $0x58] sm:$0xff] %vm779_vm2, %v1823_v18  ;;  %v2081_v24 = vadd.f32 %v4683_v62, %v2065_v19  ;;  %v1822_v26 = vadd.f32 %v1806_v21, %v1767_v20  ;;  %v4689_v33 = vpop.f32.mrf.mxu1 }
 0x1c2   : > { %v2064_v27 = vld [vmem:[#allocation3 + $0x30] sm:$0xff]  ;;  %v4660_v30 = vpop.f32.mrf.mxu0  ;;  %v2323_v59 = vld [vmem:[#allocation3 + $0x18] sm:$0xff] }
 0x1c3   : > { %2097 = vst.msk [vmem:[#allocation3 + $0x38] sm:$0xff] %vm779_vm2, %v2081_v24  ;;  %1838 = vst.msk [vmem:[#allocation3 + $0x50] sm:$0xff] %vm779_vm2, %v1822_v26  ;;  %v2080_v36 = vadd.f32 %v2064_v27, %v2009_v8  ;;  %v1825_v37 = vadd.f32 %v4660_v30, %v1809_v32  ;;  %v2029_v43 = vpop.f32.mrf.mxu1 }
 0x1c4   : > { %v2067_v38 = vld [vmem:[#allocation3 + $0x48] sm:$0xff]  ;;  %v1777_v39 = vpop.f32.mrf.mxu0  ;;  %v2322_v1 = vld [vmem:[#allocation3 + $0x10] sm:$0xff] }
 0x1c5   : > { %2096 = vst.msk [vmem:[#allocation3 + $0x30] sm:$0xff] %vm779_vm2, %v2080_v36  ;;  %1841 = vst.msk [vmem:[#allocation3 + $0x68] sm:$0xff] %vm779_vm2, %v1825_v37  ;;  %v2083_v44 = vadd.f32 %v4686_v15, %v2067_v38  ;;  %v1824_v45 = vadd.f32 %v1808_v42, %v1777_v39  ;;  %v4692_v52 = vpop.f32.mrf.mxu1 }
 0x1c6   : > { %v2066_v48 = vld [vmem:[#allocation3 + $0x40] sm:$0xff]  ;;  %v4663_v50 = vpop.f32.mrf.mxu0  ;;  %v2325_v9 = vld [vmem:[#allocation3 + $0x28] sm:$0xff] }
 0x1c7   : > { %2099 = vst.msk [vmem:[#allocation3 + $0x48] sm:$0xff] %vm779_vm2, %v2083_v44  ;;  %1840 = vst.msk [vmem:[#allocation3 + $0x60] sm:$0xff] %vm779_vm2, %v1824_v45  ;;  %v2082_v56 = vadd.f32 %v2066_v48, %v2019_v22  ;;  %v1827_v58 = vadd.f32 %v4663_v50, %v1811_v51  ;;  %v2039_v6 = vpop.f32.mrf.mxu1 }
 0x1c8   : > { %v2069_v63 = vld [vmem:[#allocation3 + $0x58] sm:$0xff]  ;;  %v1787_v0 = vpop.f32.mrf.mxu0  ;;  %v2324_v17 = vld [vmem:[#allocation3 + $0x20] sm:$0xff] }
 0x1c9   : > { %2098 = vst.msk [vmem:[#allocation3 + $0x40] sm:$0xff] %vm779_vm2, %v2082_v56  ;;  %1843 = vst.msk [vmem:[#allocation3 + $0x78] sm:$0xff] %vm779_vm2, %v1827_v58  ;;  %v2085_v11 = vadd.f32 %v4689_v33, %v2069_v63  ;;  %v1826_v16 = vadd.f32 %v1810_v5, %v1787_v0  ;;  %v4695_v41 = vpop.f32.mrf.mxu1 }
 0x1ca   : > { %v2068_v23 = vld [vmem:[#allocation3 + $0x50] sm:$0xff]  ;;  %v4706_v29 = vpop.f32.mrf.mxu0  ;;  %v2327_v24 = vld [vmem:[#allocation3 + $0x38] sm:$0xff] }
 0x1cb   : > { %2101 = vst.msk [vmem:[#allocation3 + $0x58] sm:$0xff] %vm779_vm2, %v2085_v11  ;;  %1842 = vst.msk [vmem:[#allocation3 + $0x70] sm:$0xff] %vm779_vm2, %v1826_v16  ;;  %v2084_v47 = vadd.f32 %v2068_v23, %v2029_v43  ;;  %v2337_v49 = vadd.f32 %v4706_v29, %v2321_v34  ;;  %v2049_v57 = vpop.f32.mrf.mxu1 }
 0x1cc   : > { %v2071_v53 = vld [vmem:[#allocation3 + $0x68] sm:$0xff]  ;;  %v2241_v55 = vpop.f32.mrf.mxu0  ;;  %v2326_v36 = vld [vmem:[#allocation3 + $0x30] sm:$0xff] }
 0x1cd   : > { %2100 = vst.msk [vmem:[#allocation3 + $0x50] sm:$0xff] %vm779_vm2, %v2084_v47  ;;  %2353 = vst.msk [vmem:[#allocation3 + $0x8] sm:$0xff] %vm779_vm2, %v2337_v49  ;;  %v2087_v25 = vadd.f32 %v4692_v52, %v2071_v53  ;;  %v2336_v35 = vadd.f32 %v2320_v40, %v2241_v55  ;;  %v4738_v54 = vpop.f32.mrf.mxu1 }
 0x1ce   : > { %v2070_v31 = vld [vmem:[#allocation3 + $0x60] sm:$0xff]  ;;  %v4709_v46 = vpop.f32.mrf.mxu0  ;;  %v2329_v44 = vld [vmem:[#allocation3 + $0x48] sm:$0xff] }
 0x1cf   : > { %2103 = vst.msk [vmem:[#allocation3 + $0x68] sm:$0xff] %vm779_vm2, %v2087_v25  ;;  %2352 = vst.msk [vmem:[#allocation3] sm:$0xff] %vm779_vm2, %v2336_v35  ;;  %v2086_v60 = vadd.f32 %v2070_v31, %v2039_v6  ;;  %v2339_v61 = vadd.f32 %v4709_v46, %v2323_v59  ;;  %v2503_v2 = vpop.f32.mrf.mxu1 }
 0x1d0   : > { %v2073_v28 = vld [vmem:[#allocation3 + $0x78] sm:$0xff]  ;;  %v2251_v62 = vpop.f32.mrf.mxu0  ;;  %v2328_v56 = vld [vmem:[#allocation3 + $0x40] sm:$0xff] }
 0x1d1   : > { %2102 = vst.msk [vmem:[#allocation3 + $0x60] sm:$0xff] %vm779_vm2, %v2086_v60  ;;  %2355 = vst.msk [vmem:[#allocation3 + $0x18] sm:$0xff] %vm779_vm2, %v2339_v61  ;;  %v2089_v3 = vadd.f32 %v4695_v41, %v2073_v28  ;;  %v2338_v4 = vadd.f32 %v2322_v1, %v2251_v62  ;;  %v4741_v10 = vpop.f32.mrf.mxu1 }
 0x1d2   : > { %v2072_v7 = vld [vmem:[#allocation3 + $0x70] sm:$0xff]  ;;  %v4712_v8 = vpop.f32.mrf.mxu0  ;;  %v2331_v11 = vld [vmem:[#allocation3 + $0x58] sm:$0xff] }
 0x1d3   : > { %2105 = vst.msk [vmem:[#allocation3 + $0x78] sm:$0xff] %vm779_vm2, %v2089_v3  ;;  %2354 = vst.msk [vmem:[#allocation3 + $0x10] sm:$0xff] %vm779_vm2, %v2338_v4  ;;  %v2088_v12 = vadd.f32 %v2072_v7, %v2049_v57  ;;  %v2341_v13 = vadd.f32 %v4712_v8, %v2325_v9  ;;  %v2513_v18 = vpop.f32.mrf.mxu1 }
 0x1d4   : > { %v2583_v14 = vld [vmem:[#allocation3 + $0x8] sm:$0xff]  ;;  %v2261_v15 = vpop.f32.mrf.mxu0  ;;  %v2330_v47 = vld [vmem:[#allocation3 + $0x50] sm:$0xff] }
 0x1d5   : > { %2104 = vst.msk [vmem:[#allocation3 + $0x70] sm:$0xff] %vm779_vm2, %v2088_v12  ;;  %2357 = vst.msk [vmem:[#allocation3 + $0x28] sm:$0xff] %vm779_vm2, %v2341_v13  ;;  %v2599_v19 = vadd.f32 %v4738_v54, %v2583_v14  ;;  %v2340_v20 = vadd.f32 %v2324_v17, %v2261_v15  ;;  %v4744_v26 = vpop.f32.mrf.mxu1 }
 0x1d6   : > { %v2582_v21 = vld [vmem:[#allocation3] sm:$0xff]  ;;  %v4715_v22 = vpop.f32.mrf.mxu0  ;;  %v2333_v25 = vld [vmem:[#allocation3 + $0x68] sm:$0xff] }
 0x1d7   : > { %2615 = vst.msk [vmem:[#allocation3 + $0x8] sm:$0xff] %vm779_vm2, %v2599_v19  ;;  %2356 = vst.msk [vmem:[#allocation3 + $0x20] sm:$0xff] %vm779_vm2, %v2340_v20  ;;  %v2598_v27 = vadd.f32 %v2582_v21, %v2503_v2  ;;  %v2343_v30 = vadd.f32 %v4715_v22, %v2327_v24  ;;  %v2523_v37 = vpop.f32.mrf.mxu1 }
 0x1d8   : > { %v2585_v32 = vld [vmem:[#allocation3 + $0x18] sm:$0xff]  ;;  %v2271_v33 = vpop.f32.mrf.mxu0  ;;  %v2332_v60 = vld [vmem:[#allocation3 + $0x60] sm:$0xff] }
 0x1d9   : > { %2614 = vst.msk [vmem:[#allocation3] sm:$0xff] %vm779_vm2, %v2598_v27  ;;  %2359 = vst.msk [vmem:[#allocation3 + $0x38] sm:$0xff] %vm779_vm2, %v2343_v30  ;;  %v2601_v38 = vadd.f32 %v4741_v10, %v2585_v32  ;;  %v2342_v39 = vadd.f32 %v2326_v36, %v2271_v33  ;;  %v4747_v45 = vpop.f32.mrf.mxu1 }
 0x1da   : > { %v2584_v42 = vld [vmem:[#allocation3 + $0x10] sm:$0xff]  ;;  %v4718_v43 = vpop.f32.mrf.mxu0  ;;  %v2335_v3 = vld [vmem:[#allocation3 + $0x78] sm:$0xff] }
 0x1db   : > { %2617 = vst.msk [vmem:[#allocation3 + $0x18] sm:$0xff] %vm779_vm2, %v2601_v38  ;;  %2358 = vst.msk [vmem:[#allocation3 + $0x30] sm:$0xff] %vm779_vm2, %v2342_v39  ;;  %v2600_v48 = vadd.f32 %v2584_v42, %v2513_v18  ;;  %v2345_v50 = vadd.f32 %v4718_v43, %v2329_v44  ;;  %v2533_v58 = vpop.f32.mrf.mxu1 }
 0x1dc   : > { %v2587_v51 = vld [vmem:[#allocation3 + $0x28] sm:$0xff]  ;;  %v2281_v52 = vpop.f32.mrf.mxu0  ;;  %v2334_v12 = vld [vmem:[#allocation3 + $0x70] sm:$0xff] }
 0x1dd   : > { %2616 = vst.msk [vmem:[#allocation3 + $0x10] sm:$0xff] %vm779_vm2, %v2600_v48  ;;  %2361 = vst.msk [vmem:[#allocation3 + $0x48] sm:$0xff] %vm779_vm2, %v2345_v50  ;;  %v2603_v63 = vadd.f32 %v4744_v26, %v2587_v51  ;;  %v2344_v0 = vadd.f32 %v2328_v56, %v2281_v52  ;;  %v4750_v16 = vpop.f32.mrf.mxu1 }
 0x1de   : > { %v2586_v5 = vld [vmem:[#allocation3 + $0x20] sm:$0xff]  ;;  %v4721_v6 = vpop.f32.mrf.mxu0  ;;  %v2845_v19 = vld [vmem:[#allocation3 + $0x8] sm:$0xff] }
 0x1df   : > { %2619 = vst.msk [vmem:[#allocation3 + $0x28] sm:$0xff] %vm779_vm2, %v2603_v63  ;;  %2360 = vst.msk [vmem:[#allocation3 + $0x40] sm:$0xff] %vm779_vm2, %v2344_v0  ;;  %v2602_v23 = vadd.f32 %v2586_v5, %v2523_v37  ;;  %v2347_v29 = vadd.f32 %v4721_v6, %v2331_v11  ;;  %v2543_v49 = vpop.f32.mrf.mxu1 }
 0x1e0   : > { %v2589_v34 = vld [vmem:[#allocation3 + $0x38] sm:$0xff]  ;;  %v2291_v41 = vpop.f32.mrf.mxu0  ;;  %v2844_v27 = vld [vmem:[#allocation3] sm:$0xff] }
 0x1e1   : > { %2618 = vst.msk [vmem:[#allocation3 + $0x20] sm:$0xff] %vm779_vm2, %v2602_v23  ;;  %2363 = vst.msk [vmem:[#allocation3 + $0x58] sm:$0xff] %vm779_vm2, %v2347_v29  ;;  %v2605_v53 = vadd.f32 %v4747_v45, %v2589_v34  ;;  %v2346_v55 = vadd.f32 %v2330_v47, %v2291_v41  ;;  %v4753_v35 = vpop.f32.mrf.mxu1 }
 0x1e2   : > { %v2588_v40 = vld [vmem:[#allocation3 + $0x30] sm:$0xff]  ;;  %v4724_v57 = vpop.f32.mrf.mxu0  ;;  %v2847_v38 = vld [vmem:[#allocation3 + $0x18] sm:$0xff] }
 0x1e3   : > { %2621 = vst.msk [vmem:[#allocation3 + $0x38] sm:$0xff] %vm779_vm2, %v2605_v53  ;;  %2362 = vst.msk [vmem:[#allocation3 + $0x50] sm:$0xff] %vm779_vm2, %v2346_v55  ;;  %v2604_v31 = vadd.f32 %v2588_v40, %v2533_v58  ;;  %v2349_v46 = vadd.f32 %v4724_v57, %v2333_v25  ;;  %v2553_v61 = vpop.f32.mrf.mxu1 }
 0x1e4   : > { %v2591_v59 = vld [vmem:[#allocation3 + $0x48] sm:$0xff]  ;;  %v2301_v54 = vpop.f32.mrf.mxu0  ;;  %v2846_v48 = vld [vmem:[#allocation3 + $0x10] sm:$0xff] }
 0x1e5   : > { %2620 = vst.msk [vmem:[#allocation3 + $0x30] sm:$0xff] %vm779_vm2, %v2604_v31  ;;  %2365 = vst.msk [vmem:[#allocation3 + $0x68] sm:$0xff] %vm779_vm2, %v2349_v46  ;;  %v2607_v28 = vadd.f32 %v4750_v16, %v2591_v59  ;;  %v2348_v62 = vadd.f32 %v2332_v60, %v2301_v54  ;;  %v4756_v4 = vpop.f32.mrf.mxu1 }
 0x1e6   : > { %v2590_v1 = vld [vmem:[#allocation3 + $0x40] sm:$0xff]  ;;  %v4727_v2 = vpop.f32.mrf.mxu0  ;;  %v2849_v63 = vld [vmem:[#allocation3 + $0x28] sm:$0xff] }
 0x1e7   : > { %2623 = vst.msk [vmem:[#allocation3 + $0x48] sm:$0xff] %vm779_vm2, %v2607_v28  ;;  %2364 = vst.msk [vmem:[#allocation3 + $0x60] sm:$0xff] %vm779_vm2, %v2348_v62  ;;  %v2606_v7 = vadd.f32 %v2590_v1, %v2543_v49  ;;  %v2351_v8 = vadd.f32 %v4727_v2, %v2335_v3  ;;  %v2563_v13 = vpop.f32.mrf.mxu1 }
 0x1e8   : > { %v2593_v9 = vld [vmem:[#allocation3 + $0x58] sm:$0xff]  ;;  %v2311_v10 = vpop.f32.mrf.mxu0  ;;  %v2848_v23 = vld [vmem:[#allocation3 + $0x20] sm:$0xff] }
 0x1e9   : > { %2622 = vst.msk [vmem:[#allocation3 + $0x40] sm:$0xff] %vm779_vm2, %v2606_v7  ;;  %2367 = vst.msk [vmem:[#allocation3 + $0x78] sm:$0xff] %vm779_vm2, %v2351_v8  ;;  %v2609_v14 = vadd.f32 %v4753_v35, %v2593_v9  ;;  %v2350_v15 = vadd.f32 %v2334_v12, %v2311_v10  ;;  %v4759_v20 = vpop.f32.mrf.mxu1 }
 0x1ea   : > { %v2592_v17 = vld [vmem:[#allocation3 + $0x50] sm:$0xff]  ;;  %v4770_v18 = vpop.f32.mrf.mxu0  ;;  %v2851_v53 = vld [vmem:[#allocation3 + $0x38] sm:$0xff] }
 0x1eb   : > { %2625 = vst.msk [vmem:[#allocation3 + $0x58] sm:$0xff] %vm779_vm2, %v2609_v14  ;;  %2366 = vst.msk [vmem:[#allocation3 + $0x70] sm:$0xff] %vm779_vm2, %v2350_v15  ;;  %v2608_v21 = vadd.f32 %v2592_v17, %v2553_v61  ;;  %v2861_v22 = vadd.f32 %v4770_v18, %v2845_v19  ;;  %v2573_v30 = vpop.f32.mrf.mxu1 }
 0x1ec   : > { %v2595_v24 = vld [vmem:[#allocation3 + $0x68] sm:$0xff]  ;;  %v2765_v26 = vpop.f32.mrf.mxu0  ;;  %v2850_v31 = vld [vmem:[#allocation3 + $0x30] sm:$0xff] }
 0x1ed   : > { %2624 = vst.msk [vmem:[#allocation3 + $0x50] sm:$0xff] %vm779_vm2, %v2608_v21  ;;  %2877 = vst.msk [vmem:[#allocation3 + $0x8] sm:$0xff] %vm779_vm2, %v2861_v22  ;;  %v2611_v32 = vadd.f32 %v4756_v4, %v2595_v24  ;;  %v2860_v33 = vadd.f32 %v2844_v27, %v2765_v26  ;;  %v4802_v39 = vpop.f32.mrf.mxu1 }
 0x1ee   : > { %v2594_v36 = vld [vmem:[#allocation3 + $0x60] sm:$0xff]  ;;  %v4773_v37 = vpop.f32.mrf.mxu0  ;;  %v2853_v28 = vld [vmem:[#allocation3 + $0x48] sm:$0xff] }
 0x1ef   : > { %2627 = vst.msk [vmem:[#allocation3 + $0x68] sm:$0xff] %vm779_vm2, %v2611_v32  ;;  %2876 = vst.msk [vmem:[#allocation3] sm:$0xff] %vm779_vm2, %v2860_v33  ;;  %v2610_v42 = vadd.f32 %v2594_v36, %v2563_v13  ;;  %v2863_v43 = vadd.f32 %v4773_v37, %v2847_v38  ;;  %v3028_v50 = vpop.f32.mrf.mxu1 }
 0x1f0   : > { %v2597_v44 = vld [vmem:[#allocation3 + $0x78] sm:$0xff]  ;;  %v2775_v45 = vpop.f32.mrf.mxu0  ;;  %v2852_v7 = vld [vmem:[#allocation3 + $0x40] sm:$0xff] }
 0x1f1   : > { %2626 = vst.msk [vmem:[#allocation3 + $0x60] sm:$0xff] %vm779_vm2, %v2610_v42  ;;  %2879 = vst.msk [vmem:[#allocation3 + $0x18] sm:$0xff] %vm779_vm2, %v2863_v43  ;;  %v2613_v51 = vadd.f32 %v4759_v20, %v2597_v44  ;;  %v2862_v52 = vadd.f32 %v2846_v48, %v2775_v45  ;;  %v4805_v0 = vpop.f32.mrf.mxu1 }
 0x1f2   : > { %v2596_v56 = vld [vmem:[#allocation3 + $0x70] sm:$0xff]  ;;  %v4776_v58 = vpop.f32.mrf.mxu0  ;;  %v2855_v14 = vld [vmem:[#allocation3 + $0x58] sm:$0xff] }
 0x1f3   : > { %2629 = vst.msk [vmem:[#allocation3 + $0x78] sm:$0xff] %vm779_vm2, %v2613_v51  ;;  %2878 = vst.msk [vmem:[#allocation3 + $0x10] sm:$0xff] %vm779_vm2, %v2862_v52  ;;  %v2612_v5 = vadd.f32 %v2596_v56, %v2573_v30  ;;  %v2865_v6 = vadd.f32 %v4776_v58, %v2849_v63  ;;  %v3038_v29 = vpop.f32.mrf.mxu1 }
 0x1f4   : > { %v3108_v11 = vld [vmem:[#allocation3 + $0x8] sm:$0xff]  ;;  %v2785_v16 = vpop.f32.mrf.mxu0  ;;  %v2854_v21 = vld [vmem:[#allocation3 + $0x50] sm:$0xff] }
 0x1f5   : > { %2628 = vst.msk [vmem:[#allocation3 + $0x70] sm:$0xff] %vm779_vm2, %v2612_v5  ;;  %2881 = vst.msk [vmem:[#allocation3 + $0x28] sm:$0xff] %vm779_vm2, %v2865_v6  ;;  %v3124_v34 = vadd.f32 %v4802_v39, %v3108_v11  ;;  %v2864_v41 = vadd.f32 %v2848_v23, %v2785_v16  ;;  %v4808_v55 = vpop.f32.mrf.mxu1 }
 0x1f6   : > { %v3107_v47 = vld [vmem:[#allocation3] sm:$0xff]  ;;  %v4779_v49 = vpop.f32.mrf.mxu0  ;;  %v2857_v32 = vld [vmem:[#allocation3 + $0x68] sm:$0xff] }
 0x1f7   : > { %3140 = vst.msk [vmem:[#allocation3 + $0x8] sm:$0xff] %vm779_vm2, %v3124_v34  ;;  %2880 = vst.msk [vmem:[#allocation3 + $0x20] sm:$0xff] %vm779_vm2, %v2864_v41  ;;  %v3123_v40 = vadd.f32 %v3107_v47, %v3028_v50  ;;  %v2867_v57 = vadd.f32 %v4779_v49, %v2851_v53  ;;  %v3048_v46 = vpop.f32.mrf.mxu1 }
 0x1f8   : > { %v3110_v25 = vld [vmem:[#allocation3 + $0x18] sm:$0xff]  ;;  %v2795_v35 = vpop.f32.mrf.mxu0  ;;  %v2856_v42 = vld [vmem:[#allocation3 + $0x60] sm:$0xff] }
 0x1f9   : > { %3139 = vst.msk [vmem:[#allocation3] sm:$0xff] %vm779_vm2, %v3123_v40  ;;  %2883 = vst.msk [vmem:[#allocation3 + $0x38] sm:$0xff] %vm779_vm2, %v2867_v57  ;;  %v3126_v59 = vadd.f32 %v4805_v0, %v3110_v25  ;;  %v2866_v54 = vadd.f32 %v2850_v31, %v2795_v35  ;;  %v4811_v62 = vpop.f32.mrf.mxu1 }
 0x1fa   : > { %v3109_v60 = vld [vmem:[#allocation3 + $0x10] sm:$0xff]  ;;  %v4782_v61 = vpop.f32.mrf.mxu0  ;;  %v2859_v51 = vld [vmem:[#allocation3 + $0x78] sm:$0xff] }
 0x1fb   : > { %3142 = vst.msk [vmem:[#allocation3 + $0x18] sm:$0xff] %vm779_vm2, %v3126_v59  ;;  %2882 = vst.msk [vmem:[#allocation3 + $0x30] sm:$0xff] %vm779_vm2, %v2866_v54  ;;  %v3125_v1 = vadd.f32 %v3109_v60, %v3038_v29  ;;  %v2869_v2 = vadd.f32 %v4782_v61, %v2853_v28  ;;  %v3058_v8 = vpop.f32.mrf.mxu1  ;;  %v6389_v28 = vpop.permute.xlu1 %3747 }
 0x1fc   : > { %v3112_v3 = vld [vmem:[#allocation3 + $0x28] sm:$0xff]  ;;  %v2805_v4 = vpop.f32.mrf.mxu0  ;;  %v2858_v5 = vld [vmem:[#allocation3 + $0x70] sm:$0xff] }
 0x1fd   : > { %3141 = vst.msk [vmem:[#allocation3 + $0x10] sm:$0xff] %vm779_vm2, %v3125_v1  ;;  %2885 = vst.msk [vmem:[#allocation3 + $0x48] sm:$0xff] %vm779_vm2, %v2869_v2  ;;  %v3128_v9 = vadd.f32 %v4808_v55, %v3112_v3  ;;  %v2868_v10 = vadd.f32 %v2852_v7, %v2805_v4  ;;  %v4814_v15 = vpop.f32.mrf.mxu1 }
 0x1fe   : > { %v3111_v12 = vld [vmem:[#allocation3 + $0x20] sm:$0xff]  ;;  %v4785_v13 = vpop.f32.mrf.mxu0  ;;  %v3370_v34 = vld [vmem:[#allocation3 + $0x8] sm:$0xff] }
 0x1ff   : > { %3144 = vst.msk [vmem:[#allocation3 + $0x28] sm:$0xff] %vm779_vm2, %v3128_v9  ;;  %2884 = vst.msk [vmem:[#allocation3 + $0x40] sm:$0xff] %vm779_vm2, %v2868_v10  ;;  %v3127_v17 = vadd.f32 %v3111_v12, %v3048_v46  ;;  %v2871_v18 = vadd.f32 %v4785_v13, %v2855_v14  ;;  %v3068_v22 = vpop.f32.mrf.mxu1 }
 0x200   : > { %v3114_v19 = vld [vmem:[#allocation3 + $0x38] sm:$0xff]  ;;  %v2815_v20 = vpop.f32.mrf.mxu0  ;;  %v3369_v40 = vld [vmem:[#allocation3] sm:$0xff] }
 0x201   : > { %3143 = vst.msk [vmem:[#allocation3 + $0x20] sm:$0xff] %vm779_vm2, %v3127_v17  ;;  %2887 = vst.msk [vmem:[#allocation3 + $0x58] sm:$0xff] %vm779_vm2, %v2871_v18  ;;  %v3130_v24 = vadd.f32 %v4811_v62, %v3114_v19  ;;  %v2870_v26 = vadd.f32 %v2854_v21, %v2815_v20  ;;  %v4817_v33 = vpop.f32.mrf.mxu1 }
 0x202   : > { %v3113_v27 = vld [vmem:[#allocation3 + $0x30] sm:$0xff]  ;;  %v4788_v30 = vpop.f32.mrf.mxu0  ;;  %v3372_v59 = vld [vmem:[#allocation3 + $0x18] sm:$0xff] }
 0x203   : > { %3146 = vst.msk [vmem:[#allocation3 + $0x38] sm:$0xff] %vm779_vm2, %v3130_v24  ;;  %2886 = vst.msk [vmem:[#allocation3 + $0x50] sm:$0xff] %vm779_vm2, %v2870_v26  ;;  %v3129_v36 = vadd.f32 %v3113_v27, %v3058_v8  ;;  %v2873_v37 = vadd.f32 %v4788_v30, %v2857_v32  ;;  %v3078_v43 = vpop.f32.mrf.mxu1  ;;  %v6393_v8 = vpop.permute.xlu0 %3743 }
 0x204   : > { %v3116_v38 = vld [vmem:[#allocation3 + $0x48] sm:$0xff]  ;;  %v2825_v39 = vpop.f32.mrf.mxu0  ;;  %v3371_v2 = vld [vmem:[#allocation3 + $0x10] sm:$0xff]  ;;  %v6399_v24 = vpop.permute.xlu1 %3749 }
 0x205   : > { %3145 = vst.msk [vmem:[#allocation3 + $0x30] sm:$0xff] %vm779_vm2, %v3129_v36  ;;  %2889 = vst.msk [vmem:[#allocation3 + $0x68] sm:$0xff] %vm779_vm2, %v2873_v37  ;;  %v3132_v44 = vadd.f32 %v4814_v15, %v3116_v38  ;;  %v2872_v45 = vadd.f32 %v2856_v42, %v2825_v39  ;;  %v4820_v52 = vpop.f32.mrf.mxu1 }
 0x206   : > { %v3115_v48 = vld [vmem:[#allocation3 + $0x40] sm:$0xff]  ;;  %v4791_v50 = vpop.f32.mrf.mxu0  ;;  %v3374_v12 = vld [vmem:[#allocation3 + $0x28] sm:$0xff] }
 0x207   : > { %3148 = vst.msk [vmem:[#allocation3 + $0x48] sm:$0xff] %vm779_vm2, %v3132_v44  ;;  %2888 = vst.msk [vmem:[#allocation3 + $0x60] sm:$0xff] %vm779_vm2, %v2872_v45  ;;  %v3131_v56 = vadd.f32 %v3115_v48, %v3068_v22  ;;  %v2875_v58 = vadd.f32 %v4791_v50, %v2859_v51  ;;  %v3088_v6 = vpop.f32.mrf.mxu1  ;;  %v3746_v37 = vpop.permute.xlu0 %3745 }
 0x208   : > { %v3118_v63 = vld [vmem:[#allocation3 + $0x58] sm:$0xff]  ;;  %v2835_v0 = vpop.f32.mrf.mxu0  ;;  %v3373_v19 = vld [vmem:[#allocation3 + $0x20] sm:$0xff] }
 0x209   : > { %3147 = vst.msk [vmem:[#allocation3 + $0x40] sm:$0xff] %vm779_vm2, %v3131_v56  ;;  %2891 = vst.msk [vmem:[#allocation3 + $0x78] sm:$0xff] %vm779_vm2, %v2875_v58  ;;  %v3134_v11 = vadd.f32 %v4817_v33, %v3118_v63  ;;  %v2874_v16 = vadd.f32 %v2858_v5, %v2835_v0  ;;  %v4823_v41 = vpop.f32.mrf.mxu1  ;;  %v6407_v63 = vpop.permute.xlu1 %3753 }
 0x20a   : > { %v3117_v23 = vld [vmem:[#allocation3 + $0x50] sm:$0xff]  ;;  %v4834_v29 = vpop.f32.mrf.mxu0  ;;  %v3376_v30 = vld [vmem:[#allocation3 + $0x38] sm:$0xff] }
 0x20b   : > { %3150 = vst.msk [vmem:[#allocation3 + $0x58] sm:$0xff] %vm779_vm2, %v3134_v11  ;;  %2890 = vst.msk [vmem:[#allocation3 + $0x70] sm:$0xff] %vm779_vm2, %v2874_v16  ;;  %v3133_v47 = vadd.f32 %v3117_v23, %v3078_v43  ;;  %v3386_v49 = vadd.f32 %v4834_v29, %v3370_v34  ;;  %v3098_v57 = vpop.f32.mrf.mxu1  ;;  %v6411_v29 = vpop.permute.xlu0 %3751 }
 0x20c   : > { %v3120_v53 = vld [vmem:[#allocation3 + $0x68] sm:$0xff]  ;;  %v3290_v55 = vpop.f32.mrf.mxu0  ;;  %v3375_v42 = vld [vmem:[#allocation3 + $0x30] sm:$0xff] }
 0x20d   : > { %3149 = vst.msk [vmem:[#allocation3 + $0x50] sm:$0xff] %vm779_vm2, %v3133_v47  ;;  %3402 = vst.msk [vmem:[#allocation3 + $0x8] sm:$0xff] %vm779_vm2, %v3386_v49  ;;  %v3136_v25 = vadd.f32 %v4820_v52, %v3120_v53  ;;  %v3385_v35 = vadd.f32 %v3369_v40, %v3290_v55  ;;  %v4866_v54 = vpop.f32.mrf.mxu1 }
 0x20e   : > { %v3119_v31 = vld [vmem:[#allocation3 + $0x60] sm:$0xff]  ;;  %v4837_v46 = vpop.f32.mrf.mxu0  ;;  %v3378_v51 = vld [vmem:[#allocation3 + $0x48] sm:$0xff] }
 0x20f   : > { %3152 = vst.msk [vmem:[#allocation3 + $0x68] sm:$0xff] %vm779_vm2, %v3136_v25  ;;  %3401 = vst.msk [vmem:[#allocation3] sm:$0xff] %vm779_vm2, %v3385_v35  ;;  %v3135_v60 = vadd.f32 %v3119_v31, %v3088_v6  ;;  %v3388_v61 = vadd.f32 %v4837_v46, %v3372_v59  ;;  %v3552_v3 = vpop.f32.mrf.mxu1 }
 0x210   : > { %v3122_v62 = vld [vmem:[#allocation3 + $0x78] sm:$0xff]  ;;  %v3300_v1 = vpop.f32.mrf.mxu0  ;;  %v3377_v6 = vld [vmem:[#allocation3 + $0x40] sm:$0xff] }
 0x211   : > { %3151 = vst.msk [vmem:[#allocation3 + $0x60] sm:$0xff] %vm779_vm2, %v3135_v60  ;;  %3404 = vst.msk [vmem:[#allocation3 + $0x18] sm:$0xff] %vm779_vm2, %v3388_v61  ;;  %v3138_v4 = vadd.f32 %v4823_v41, %v3122_v62  ;;  %v3387_v7 = vadd.f32 %v3371_v2, %v3300_v1  ;;  %v4869_v13 = vpop.f32.mrf.mxu1  ;;  %v3758_v60 = vpop.permute.xlu1 %3757 }
 0x212   : > { %v3121_v9 = vld [vmem:[#allocation3 + $0x70] sm:$0xff]  ;;  %v4840_v10 = vpop.f32.mrf.mxu0  ;;  %v3380_v47 = vld [vmem:[#allocation3 + $0x58] sm:$0xff] }
 0x213   : > { %3154 = vst.msk [vmem:[#allocation3 + $0x78] sm:$0xff] %vm779_vm2, %v3138_v4  ;;  %3403 = vst.msk [vmem:[#allocation3 + $0x10] sm:$0xff] %vm779_vm2, %v3387_v7  ;;  %v3137_v14 = vadd.f32 %v3121_v9, %v3098_v57  ;;  %v3390_v15 = vadd.f32 %v4840_v10, %v3374_v12  ;;  %v3562_v20 = vpop.f32.mrf.mxu1  ;;  %v3756_v9 = vpop.permute.xlu0 %3755 }
 0x214   : > { %v3632_v17 = vld [vmem:[#allocation3 + $0x8] sm:$0xff]  ;;  %v3310_v18 = vpop.f32.mrf.mxu0  ;;  %v3379_v35 = vld [vmem:[#allocation3 + $0x50] sm:$0xff] }
 0x215   : > { %3153 = vst.msk [vmem:[#allocation3 + $0x70] sm:$0xff] %vm779_vm2, %v3137_v14  ;;  %3406 = vst.msk [vmem:[#allocation3 + $0x28] sm:$0xff] %vm779_vm2, %v3390_v15  ;;  %v3648_v21 = vadd.f32 %v4866_v54, %v3632_v17  ;;  %v3389_v22 = vadd.f32 %v3373_v19, %v3310_v18  ;;  %v4872_v32 = vpop.f32.mrf.mxu1 }
 0x216   : > { %v3631_v26 = vld [vmem:[#allocation3] sm:$0xff]  ;;  %v4843_v27 = vpop.f32.mrf.mxu0  ;;  %v3382_v1 = vld [vmem:[#allocation3 + $0x68] sm:$0xff] }
 0x217   : > { %3664 = vst.msk [vmem:[#allocation3 + $0x8] sm:$0xff] %vm779_vm2, %v3648_v21  ;;  %3405 = vst.msk [vmem:[#allocation3 + $0x20] sm:$0xff] %vm779_vm2, %v3389_v22  ;;  %v3647_v33 = vadd.f32 %v3631_v26, %v3552_v3  ;;  %v3392_v36 = vadd.f32 %v4843_v27, %v3376_v30  ;;  %v3572_v43 = vpop.f32.mrf.mxu1  ;;  %v3762_v27 = vpop.permute.xlu1 %3761 }
 0x218   : > { %v3634_v38 = vld [vmem:[#allocation3 + $0x18] sm:$0xff]  ;;  %v3320_v39 = vpop.f32.mrf.mxu0  ;;  %v3381_v14 = vld [vmem:[#allocation3 + $0x60] sm:$0xff] }
 0x219   : > { %3663 = vst.msk [vmem:[#allocation3] sm:$0xff] %vm779_vm2, %v3647_v33  ;;  %3408 = vst.msk [vmem:[#allocation3 + $0x38] sm:$0xff] %vm779_vm2, %v3392_v36  ;;  %v3650_v44 = vadd.f32 %v4869_v13, %v3634_v38  ;;  %v3391_v45 = vadd.f32 %v3375_v42, %v3320_v39  ;;  %v4875_v52 = vpop.f32.mrf.mxu1  ;;  %v3760_v38 = vpop.permute.xlu0 %3759 }
 0x21a   : > { %v3633_v48 = vld [vmem:[#allocation3 + $0x10] sm:$0xff]  ;;  %v4846_v50 = vpop.f32.mrf.mxu0 }
 0x21b   : > { %3666 = vst.msk [vmem:[#allocation3 + $0x18] sm:$0xff] %vm779_vm2, %v3650_v44  ;;  %3407 = vst.msk [vmem:[#allocation3 + $0x30] sm:$0xff] %vm779_vm2, %v3391_v45  ;;  %v3649_v56 = vadd.f32 %v3633_v48, %v3562_v20  ;;  %v3394_v58 = vadd.f32 %v4846_v50, %v3378_v51  ;;  %v3582_v11 = vpop.f32.mrf.mxu1  ;;  %v3384_v20 = vld [vmem:[#allocation3 + $0x78] sm:$0xff]  ;;  %v3766_v51 = vpop.permute.xlu1 %3765 }
 0x21c   : > { %v3636_v0 = vld [vmem:[#allocation3 + $0x28] sm:$0xff]  ;;  %v3330_v5 = vpop.f32.mrf.mxu0  ;;  %v3383_v33 = vld [vmem:[#allocation3 + $0x70] sm:$0xff] }
 0x21d   : > { %3665 = vst.msk [vmem:[#allocation3 + $0x10] sm:$0xff] %vm779_vm2, %v3649_v56  ;;  %3410 = vst.msk [vmem:[#allocation3 + $0x48] sm:$0xff] %vm779_vm2, %v3394_v58  ;;  %v3652_v16 = vadd.f32 %v4872_v32, %v3636_v0  ;;  %v3393_v23 = vadd.f32 %v3377_v6, %v3330_v5  ;;  %v4878_v49 = vpop.f32.mrf.mxu1  ;;  %v3764_v0 = vpop.permute.xlu0 %3763 }
 0x21e   : > { %v3635_v34 = vld [vmem:[#allocation3 + $0x20] sm:$0xff]  ;;  %v4849_v41 = vpop.f32.mrf.mxu0  ;;  %v3680_v53 = vld [vmem:[#allocation3 + $0x8] sm:$0xff] }
 0x21f   : > { %3668 = vst.msk [vmem:[#allocation3 + $0x28] sm:$0xff] %vm779_vm2, %v3652_v16  ;;  %3409 = vst.msk [vmem:[#allocation3 + $0x40] sm:$0xff] %vm779_vm2, %v3393_v23  ;;  %v3651_v55 = vadd.f32 %v3635_v34, %v3572_v43  ;;  %v3396_v40 = vadd.f32 %v4849_v41, %v3380_v47  ;;  %v3592_v46 = vpop.f32.mrf.mxu1  ;;  %v3770_v41 = vpop.permute.xlu1 %3769 }
 0x220   : > { %3696 = vst.msk [vmem:[%s5461_s25 + $0x8] sm:$0xff] %vm779_vm2, %v3680_v53  ;;  %v3638_v57 = vld [vmem:[#allocation3 + $0x38] sm:$0xff]  ;;  %v3340_v25 = vpop.f32.mrf.mxu0  ;;  %v3679_v31 = vld [vmem:[#allocation3] sm:$0xff] }
 0x221   : > { %3793 = vst.msk [vmem:[%s5461_s25 + $0x8] sm:$0xff] %vm3791_vm3, %v3746_v37  ;;  %v3654_v59 = vadd.f32 %v4875_v52, %v3638_v57  ;;  %v3395_v54 = vadd.f32 %v3379_v35, %v3340_v25  ;;  %v4881_v3 = vpop.f32.mrf.mxu1 }
 0x222   : > { %3667 = vst.msk [vmem:[#allocation3 + $0x20] sm:$0xff] %vm779_vm2, %v3651_v55  ;;  %3412 = vst.msk [vmem:[#allocation3 + $0x58] sm:$0xff] %vm779_vm2, %v3396_v40  ;;  %v3637_v61 = vld [vmem:[#allocation3 + $0x30] sm:$0xff]  ;;  %v4852_v62 = vpop.f32.mrf.mxu0  ;;  %v3682_v2 = vld [vmem:[#allocation3 + $0x18] sm:$0xff] }
 0x223   : > { %3695 = vst.msk [vmem:[%s5461_s25] sm:$0xff] %vm779_vm2, %v3679_v31  ;;  %3670 = vst.msk [vmem:[#allocation3 + $0x38] sm:$0xff] %vm779_vm2, %v3654_v59  ;;  %v3653_v4 = vadd.f32 %v3637_v61, %v3582_v11  ;;  %v3398_v7 = vadd.f32 %v4852_v62, %v3382_v1  ;;  %v3774_v40 = vpop.permute.xlu1 %3773 }
 0x224   : > { %3792 = vst.msk [vmem:[%s5461_s25] sm:$0xff] %vm3791_vm3, %v6393_v8  ;;  %v3681_v10 = vld [vmem:[#allocation3 + $0x10] sm:$0xff]  ;;  %v3640_v12 = vld [vmem:[#allocation3 + $0x48] sm:$0xff]  ;;  %v3350_v13 = vpop.f32.mrf.mxu0  ;;  %v3602_v8 = vpop.f32.mrf.mxu1 }
 0x225   : > { %3411 = vst.msk [vmem:[#allocation3 + $0x50] sm:$0xff] %vm779_vm2, %v3395_v54  ;;  %3698 = vst.msk [vmem:[%s5461_s25 + $0x18] sm:$0xff] %vm779_vm2, %v3682_v2  ;;  %v3656_v15 = vadd.f32 %v4878_v49, %v3640_v12  ;;  %v3397_v17 = vadd.f32 %v3381_v14, %v3350_v13  ;;  %v3768_v49 = vpop.permute.xlu0 %3767 }
 0x226   : > { %3795 = vst.msk [vmem:[%s5461_s25 + $0x18] sm:$0xff] %vm3791_vm3, %v6399_v24  ;;  %v3639_v18 = vld [vmem:[#allocation3 + $0x40] sm:$0xff]  ;;  %v4855_v19 = vpop.f32.mrf.mxu0  ;;  %v3684_v21 = vld [vmem:[#allocation3 + $0x28] sm:$0xff]  ;;  %v4884_v22 = vpop.f32.mrf.mxu1 }
 0x227   : > { %3669 = vst.msk [vmem:[#allocation3 + $0x30] sm:$0xff] %vm779_vm2, %v3653_v4  ;;  %3697 = vst.msk [vmem:[%s5461_s25 + $0x10] sm:$0xff] %vm779_vm2, %v3681_v10  ;;  %v3655_v24 = vadd.f32 %v3639_v18, %v3592_v46  ;;  %v3400_v26 = vadd.f32 %v4855_v19, %v3384_v20 }
 0x228   : > { %3414 = vst.msk [vmem:[#allocation3 + $0x68] sm:$0xff] %vm779_vm2, %v3398_v7  ;;  %3672 = vst.msk [vmem:[#allocation3 + $0x48] sm:$0xff] %vm779_vm2, %v3656_v15  ;;  %v3360_v32 = vpop.f32.mrf.mxu0  ;;  %v3612_v42 = vpop.f32.mrf.mxu1 }
 0x229   : > { %3794 = vst.msk [vmem:[%s5461_s25 + $0x10] sm:$0xff] %vm3791_vm3, %v6389_v28  ;;  %v3642_v30 = vld [vmem:[#allocation3 + $0x58] sm:$0xff]  ;;  %v3683_v28 = vld [vmem:[#allocation3 + $0x20] sm:$0xff]  ;;  %v3399_v37 = vadd.f32 %v3383_v33, %v3360_v32  ;;  %v3772_v25 = vpop.permute.xlu0 %3771 }
 0x22a   : > { %3413 = vst.msk [vmem:[#allocation3 + $0x60] sm:$0xff] %vm779_vm2, %v3397_v17  ;;  %3700 = vst.msk [vmem:[%s5461_s25 + $0x28] sm:$0xff] %vm779_vm2, %v3684_v21  ;;  %v3658_v36 = vadd.f32 %v4881_v3, %v3642_v30  ;;  %v3686_v43 = vld [vmem:[#allocation3 + $0x38] sm:$0xff]  ;;  %v4887_v56 = vpop.f32.mrf.mxu1 }
 0x22b   : > { %3797 = vst.msk [vmem:[%s5461_s25 + $0x28] sm:$0xff] %vm3791_vm3, %v6407_v63 }
 0x22c   : > { %3671 = vst.msk [vmem:[#allocation3 + $0x40] sm:$0xff] %vm779_vm2, %v3655_v24  ;;  %3416 = vst.msk [vmem:[#allocation3 + $0x78] sm:$0xff] %vm779_vm2, %v3400_v26  ;;  %v3641_v39 = vld [vmem:[#allocation3 + $0x50] sm:$0xff]  ;;  %v3622_v16 = vpop.f32.mrf.mxu1 }
 0x22d   : > { %3699 = vst.msk [vmem:[%s5461_s25 + $0x20] sm:$0xff] %vm779_vm2, %v3683_v28  ;;  %3674 = vst.msk [vmem:[#allocation3 + $0x58] sm:$0xff] %vm779_vm2, %v3658_v36  ;;  %v3657_v44 = vadd.f32 %v3641_v39, %v3602_v8 }
 0x22e   : > { %3796 = vst.msk [vmem:[%s5461_s25 + $0x20] sm:$0xff] %vm3791_vm3, %v6411_v29  ;;  %v3685_v48 = vld [vmem:[#allocation3 + $0x30] sm:$0xff] }
 0x22f   : > { %3415 = vst.msk [vmem:[#allocation3 + $0x70] sm:$0xff] %vm779_vm2, %v3399_v37  ;;  %3702 = vst.msk [vmem:[%s5461_s25 + $0x38] sm:$0xff] %vm779_vm2, %v3686_v43  ;;  %v3644_v45 = vld [vmem:[#allocation3 + $0x68] sm:$0xff] }
 0x230   : > { %3799 = vst.msk [vmem:[%s5461_s25 + $0x38] sm:$0xff] %vm3791_vm3, %v3758_v60  ;;  %v3660_v50 = vadd.f32 %v4884_v22, %v3644_v45  ;;  %v3688_v58 = vld [vmem:[#allocation3 + $0x48] sm:$0xff] }
 0x231   : > { %3673 = vst.msk [vmem:[#allocation3 + $0x50] sm:$0xff] %vm779_vm2, %v3657_v44  ;;  %3701 = vst.msk [vmem:[%s5461_s25 + $0x30] sm:$0xff] %vm779_vm2, %v3685_v48  ;;  %v3643_v52 = vld [vmem:[#allocation3 + $0x60] sm:$0xff] }
 0x232   : > { %3798 = vst.msk [vmem:[%s5461_s25 + $0x30] sm:$0xff] %vm3791_vm3, %v3756_v9  ;;  %v3659_v63 = vadd.f32 %v3643_v52, %v3612_v42 }
 0x233   : > { %3676 = vst.msk [vmem:[#allocation3 + $0x68] sm:$0xff] %vm779_vm2, %v3660_v50  ;;  %3704 = vst.msk [vmem:[%s5461_s25 + $0x48] sm:$0xff] %vm779_vm2, %v3688_v58  ;;  %v3646_v5 = vld [vmem:[#allocation3 + $0x78] sm:$0xff]  ;;  %v3687_v6 = vld [vmem:[#allocation3 + $0x40] sm:$0xff] }
 0x234   : > { %3801 = vst.msk [vmem:[%s5461_s25 + $0x48] sm:$0xff] %vm3791_vm3, %v3762_v27  ;;  %v3662_v11 = vadd.f32 %v4887_v56, %v3646_v5  ;;  %v3690_v29 = vld [vmem:[#allocation3 + $0x58] sm:$0xff] }
 0x235   : > { %3675 = vst.msk [vmem:[#allocation3 + $0x60] sm:$0xff] %vm779_vm2, %v3659_v63  ;;  %3703 = vst.msk [vmem:[%s5461_s25 + $0x40] sm:$0xff] %vm779_vm2, %v3687_v6 }
 0x236   : > { %v3645_v23 = vld [vmem:[#allocation3 + $0x70] sm:$0xff]  ;;  %3800 = vst.msk [vmem:[%s5461_s25 + $0x40] sm:$0xff] %vm3791_vm3, %v3760_v38 }
 0x237   : > { %3678 = vst.msk [vmem:[#allocation3 + $0x78] sm:$0xff] %vm779_vm2, %v3662_v11  ;;  %v3661_v34 = vadd.f32 %v3645_v23, %v3622_v16  ;;  %3706 = vst.msk [vmem:[%s5461_s25 + $0x58] sm:$0xff] %vm779_vm2, %v3690_v29 }
 0x238   : > { %3803 = vst.msk [vmem:[%s5461_s25 + $0x58] sm:$0xff] %vm3791_vm3, %v3766_v51  ;;  %v3689_v47 = vld [vmem:[#allocation3 + $0x50] sm:$0xff] }
 0x239   : > { %3677 = vst.msk [vmem:[#allocation3 + $0x70] sm:$0xff] %vm779_vm2, %v3661_v34  ;;  %3705 = vst.msk [vmem:[%s5461_s25 + $0x50] sm:$0xff] %vm779_vm2, %v3689_v47 }
 0x23a   : > { %3802 = vst.msk [vmem:[%s5461_s25 + $0x50] sm:$0xff] %vm3791_vm3, %v3764_v0  ;;  %v3692_v53 = vld [vmem:[#allocation3 + $0x68] sm:$0xff] }
 0x23b   : > { %3708 = vst.msk [vmem:[%s5461_s25 + $0x68] sm:$0xff] %vm779_vm2, %v3692_v53 }
 0x23c   : > { %3805 = vst.msk [vmem:[%s5461_s25 + $0x68] sm:$0xff] %vm3791_vm3, %v3770_v41  ;;  %v3691_v55 = vld [vmem:[#allocation3 + $0x60] sm:$0xff] }
 0x23d   : > { %3707 = vst.msk [vmem:[%s5461_s25 + $0x60] sm:$0xff] %vm779_vm2, %v3691_v55 }
 0x23e   : > { %3804 = vst.msk [vmem:[%s5461_s25 + $0x60] sm:$0xff] %vm3791_vm3, %v3768_v49  ;;  %v3694_v57 = vld [vmem:[#allocation3 + $0x78] sm:$0xff] }
 0x23f   : > { %3710 = vst.msk [vmem:[%s5461_s25 + $0x78] sm:$0xff] %vm779_vm2, %v3694_v57 }
 0x240   : > { %3807 = vst.msk [vmem:[%s5461_s25 + $0x78] sm:$0xff] %vm3791_vm3, %v3774_v40  ;;  %v3693_v35 = vld [vmem:[#allocation3 + $0x70] sm:$0xff] }
 0x241   : > { %3709 = vst.msk [vmem:[%s5461_s25 + $0x70] sm:$0xff] %vm779_vm2, %v3693_v35 }
 0x242   : > { %3806 = vst.msk [vmem:[%s5461_s25 + $0x70] sm:$0xff] %vm3791_vm3, %v3772_v25 }
 0x243 PF: > { %s21_s28 = sadd.s32 1, %s5145_s28   ;;  %s6639_s3 = sld [smem:[#allocation11_spill]] }
 0x244   : > { %p18_p10 = scmp.ge.s32.totalorder %s21_s28, 6   ;;  %s6640_s18 = smov %s5109_s19 }
 0x245   : > { %s6641_s19 = smov %s5113_s20  ;;  %s6642_s20 = smov %s5333_s0 }
 0x246   : > { %s6643_s21 = smov %s5121_s22  ;;  %s6644_s22 = smov %s5125_s23 }
 0x247   : > { %s6645_s23 = smov %s5284_s7  ;;  %s6646_s24 = smov %s5137_s26 }
 0x248   : > { %s6647_s25 = smov %s5141_s27  ;;  %s6648_s26 = smov %s6651_s30 }
 0x249   : > { %s6649_s27 = smov %s6639_s3  ;;  %20 = sbr.rel (!%p18_p10) target bundleno = 14 (0xe), region = 135 }
 0x24e   :  { %3838 = vsyncpa [#allocation5], 1 }
 0x24f   :  { %3840 = vsyncpa [#allocation5 + $0x1], 1 }
 0x250   :  { %3841 = vsyncpa [#allocation7], 1 }
 0x251   :  { %3843 = vsyncpa [#allocation7 + $0x1], 1 }

</bundles_post_ra>
